<compile_context>
chip_gen: v7x
topology: tpu7x:2x2x1
jax: 0.10.0
libtpu: 0.0.40
codegen_flags: <defaults>
</compile_context>

<pallas_src>
import math
import jax
import jax.numpy as jnp
from jax.experimental import pallas as pl
from jax.experimental.pallas import tpu as pltpu

# ---------------- synthetic, small configuration ----------------
BATCH = 2
IN_CH = 3
IMG = 16
PATCH = 8
GRID_HW = IMG // PATCH                 # 2
NUM_PATCHES = GRID_HW * GRID_HW        # 4
SEQ = NUM_PATCHES + 1                  # 5 tokens (cls + patches)
D = 32                                 # ctx_dim == visual transformer width
HEADS = 4
HD = D // HEADS                        # 8
LAYERS = 3                             # clip_model.visual.transformer.layers
BOTTOM_LIMIT = 2                       # cfg.TRAINER.TOPDOWN_SECOVPT.BOTTOMLIMIT - 1
N_TOP = LAYERS - BOTTOM_LIMIT          # 1
N_CTX = 4                              # cfg.TRAINER.VPT.N_CTX
VIS_DIM = 16                           # clip_model.visual.output_dim
NUM_CLASSES = 5
CPN = 2                                # class_prompt_num = min(CPN, num_classes)
CAVPT_NCTX = 10                        # the fixed "10" extra ctx tokens in CAVPT
ATTN_INNER = 32                        # q/k projection dim of CAVPT Attention
CPP = IN_CH * PATCH * PATCH            # 192 (patchified conv1 contraction dim)
P_LEN = 16                             # padded token axis (>= SEQ + CAVPT_NCTX = 15)
LN_EPS = 1e-5
NEG_INF = -1e30

# packed lane-dense output layout: one (P_LEN, 128) f32 slab per image
OUT_LANES = 128
ATTN_OFF = 0                           # lanes [0, P_LEN)           : CAVPT attention map
FEAT_OFF = P_LEN                       # row 0, lanes [16, 16+VIS_DIM): image feature
LOG_OFF = 32                           # lanes [32+8*li, +NUM_CLASSES): layer-li logits

# padding-row invariants: pad rows are always either key-masked or overwritten
# (via jnp.where) before any valid row ever reads them.
assert P_LEN >= SEQ + CAVPT_NCTX
assert P_LEN >= SEQ + N_CTX and P_LEN >= SEQ + CPN
assert NUM_CLASSES <= 8 and LOG_OFF + 8 * N_TOP <= OUT_LANES
assert FEAT_OFF + VIS_DIM <= LOG_OFF


# =======================================================================
#                         the fused Pallas kernel
# =======================================================================
def _encoder_kernel(
    # per-image inputs (blocked over the batch grid axis), UNPADDED
    patches_ref, text_ref,
    # embeddings / global params
    conv_w_ref, place_patch_ref, place_text_ref, poscls_ref,
    ln_pre_ref, ln_post_ref, vis_proj_ref, vpt_ctx_ref,
    # CLIP residual-attention-block params (stacked over LAYERS)
    blk_ln_ref, blk_qkv_w_ref, blk_qkv_b_ref, blk_o_w_ref, blk_o_b_ref,
    blk_fc_w_ref, blk_fc_b_ref, blk_pj_w_ref, blk_pj_b_ref,
    # CAVPT params (stacked over N_TOP)
    cv_meta_w_ref, cv_meta_b_ref, cv_q_w_ref, cv_k_w_ref, cv_v_w_ref,
    cv_ln_ref, cv_cls_w_ref, cv_ctx_ref,
    # single packed output slab
    out_ref,
):
    f32 = jnp.float32
    bf16 = jnp.bfloat16

    # hoisted index grids (JAX does not CSE broadcast_in_dim -> build once)
    row_d = jax.lax.broadcasted_iota(jnp.int32, (P_LEN, D), 0)        # token row index
    col_pp = jax.lax.broadcasted_iota(jnp.int32, (P_LEN, P_LEN), 1)   # key column index

    def mm(a, b):
        # bf16 MXU operands, f32 accumulation
        return jnp.dot(a.astype(bf16), b.astype(bf16), preferred_element_type=f32)

    def mm_nt(a, b):
        # a @ b.T without materializing the transpose (contract last dims)
        return jax.lax.dot_general(
            a.astype(bf16), b.astype(bf16),
            dimension_numbers=(((1,), (1,)), ((), ())),
            preferred_element_type=f32)

    def layernorm(x, g, b):
        # single-pass moments: E[x^2] - mu^2 (fine in f32 at D=32)
        mu = jnp.mean(x, axis=-1, keepdims=True)
        m2 = jnp.mean(x * x, axis=-1, keepdims=True)
        var = m2 - mu * mu
        return (x - mu) * jax.lax.rsqrt(var + LN_EPS) * g + b

    def masked_softmax(s, key_len):
        # keys at columns >= key_len are padding -> exactly zero probability
        s = jnp.where(col_pp < key_len, s, NEG_INF)
        s = s - jnp.max(s, axis=-1, keepdims=True)
        e = jnp.exp(s)
        return e * pl.reciprocal(jnp.sum(e, axis=-1, keepdims=True), approx=True)

    def resblock(x, i, key_len):
        """CLIP ResidualAttentionBlock on the padded (P_LEN, D) sequence.
        Rows >= key_len are padding: masked out as attention keys and never read
        by later valid rows."""
        g1 = blk_ln_ref[i, 0:1, :]
        b1 = blk_ln_ref[i, 1:2, :]
        g2 = blk_ln_ref[i, 2:3, :]
        b2 = blk_ln_ref[i, 3:4, :]

        xa = layernorm(x, g1, b1)
        # fused in_proj: one (P_LEN, D) @ (D, 3D) matmul
        qkv = mm(xa, blk_qkv_w_ref[i]) + blk_qkv_b_ref[i]               # (P_LEN, 3D)
        scale = 1.0 / math.sqrt(HD)
        ctx = []
        for h in range(HEADS):                                          # static unroll
            q = qkv[:, h * HD:(h + 1) * HD]
            k = qkv[:, D + h * HD:D + (h + 1) * HD]
            v = qkv[:, 2 * D + h * HD:2 * D + (h + 1) * HD]
            p = masked_softmax(mm_nt(q, k) * scale, key_len)            # (P_LEN, P_LEN)
            ctx.append(mm(p, v))                                        # (P_LEN, HD)
        ctx = jnp.concatenate(ctx, axis=-1)                             # (P_LEN, D)
        x = x + mm(ctx, blk_o_w_ref[i]) + blk_o_b_ref[i]                # fused out_proj

        xm = layernorm(x, g2, b2)
        hdn = mm(xm, blk_fc_w_ref[i]) + blk_fc_b_ref[i]                 # (P_LEN, 4D)
        hdn = hdn * jax.nn.sigmoid(1.702 * hdn)                         # QuickGELU
        return x + mm(hdn, blk_pj_w_ref[i]) + blk_pj_b_ref[i]

    # make the packed write-back slab deterministic: one lane-dense DMA per image
    out_ref[...] = jnp.zeros((P_LEN, OUT_LANES), f32)

    # ---- conv1-as-matmul patch embedding + cls token + positional embedding ----
    # Unpadded (NUM_PATCHES, CPP) patches; scatter to rows [1, 1+NUM_PATCHES) via a
    # constant 0/1 placement matmul (poscls row 0 already holds cls_emb + pos[0]).
    ptok = mm(patches_ref[...], conv_w_ref[...])                        # (NUM_PATCHES, D)
    tokens = mm(place_patch_ref[...], ptok) + poscls_ref[...]           # (P_LEN, D)
    x = layernorm(tokens, ln_pre_ref[0:1, :], ln_pre_ref[1:2, :])

    # ---- bottom layers: VPT deep prompts at rows [SEQ, SEQ+N_CTX) ----
    for i in range(BOTTOM_LIMIT):
        x = jnp.where(row_d < SEQ, x, vpt_ctx_ref[i])                   # "concat" + tail drop
        x = resblock(x, i, SEQ + N_CTX)

    # ---- top layers: CAVPT class-aware prompts ----
    for li in range(N_TOP):
        # meta net on the unpadded text features, scattered to rows [SEQ, SEQ+CPN)
        tproj = mm(text_ref[...], cv_meta_w_ref[li]) + cv_meta_b_ref[li]   # (CPN, D)
        cp0 = mm(place_text_ref[...], tproj)                               # (P_LEN, D)
        # keys = [image tokens ; 10 CAVPT ctx rows]  (class_token.detach() is a fwd no-op)
        ct = jnp.where(row_d < SEQ, x, cv_ctx_ref[li])                     # (P_LEN, D)
        q = mm(cp0, cv_q_w_ref[li])                                        # (P_LEN, 32)
        k = mm(ct, cv_k_w_ref[li])                                         # (P_LEN, 32)
        p = masked_softmax(mm_nt(q, k) * (1.0 / math.sqrt(ATTN_INNER)),
                           SEQ + CAVPT_NCTX)                               # (P_LEN, P_LEN)
        out = mm(mm(p, ct), cv_v_w_ref[li])                                # (P_LEN, D)

        cp4logits = layernorm(out, cv_ln_ref[li, 0:1, :], cv_ln_ref[li, 1:2, :])
        out_ref[:, LOG_OFF + 8 * li:LOG_OFF + 8 * li + NUM_CLASSES] = \
            mm(cp4logits, cv_cls_w_ref[li])                                # logits
        class_prompt = layernorm(out + cp0,
                                 cv_ln_ref[li, 2:3, :], cv_ln_ref[li, 3:4, :])
        if li == N_TOP - 1:                # the module returns the last layer's attn map
            out_ref[:, ATTN_OFF:ATTN_OFF + P_LEN] = p

        # append class prompts (rows [SEQ, SEQ+CPN)) and run the resblock
        x = jnp.where(row_d < SEQ, x, class_prompt)
        x = resblock(x, BOTTOM_LIMIT + li, SEQ + CPN)
        # TODO(synk): the reference's `need_attn=True` branch indexes resblocks with a
        # call expression (source bug) and is never exercised; only need_attn=False here.

    # ---- ln_post on the cls token + visual projection ----
    cls_tok = layernorm(x[0:1, :], ln_post_ref[0:1, :], ln_post_ref[1:2, :])
    out_ref[0:1, FEAT_OFF:FEAT_OFF + VIS_DIM] = mm(cls_tok, vis_proj_ref[...])


# =======================================================================
#                               wrapper
# =======================================================================
def patchify(x_nchw, patch):
    """NCHW image -> (B, num_patches, C*patch*patch) in (c, kh, kw) order."""
    B, C, H, W = x_nchw.shape
    x = x_nchw.reshape(B, C, H // patch, patch, W // patch, patch)
    x = x.transpose(0, 2, 4, 1, 3, 5)
    return x.reshape(B, (H // patch) * (W // patch), C * patch * patch)


def _full_spec(shape):
    nd = len(shape)
    return pl.BlockSpec(tuple(shape), lambda b, _nd=nd: (0,) * _nd)


def _batch_spec(tail):
    nd = len(tail)
    return pl.BlockSpec((None,) + tuple(tail), lambda b, _nd=nd: (b,) + (0,) * _nd)


PARAM_ORDER = (
    'conv_w', 'place_patch', 'place_text', 'poscls',
    'ln_pre', 'ln_post', 'vis_proj', 'vpt_ctx',
    'blk_ln', 'blk_qkv_w', 'blk_qkv_b', 'blk_o_w', 'blk_o_b',
    'blk_fc_w', 'blk_fc_b', 'blk_pj_w', 'blk_pj_b',
    'cv_meta_w', 'cv_meta_b', 'cv_q_w', 'cv_k_w', 'cv_v_w',
    'cv_ln', 'cv_cls_w', 'cv_ctx',
)


@jax.jit
def image_encoder_vptd(x_img, text_feature, params):
    """ImageEncoder_VPTD.forward -> (image_features, layer_logits list, attn_map)."""
    B = x_img.shape[0]

    # conv1 (stride == kernel == PATCH, no bias) expressed as patchify + matmul;
    # NO host-side zero-padding: the kernel scatters rows itself.
    patches = patchify(x_img, PATCH)                                    # (B, 4, CPP)

    weights = [params[k] for k in PARAM_ORDER]
    in_specs = [_batch_spec((NUM_PATCHES, CPP)), _batch_spec((CPN, VIS_DIM))]
    in_specs += [_full_spec(w.shape) for w in weights]

    packed = pl.pallas_call(
        _encoder_kernel,
        grid=(B,),
        in_specs=in_specs,
        out_specs=_batch_spec((P_LEN, OUT_LANES)),
        out_shape=jax.ShapeDtypeStruct((B, P_LEN, OUT_LANES), jnp.float32),
        compiler_params=pltpu.CompilerParams(
            dimension_semantics=("parallel",)),      # v7x: one image per TensorCore
    )(patches, text_feature, *weights)

    # unpack the lane-dense slab
    feats = packed[:, 0, FEAT_OFF:FEAT_OFF + VIS_DIM]                   # (B, VIS_DIM)
    layer_logits = [
        jnp.transpose(
            packed[:, SEQ:SEQ + CPN, LOG_OFF + 8 * li:LOG_OFF + 8 * li + NUM_CLASSES],
            (1, 0, 2))[None]
        for li in range(N_TOP)
    ]                                                                    # (1, CPN, B, n_cls)
    attn_map = packed[:, SEQ:SEQ + CPN, ATTN_OFF:ATTN_OFF + SEQ + CAVPT_NCTX]
    return feats, layer_logits, attn_map


# =======================================================================
#                 deterministic parameter initialisation
# =======================================================================
def init_params(key):
    keys = iter(jax.random.split(key, 64))
    bf16 = jnp.bfloat16

    def nrm(shape, std=0.02, dtype=jnp.float32):
        return (std * jax.random.normal(next(keys), shape, dtype=jnp.float32)).astype(dtype)

    # class / positional embedding folded into one padded (P_LEN, D) slab.
    cls_emb = nrm((D,))
    pos_emb = nrm((SEQ, D))
    poscls = jnp.zeros((P_LEN, D), jnp.float32)
    poscls = poscls.at[0, :].set(cls_emb + pos_emb[0])
    poscls = poscls.at[1:SEQ, :].set(pos_emb[1:])

    # constant 0/1 scatter matrices (exact in bf16): patch tokens -> rows [1,1+NP),
    # meta-net text prompts -> rows [SEQ, SEQ+CPN).
    place_patch = jnp.zeros((P_LEN, NUM_PATCHES), jnp.float32)
    place_patch = place_patch.at[1 + jnp.arange(NUM_PATCHES), jnp.arange(NUM_PATCHES)].set(1.0)
    place_patch = place_patch.astype(bf16)
    place_text = jnp.zeros((P_LEN, CPN), jnp.float32)
    place_text = place_text.at[SEQ + jnp.arange(CPN), jnp.arange(CPN)].set(1.0)
    place_text = place_text.astype(bf16)

    # VPT deep prompts, pre-placed at rows [SEQ, SEQ+N_CTX)
    vpt_ctx = nrm((BOTTOM_LIMIT, N_CTX, D))
    vpt_ctx_pad = jnp.zeros((BOTTOM_LIMIT, P_LEN, D), jnp.float32)
    vpt_ctx_pad = vpt_ctx_pad.at[:, SEQ:SEQ + N_CTX, :].set(vpt_ctx)

    # CAVPT ctx vectors, pre-placed at rows [SEQ, SEQ+10)
    cv_ctx = nrm((N_TOP, CAVPT_NCTX, D))
    cv_ctx_pad = jnp.zeros((N_TOP, P_LEN, D), jnp.float32)
    cv_ctx_pad = cv_ctx_pad.at[:, SEQ:SEQ + CAVPT_NCTX, :].set(cv_ctx)

    def ln_stack(n):  # rows per layer: [gamma1, beta1, gamma2, beta2]
        g = jnp.ones((n, 1, D), jnp.float32)
        b = jnp.zeros((n, 1, D), jnp.float32)
        return jnp.concatenate([g, b, g, b], axis=1)

    ln2 = jnp.concatenate([jnp.ones((1, D), jnp.float32),
                           jnp.zeros((1, D), jnp.float32)], axis=0)

    # NOTE: a real CLIP checkpoint maps as  blk_qkv_w = in_proj_weight.T (D, 3D)
    # (heads are contiguous HD-wide lane chunks of each q/k/v segment) and
    # blk_o_w = out_proj.weight.T.  Matmul weights are stored in bf16 (MXU operands);
    # LN params, biases and residual-stream prompts stay f32.
    params = dict(
        conv_w=nrm((CPP, D), dtype=bf16),
        place_patch=place_patch,
        place_text=place_text,
        poscls=poscls,
        ln_pre=ln2,
        ln_post=ln2,
        vis_proj=nrm((D, VIS_DIM), dtype=bf16),
        vpt_ctx=vpt_ctx_pad,
        blk_ln=ln_stack(LAYERS),
        blk_qkv_w=nrm((LAYERS, D, 3 * D), dtype=bf16),
        blk_qkv_b=jnp.zeros((LAYERS, 1, 3 * D), jnp.float32),
        blk_o_w=nrm((LAYERS, D, D), dtype=bf16),
        blk_o_b=jnp.zeros((LAYERS, 1, D), jnp.float32),
        blk_fc_w=nrm((LAYERS, D, 4 * D), dtype=bf16),
        blk_fc_b=jnp.zeros((LAYERS, 1, 4 * D), jnp.float32),
        blk_pj_w=nrm((LAYERS, 4 * D, D), dtype=bf16),
        blk_pj_b=jnp.zeros((LAYERS, 1, D), jnp.float32),
        cv_meta_w=nrm((N_TOP, VIS_DIM, D), dtype=bf16),
        cv_meta_b=jnp.zeros((N_TOP, 1, D), jnp.float32),
        cv_q_w=nrm((N_TOP, D, ATTN_INNER), dtype=bf16),
        cv_k_w=nrm((N_TOP, D, ATTN_INNER), dtype=bf16),
        cv_v_w=nrm((N_TOP, D, D), dtype=bf16),
        cv_ln=ln_stack(N_TOP),
        cv_cls_w=nrm((N_TOP, D, NUM_CLASSES), dtype=bf16),
        cv_ctx=cv_ctx_pad,
    )
    return params


if __name__ == "__main__":
    key = jax.random.PRNGKey(0)
    kp, kx, kt = jax.random.split(key, 3)
    params = init_params(kp)
    x_img = jax.random.normal(kx, (BATCH, IN_CH, IMG, IMG), dtype=jnp.float32)
    text_feature = jax.random.normal(kt, (BATCH, CPN, VIS_DIM), dtype=jnp.float32)

    feats, layer_logits, attn_map = image_encoder_vptd(x_img, text_feature, params)
    feats = jax.block_until_ready(feats)
    layer_logits = [jax.block_until_ready(l) for l in layer_logits]
    attn_map = jax.block_until_ready(attn_map)

    assert feats.shape == (BATCH, VIS_DIM)
    assert len(layer_logits) == N_TOP
    assert layer_logits[0].shape == (1, CPN, BATCH, NUM_CLASSES)
    assert attn_map.shape == (BATCH, CPN, SEQ + CAVPT_NCTX)
    assert bool(jnp.all(jnp.isfinite(feats)))
    assert bool(jnp.all(jnp.isfinite(attn_map)))
    # attention rows sum to ~1 over the SEQ+10 valid keys (approx reciprocal tolerance)
    assert bool(jnp.all(jnp.abs(jnp.sum(attn_map, axis=-1) - 1.0) < 2e-2))
    print("KERNEL_OK")
</pallas_src>

<mosaic_0001>
module attributes {stable_mosaic.version = 11 : i64} {
  func.func @_encoder_kernel(%arg0: i32, %arg1: memref<1x4x192xf32, #tpu.memory_space<vmem>>, %arg2: memref<1x2x16xf32, #tpu.memory_space<vmem>>, %arg3: memref<192x32xbf16, #tpu.memory_space<vmem>>, %arg4: memref<16x4xbf16, #tpu.memory_space<vmem>>, %arg5: memref<16x2xbf16, #tpu.memory_space<vmem>>, %arg6: memref<16x32xf32, #tpu.memory_space<vmem>>, %arg7: memref<2x32xf32, #tpu.memory_space<vmem>>, %arg8: memref<2x32xf32, #tpu.memory_space<vmem>>, %arg9: memref<32x16xbf16, #tpu.memory_space<vmem>>, %arg10: memref<2x16x32xf32, #tpu.memory_space<vmem>>, %arg11: memref<3x4x32xf32, #tpu.memory_space<vmem>>, %arg12: memref<3x32x96xbf16, #tpu.memory_space<vmem>>, %arg13: memref<3x1x96xf32, #tpu.memory_space<vmem>>, %arg14: memref<3x32x32xbf16, #tpu.memory_space<vmem>>, %arg15: memref<3x1x32xf32, #tpu.memory_space<vmem>>, %arg16: memref<3x32x128xbf16, #tpu.memory_space<vmem>>, %arg17: memref<3x1x128xf32, #tpu.memory_space<vmem>>, %arg18: memref<3x128x32xbf16, #tpu.memory_space<vmem>>, %arg19: memref<3x1x32xf32, #tpu.memory_space<vmem>>, %arg20: memref<1x16x32xbf16, #tpu.memory_space<vmem>>, %arg21: memref<1x1x32xf32, #tpu.memory_space<vmem>>, %arg22: memref<1x32x32xbf16, #tpu.memory_space<vmem>>, %arg23: memref<1x32x32xbf16, #tpu.memory_space<vmem>>, %arg24: memref<1x32x32xbf16, #tpu.memory_space<vmem>>, %arg25: memref<1x4x32xf32, #tpu.memory_space<vmem>>, %arg26: memref<1x32x5xbf16, #tpu.memory_space<vmem>>, %arg27: memref<1x16x32xf32, #tpu.memory_space<vmem>>, %arg28: memref<1x16x128xf32, #tpu.memory_space<vmem>>) attributes {dimension_semantics = [#tpu.dimension_semantics<parallel>], iteration_bounds = array<i64: 2>, scalar_prefetch = 0 : i64, scratch_operands = 0 : i64, tpu.core_type = #tpu.core_type<tc>, window_params = [{transform_indices = @transform_0, window_bounds = array<i64: 1, 4, 192>}, {transform_indices = @transform_1, window_bounds = array<i64: 1, 2, 16>}, {pipeline_mode = #tpu.pipeline_mode<synchronous>, transform_indices = @transform_2, window_bounds = array<i64: 192, 32>}, {pipeline_mode = #tpu.pipeline_mode<synchronous>, transform_indices = @transform_3, window_bounds = array<i64: 16, 4>}, {pipeline_mode = #tpu.pipeline_mode<synchronous>, transform_indices = @transform_4, window_bounds = array<i64: 16, 2>}, {pipeline_mode = #tpu.pipeline_mode<synchronous>, transform_indices = @transform_5, window_bounds = array<i64: 16, 32>}, {pipeline_mode = #tpu.pipeline_mode<synchronous>, transform_indices = @transform_6, window_bounds = array<i64: 2, 32>}, {pipeline_mode = #tpu.pipeline_mode<synchronous>, transform_indices = @transform_7, window_bounds = array<i64: 2, 32>}, {pipeline_mode = #tpu.pipeline_mode<synchronous>, transform_indices = @transform_8, window_bounds = array<i64: 32, 16>}, {pipeline_mode = #tpu.pipeline_mode<synchronous>, transform_indices = @transform_9, window_bounds = array<i64: 2, 16, 32>}, {pipeline_mode = #tpu.pipeline_mode<synchronous>, transform_indices = @transform_10, window_bounds = array<i64: 3, 4, 32>}, {pipeline_mode = #tpu.pipeline_mode<synchronous>, transform_indices = @transform_11, window_bounds = array<i64: 3, 32, 96>}, {pipeline_mode = #tpu.pipeline_mode<synchronous>, transform_indices = @transform_12, window_bounds = array<i64: 3, 1, 96>}, {pipeline_mode = #tpu.pipeline_mode<synchronous>, transform_indices = @transform_13, window_bounds = array<i64: 3, 32, 32>}, {pipeline_mode = #tpu.pipeline_mode<synchronous>, transform_indices = @transform_14, window_bounds = array<i64: 3, 1, 32>}, {pipeline_mode = #tpu.pipeline_mode<synchronous>, transform_indices = @transform_15, window_bounds = array<i64: 3, 32, 128>}, {pipeline_mode = #tpu.pipeline_mode<synchronous>, transform_indices = @transform_16, window_bounds = array<i64: 3, 1, 128>}, {pipeline_mode = #tpu.pipeline_mode<synchronous>, transform_indices = @transform_17, window_bounds = array<i64: 3, 128, 32>}, {pipeline_mode = #tpu.pipeline_mode<synchronous>, transform_indices = @transform_18, window_bounds = array<i64: 3, 1, 32>}, {pipeline_mode = #tpu.pipeline_mode<synchronous>, transform_indices = @transform_19, window_bounds = array<i64: 1, 16, 32>}, {pipeline_mode = #tpu.pipeline_mode<synchronous>, transform_indices = @transform_20, window_bounds = array<i64: 1, 1, 32>}, {pipeline_mode = #tpu.pipeline_mode<synchronous>, transform_indices = @transform_21, window_bounds = array<i64: 1, 32, 32>}, {pipeline_mode = #tpu.pipeline_mode<synchronous>, transform_indices = @transform_22, window_bounds = array<i64: 1, 32, 32>}, {pipeline_mode = #tpu.pipeline_mode<synchronous>, transform_indices = @transform_23, window_bounds = array<i64: 1, 32, 32>}, {pipeline_mode = #tpu.pipeline_mode<synchronous>, transform_indices = @transform_24, window_bounds = array<i64: 1, 4, 32>}, {pipeline_mode = #tpu.pipeline_mode<synchronous>, transform_indices = @transform_25, window_bounds = array<i64: 1, 32, 5>}, {pipeline_mode = #tpu.pipeline_mode<synchronous>, transform_indices = @transform_26, window_bounds = array<i64: 1, 16, 32>}, {transform_indices = @transform_27, window_bounds = array<i64: 1, 16, 128>}]} {
    %0 = tpu.iota {dimensions = array<i32: 0>} : vector<16x32xi32>
    %1 = tpu.iota {dimensions = array<i32: 1>} : vector<16x16xi32>
    %cst = arith.constant 0.000000e+00 : f32
    %2 = vector.broadcast %cst : f32 to vector<16x128xf32>
    %c0 = arith.constant 0 : index
    %c0_0 = arith.constant 0 : index
    %c0_1 = arith.constant 0 : index
    %3 = vector.load %arg28[%c0, %c0_0, %c0_1] : memref<1x16x128xf32, #tpu.memory_space<vmem>>, vector<1x16x128xf32>
    %4 = vector.shape_cast %3 : vector<1x16x128xf32> to vector<16x128xf32>
    %5 = vector.shape_cast %2 : vector<16x128xf32> to vector<1x16x128xf32>
    tpu.vector_store %arg28[%c0, %c0_0, %c0_1], %5 {strides = array<i32>} : memref<1x16x128xf32, #tpu.memory_space<vmem>>, vector<1x16x128xf32>,
    %c0_2 = arith.constant 0 : index
    %c0_3 = arith.constant 0 : index
    %c0_4 = arith.constant 0 : index
    %6 = vector.load %arg1[%c0_2, %c0_3, %c0_4] : memref<1x4x192xf32, #tpu.memory_space<vmem>>, vector<1x4x192xf32>
    %7 = vector.shape_cast %6 : vector<1x4x192xf32> to vector<4x192xf32>
    %c0_5 = arith.constant 0 : index
    %c0_6 = arith.constant 0 : index
    %8 = vector.load %arg3[%c0_5, %c0_6] : memref<192x32xbf16, #tpu.memory_space<vmem>>, vector<192x32xbf16>
    %9 = arith.truncf %7 : vector<4x192xf32> to vector<4x192xbf16>
    %cst_7 = arith.constant dense<0.000000e+00> : vector<4x32xf32>
    %10 = tpu.matmul %9, %8, %cst_7 {dimension_numbers = #tpu.dot_dimension_numbers<[1], [0], [0], [1], [0, 0, 1, 1], [], []>} : vector<4x192xbf16>, vector<192x32xbf16>, vector<4x32xf32> -> vector<4x32xf32>
    %c0_8 = arith.constant 0 : index
    %c0_9 = arith.constant 0 : index
    %11 = vector.load %arg4[%c0_8, %c0_9] : memref<16x4xbf16, #tpu.memory_space<vmem>>, vector<16x4xbf16>
    %12 = arith.truncf %10 : vector<4x32xf32> to vector<4x32xbf16>
    %cst_10 = arith.constant dense<0.000000e+00> : vector<16x32xf32>
    %13 = tpu.matmul %11, %12, %cst_10 {dimension_numbers = #tpu.dot_dimension_numbers<[1], [0], [0], [1], [0, 0, 1, 1], [], []>} : vector<16x4xbf16>, vector<4x32xbf16>, vector<16x32xf32> -> vector<16x32xf32>
    %c0_11 = arith.constant 0 : index
    %c0_12 = arith.constant 0 : index
    %14 = vector.load %arg6[%c0_11, %c0_12] : memref<16x32xf32, #tpu.memory_space<vmem>>, vector<16x32xf32>
    %15 = arith.addf %13, %14 : vector<16x32xf32>
    %c0_13 = arith.constant 0 : index
    %c0_14 = arith.constant 0 : index
    %16 = vector.load %arg7[%c0_13, %c0_14] : memref<2x32xf32, #tpu.memory_space<vmem>>, vector<1x32xf32>
    %c1 = arith.constant 1 : index
    %c0_15 = arith.constant 0 : index
    %17 = vector.load %arg7[%c1, %c0_15] : memref<2x32xf32, #tpu.memory_space<vmem>>, vector<1x32xf32>
    %cst_16 = arith.constant dense<0.000000e+00> : vector<16xf32>
    %18 = vector.multi_reduction <add>, %15, %cst_16 [1] : vector<16x32xf32> to vector<16xf32>
    %19 = vector.shape_cast %18 : vector<16xf32> to vector<16x1xf32>
    %cst_17 = arith.constant 3.200000e+01 : f32
    %20 = vector.broadcast %cst_17 : f32 to vector<16x1xf32>
    %21 = arith.divf %19, %20 : vector<16x1xf32>
    %22 = arith.mulf %15, %15 : vector<16x32xf32>
    %cst_18 = arith.constant dense<0.000000e+00> : vector<16xf32>
    %23 = vector.multi_reduction <add>, %22, %cst_18 [1] : vector<16x32xf32> to vector<16xf32>
    %24 = vector.shape_cast %23 : vector<16xf32> to vector<16x1xf32>
    %cst_19 = arith.constant 3.200000e+01 : f32
    %25 = vector.broadcast %cst_19 : f32 to vector<16x1xf32>
    %26 = arith.divf %24, %25 : vector<16x1xf32>
    %27 = arith.mulf %21, %21 : vector<16x1xf32>
    %28 = arith.subf %26, %27 : vector<16x1xf32>
    %29 = vector.broadcast %21 : vector<16x1xf32> to vector<16x32xf32>
    %30 = arith.subf %15, %29 : vector<16x32xf32>
    %cst_20 = arith.constant 9.99999974E-6 : f32
    %31 = vector.broadcast %cst_20 : f32 to vector<16x1xf32>
    %32 = arith.addf %28, %31 : vector<16x1xf32>
    %33 = math.rsqrt %32 : vector<16x1xf32>
    %34 = vector.broadcast %33 : vector<16x1xf32> to vector<16x32xf32>
    %35 = arith.mulf %30, %34 : vector<16x32xf32>
    %36 = vector.broadcast %16 : vector<1x32xf32> to vector<16x32xf32>
    %37 = arith.mulf %35, %36 : vector<16x32xf32>
    %38 = vector.broadcast %17 : vector<1x32xf32> to vector<16x32xf32>
    %39 = arith.addf %37, %38 : vector<16x32xf32>
    %c5_i32 = arith.constant 5 : i32
    %40 = vector.broadcast %c5_i32 : i32 to vector<16x32xi32>
    %41 = arith.cmpi slt, %0, %40 : vector<16x32xi32>
    %c0_21 = arith.constant 0 : index
    %c0_22 = arith.constant 0 : index
    %c0_23 = arith.constant 0 : index
    %42 = vector.load %arg10[%c0_21, %c0_22, %c0_23] : memref<2x16x32xf32, #tpu.memory_space<vmem>>, vector<1x16x32xf32>
    %43 = vector.shape_cast %42 : vector<1x16x32xf32> to vector<16x32xf32>
    %44 = arith.select %41, %39, %43 : vector<16x32xi1>, vector<16x32xf32>
    %c0_24 = arith.constant 0 : index
    %c0_25 = arith.constant 0 : index
    %c0_26 = arith.constant 0 : index
    %45 = vector.load %arg11[%c0_24, %c0_25, %c0_26] : memref<3x4x32xf32, #tpu.memory_space<vmem>>, vector<1x1x32xf32>
    %46 = vector.shape_cast %45 : vector<1x1x32xf32> to vector<1x32xf32>
    %c0_27 = arith.constant 0 : index
    %c1_28 = arith.constant 1 : index
    %c0_29 = arith.constant 0 : index
    %47 = vector.load %arg11[%c0_27, %c1_28, %c0_29] : memref<3x4x32xf32, #tpu.memory_space<vmem>>, vector<1x1x32xf32>
    %48 = vector.shape_cast %47 : vector<1x1x32xf32> to vector<1x32xf32>
    %c0_30 = arith.constant 0 : index
    %c2 = arith.constant 2 : index
    %c0_31 = arith.constant 0 : index
    %49 = vector.load %arg11[%c0_30, %c2, %c0_31] : memref<3x4x32xf32, #tpu.memory_space<vmem>>, vector<1x1x32xf32>
    %50 = vector.shape_cast %49 : vector<1x1x32xf32> to vector<1x32xf32>
    %c0_32 = arith.constant 0 : index
    %c3 = arith.constant 3 : index
    %c0_33 = arith.constant 0 : index
    %51 = vector.load %arg11[%c0_32, %c3, %c0_33] : memref<3x4x32xf32, #tpu.memory_space<vmem>>, vector<1x1x32xf32>
    %52 = vector.shape_cast %51 : vector<1x1x32xf32> to vector<1x32xf32>
    %cst_34 = arith.constant dense<0.000000e+00> : vector<16xf32>
    %53 = vector.multi_reduction <add>, %44, %cst_34 [1] : vector<16x32xf32> to vector<16xf32>
    %54 = vector.shape_cast %53 : vector<16xf32> to vector<16x1xf32>
    %cst_35 = arith.constant 3.200000e+01 : f32
    %55 = vector.broadcast %cst_35 : f32 to vector<16x1xf32>
    %56 = arith.divf %54, %55 : vector<16x1xf32>
    %57 = arith.mulf %44, %44 : vector<16x32xf32>
    %cst_36 = arith.constant dense<0.000000e+00> : vector<16xf32>
    %58 = vector.multi_reduction <add>, %57, %cst_36 [1] : vector<16x32xf32> to vector<16xf32>
    %59 = vector.shape_cast %58 : vector<16xf32> to vector<16x1xf32>
    %cst_37 = arith.constant 3.200000e+01 : f32
    %60 = vector.broadcast %cst_37 : f32 to vector<16x1xf32>
    %61 = arith.divf %59, %60 : vector<16x1xf32>
    %62 = arith.mulf %56, %56 : vector<16x1xf32>
    %63 = arith.subf %61, %62 : vector<16x1xf32>
    %64 = vector.broadcast %56 : vector<16x1xf32> to vector<16x32xf32>
    %65 = arith.subf %44, %64 : vector<16x32xf32>
    %cst_38 = arith.constant 9.99999974E-6 : f32
    %66 = vector.broadcast %cst_38 : f32 to vector<16x1xf32>
    %67 = arith.addf %63, %66 : vector<16x1xf32>
    %68 = math.rsqrt %67 : vector<16x1xf32>
    %69 = vector.broadcast %68 : vector<16x1xf32> to vector<16x32xf32>
    %70 = arith.mulf %65, %69 : vector<16x32xf32>
    %71 = vector.broadcast %46 : vector<1x32xf32> to vector<16x32xf32>
    %72 = arith.mulf %70, %71 : vector<16x32xf32>
    %73 = vector.broadcast %48 : vector<1x32xf32> to vector<16x32xf32>
    %74 = arith.addf %72, %73 : vector<16x32xf32>
    %c0_39 = arith.constant 0 : index
    %c0_40 = arith.constant 0 : index
    %c0_41 = arith.constant 0 : index
    %75 = vector.load %arg12[%c0_39, %c0_40, %c0_41] : memref<3x32x96xbf16, #tpu.memory_space<vmem>>, vector<1x32x96xbf16>
    %76 = vector.shape_cast %75 : vector<1x32x96xbf16> to vector<32x96xbf16>
    %77 = arith.truncf %74 : vector<16x32xf32> to vector<16x32xbf16>
    %cst_42 = arith.constant dense<0.000000e+00> : vector<16x96xf32>
    %78 = tpu.matmul %77, %76, %cst_42 {dimension_numbers = #tpu.dot_dimension_numbers<[1], [0], [0], [1], [0, 0, 1, 1], [], []>} : vector<16x32xbf16>, vector<32x96xbf16>, vector<16x96xf32> -> vector<16x96xf32>
    %c0_43 = arith.constant 0 : index
    %c0_44 = arith.constant 0 : index
    %c0_45 = arith.constant 0 : index
    %79 = vector.load %arg13[%c0_43, %c0_44, %c0_45] : memref<3x1x96xf32, #tpu.memory_space<vmem>>, vector<1x1x96xf32>
    %80 = vector.shape_cast %79 : vector<1x1x96xf32> to vector<1x96xf32>
    %81 = vector.broadcast %80 : vector<1x96xf32> to vector<16x96xf32>
    %82 = arith.addf %78, %81 : vector<16x96xf32>
    %83 = vector.extract_strided_slice %82 {offsets = [0, 0], sizes = [16, 8], strides = [1, 1]} : vector<16x96xf32> to vector<16x8xf32>
    %84 = vector.extract_strided_slice %82 {offsets = [0, 32], sizes = [16, 8], strides = [1, 1]} : vector<16x96xf32> to vector<16x8xf32>
    %85 = vector.extract_strided_slice %82 {offsets = [0, 64], sizes = [16, 8], strides = [1, 1]} : vector<16x96xf32> to vector<16x8xf32>
    %86 = arith.truncf %83 : vector<16x8xf32> to vector<16x8xbf16>
    %87 = arith.truncf %84 : vector<16x8xf32> to vector<16x8xbf16>
    %cst_46 = arith.constant dense<0.000000e+00> : vector<16x16xf32>
    %88 = tpu.matmul %86, %87, %cst_46 {dimension_numbers = #tpu.dot_dimension_numbers<[1], [1], [0], [0], [0, 0, 1, 0], [], []>} : vector<16x8xbf16>, vector<16x8xbf16>, vector<16x16xf32> -> vector<16x16xf32>
    %cst_47 = arith.constant 0.353553385 : f32
    %89 = vector.broadcast %cst_47 : f32 to vector<16x16xf32>
    %90 = arith.mulf %88, %89 : vector<16x16xf32>
    %c9_i32 = arith.constant 9 : i32
    %91 = vector.broadcast %c9_i32 : i32 to vector<16x16xi32>
    %92 = arith.cmpi slt, %1, %91 : vector<16x16xi32>
    %cst_48 = arith.constant -1.000000e+30 : f32
    %93 = vector.broadcast %cst_48 : f32 to vector<16x16xf32>
    %94 = arith.select %92, %90, %93 : vector<16x16xi1>, vector<16x16xf32>
    %cst_49 = arith.constant dense<0xFF800000> : vector<16xf32>
    %95 = vector.multi_reduction <maximumf>, %94, %cst_49 [1] : vector<16x16xf32> to vector<16xf32>
    %96 = vector.shape_cast %95 : vector<16xf32> to vector<16x1xf32>
    %97 = vector.broadcast %96 : vector<16x1xf32> to vector<16x16xf32>
    %98 = arith.subf %94, %97 : vector<16x16xf32>
    %99 = math.exp %98 : vector<16x16xf32>
    %cst_50 = arith.constant dense<0.000000e+00> : vector<16xf32>
    %100 = vector.multi_reduction <add>, %99, %cst_50 [1] : vector<16x16xf32> to vector<16xf32>
    %101 = vector.shape_cast %100 : vector<16xf32> to vector<16x1xf32>
    %102 = tpu.reciprocal %101 {approx = true} : vector<16x1xf32> -> vector<16x1xf32>
    %103 = vector.broadcast %102 : vector<16x1xf32> to vector<16x16xf32>
    %104 = arith.mulf %99, %103 : vector<16x16xf32>
    %105 = arith.truncf %104 : vector<16x16xf32> to vector<16x16xbf16>
    %106 = arith.truncf %85 : vector<16x8xf32> to vector<16x8xbf16>
    %cst_51 = arith.constant dense<0.000000e+00> : vector<16x8xf32>
    %107 = tpu.matmul %105, %106, %cst_51 {dimension_numbers = #tpu.dot_dimension_numbers<[1], [0], [0], [1], [0, 0, 1, 1], [], []>} : vector<16x16xbf16>, vector<16x8xbf16>, vector<16x8xf32> -> vector<16x8xf32>
    %108 = vector.extract_strided_slice %82 {offsets = [0, 8], sizes = [16, 8], strides = [1, 1]} : vector<16x96xf32> to vector<16x8xf32>
    %109 = vector.extract_strided_slice %82 {offsets = [0, 40], sizes = [16, 8], strides = [1, 1]} : vector<16x96xf32> to vector<16x8xf32>
    %110 = vector.extract_strided_slice %82 {offsets = [0, 72], sizes = [16, 8], strides = [1, 1]} : vector<16x96xf32> to vector<16x8xf32>
    %111 = arith.truncf %108 : vector<16x8xf32> to vector<16x8xbf16>
    %112 = arith.truncf %109 : vector<16x8xf32> to vector<16x8xbf16>
    %cst_52 = arith.constant dense<0.000000e+00> : vector<16x16xf32>
    %113 = tpu.matmul %111, %112, %cst_52 {dimension_numbers = #tpu.dot_dimension_numbers<[1], [1], [0], [0], [0, 0, 1, 0], [], []>} : vector<16x8xbf16>, vector<16x8xbf16>, vector<16x16xf32> -> vector<16x16xf32>
    %cst_53 = arith.constant 0.353553385 : f32
    %114 = vector.broadcast %cst_53 : f32 to vector<16x16xf32>
    %115 = arith.mulf %113, %114 : vector<16x16xf32>
    %c9_i32_54 = arith.constant 9 : i32
    %116 = vector.broadcast %c9_i32_54 : i32 to vector<16x16xi32>
    %117 = arith.cmpi slt, %1, %116 : vector<16x16xi32>
    %cst_55 = arith.constant -1.000000e+30 : f32
    %118 = vector.broadcast %cst_55 : f32 to vector<16x16xf32>
    %119 = arith.select %117, %115, %118 : vector<16x16xi1>, vector<16x16xf32>
    %cst_56 = arith.constant dense<0xFF800000> : vector<16xf32>
    %120 = vector.multi_reduction <maximumf>, %119, %cst_56 [1] : vector<16x16xf32> to vector<16xf32>
    %121 = vector.shape_cast %120 : vector<16xf32> to vector<16x1xf32>
    %122 = vector.broadcast %121 : vector<16x1xf32> to vector<16x16xf32>
    %123 = arith.subf %119, %122 : vector<16x16xf32>
    %124 = math.exp %123 : vector<16x16xf32>
    %cst_57 = arith.constant dense<0.000000e+00> : vector<16xf32>
    %125 = vector.multi_reduction <add>, %124, %cst_57 [1] : vector<16x16xf32> to vector<16xf32>
    %126 = vector.shape_cast %125 : vector<16xf32> to vector<16x1xf32>
    %127 = tpu.reciprocal %126 {approx = true} : vector<16x1xf32> -> vector<16x1xf32>
    %128 = vector.broadcast %127 : vector<16x1xf32> to vector<16x16xf32>
    %129 = arith.mulf %124, %128 : vector<16x16xf32>
    %130 = arith.truncf %129 : vector<16x16xf32> to vector<16x16xbf16>
    %131 = arith.truncf %110 : vector<16x8xf32> to vector<16x8xbf16>
    %cst_58 = arith.constant dense<0.000000e+00> : vector<16x8xf32>
    %132 = tpu.matmul %130, %131, %cst_58 {dimension_numbers = #tpu.dot_dimension_numbers<[1], [0], [0], [1], [0, 0, 1, 1], [], []>} : vector<16x16xbf16>, vector<16x8xbf16>, vector<16x8xf32> -> vector<16x8xf32>
    %133 = vector.extract_strided_slice %82 {offsets = [0, 16], sizes = [16, 8], strides = [1, 1]} : vector<16x96xf32> to vector<16x8xf32>
    %134 = vector.extract_strided_slice %82 {offsets = [0, 48], sizes = [16, 8], strides = [1, 1]} : vector<16x96xf32> to vector<16x8xf32>
    %135 = vector.extract_strided_slice %82 {offsets = [0, 80], sizes = [16, 8], strides = [1, 1]} : vector<16x96xf32> to vector<16x8xf32>
    %136 = arith.truncf %133 : vector<16x8xf32> to vector<16x8xbf16>
    %137 = arith.truncf %134 : vector<16x8xf32> to vector<16x8xbf16>
    %cst_59 = arith.constant dense<0.000000e+00> : vector<16x16xf32>
    %138 = tpu.matmul %136, %137, %cst_59 {dimension_numbers = #tpu.dot_dimension_numbers<[1], [1], [0], [0], [0, 0, 1, 0], [], []>} : vector<16x8xbf16>, vector<16x8xbf16>, vector<16x16xf32> -> vector<16x16xf32>
    %cst_60 = arith.constant 0.353553385 : f32
    %139 = vector.broadcast %cst_60 : f32 to vector<16x16xf32>
    %140 = arith.mulf %138, %139 : vector<16x16xf32>
    %c9_i32_61 = arith.constant 9 : i32
    %141 = vector.broadcast %c9_i32_61 : i32 to vector<16x16xi32>
    %142 = arith.cmpi slt, %1, %141 : vector<16x16xi32>
    %cst_62 = arith.constant -1.000000e+30 : f32
    %143 = vector.broadcast %cst_62 : f32 to vector<16x16xf32>
    %144 = arith.select %142, %140, %143 : vector<16x16xi1>, vector<16x16xf32>
    %cst_63 = arith.constant dense<0xFF800000> : vector<16xf32>
    %145 = vector.multi_reduction <maximumf>, %144, %cst_63 [1] : vector<16x16xf32> to vector<16xf32>
    %146 = vector.shape_cast %145 : vector<16xf32> to vector<16x1xf32>
    %147 = vector.broadcast %146 : vector<16x1xf32> to vector<16x16xf32>
    %148 = arith.subf %144, %147 : vector<16x16xf32>
    %149 = math.exp %148 : vector<16x16xf32>
    %cst_64 = arith.constant dense<0.000000e+00> : vector<16xf32>
    %150 = vector.multi_reduction <add>, %149, %cst_64 [1] : vector<16x16xf32> to vector<16xf32>
    %151 = vector.shape_cast %150 : vector<16xf32> to vector<16x1xf32>
    %152 = tpu.reciprocal %151 {approx = true} : vector<16x1xf32> -> vector<16x1xf32>
    %153 = vector.broadcast %152 : vector<16x1xf32> to vector<16x16xf32>
    %154 = arith.mulf %149, %153 : vector<16x16xf32>
    %155 = arith.truncf %154 : vector<16x16xf32> to vector<16x16xbf16>
    %156 = arith.truncf %135 : vector<16x8xf32> to vector<16x8xbf16>
    %cst_65 = arith.constant dense<0.000000e+00> : vector<16x8xf32>
    %157 = tpu.matmul %155, %156, %cst_65 {dimension_numbers = #tpu.dot_dimension_numbers<[1], [0], [0], [1], [0, 0, 1, 1], [], []>} : vector<16x16xbf16>, vector<16x8xbf16>, vector<16x8xf32> -> vector<16x8xf32>
    %158 = vector.extract_strided_slice %82 {offsets = [0, 24], sizes = [16, 8], strides = [1, 1]} : vector<16x96xf32> to vector<16x8xf32>
    %159 = vector.extract_strided_slice %82 {offsets = [0, 56], sizes = [16, 8], strides = [1, 1]} : vector<16x96xf32> to vector<16x8xf32>
    %160 = vector.extract_strided_slice %82 {offsets = [0, 88], sizes = [16, 8], strides = [1, 1]} : vector<16x96xf32> to vector<16x8xf32>
    %161 = arith.truncf %158 : vector<16x8xf32> to vector<16x8xbf16>
    %162 = arith.truncf %159 : vector<16x8xf32> to vector<16x8xbf16>
    %cst_66 = arith.constant dense<0.000000e+00> : vector<16x16xf32>
    %163 = tpu.matmul %161, %162, %cst_66 {dimension_numbers = #tpu.dot_dimension_numbers<[1], [1], [0], [0], [0, 0, 1, 0], [], []>} : vector<16x8xbf16>, vector<16x8xbf16>, vector<16x16xf32> -> vector<16x16xf32>
    %cst_67 = arith.constant 0.353553385 : f32
    %164 = vector.broadcast %cst_67 : f32 to vector<16x16xf32>
    %165 = arith.mulf %163, %164 : vector<16x16xf32>
    %c9_i32_68 = arith.constant 9 : i32
    %166 = vector.broadcast %c9_i32_68 : i32 to vector<16x16xi32>
    %167 = arith.cmpi slt, %1, %166 : vector<16x16xi32>
    %cst_69 = arith.constant -1.000000e+30 : f32
    %168 = vector.broadcast %cst_69 : f32 to vector<16x16xf32>
    %169 = arith.select %167, %165, %168 : vector<16x16xi1>, vector<16x16xf32>
    %cst_70 = arith.constant dense<0xFF800000> : vector<16xf32>
    %170 = vector.multi_reduction <maximumf>, %169, %cst_70 [1] : vector<16x16xf32> to vector<16xf32>
    %171 = vector.shape_cast %170 : vector<16xf32> to vector<16x1xf32>
    %172 = vector.broadcast %171 : vector<16x1xf32> to vector<16x16xf32>
    %173 = arith.subf %169, %172 : vector<16x16xf32>
    %174 = math.exp %173 : vector<16x16xf32>
    %cst_71 = arith.constant dense<0.000000e+00> : vector<16xf32>
    %175 = vector.multi_reduction <add>, %174, %cst_71 [1] : vector<16x16xf32> to vector<16xf32>
    %176 = vector.shape_cast %175 : vector<16xf32> to vector<16x1xf32>
    %177 = tpu.reciprocal %176 {approx = true} : vector<16x1xf32> -> vector<16x1xf32>
    %178 = vector.broadcast %177 : vector<16x1xf32> to vector<16x16xf32>
    %179 = arith.mulf %174, %178 : vector<16x16xf32>
    %180 = arith.truncf %179 : vector<16x16xf32> to vector<16x16xbf16>
    %181 = arith.truncf %160 : vector<16x8xf32> to vector<16x8xbf16>
    %cst_72 = arith.constant dense<0.000000e+00> : vector<16x8xf32>
    %182 = tpu.matmul %180, %181, %cst_72 {dimension_numbers = #tpu.dot_dimension_numbers<[1], [0], [0], [1], [0, 0, 1, 1], [], []>} : vector<16x16xbf16>, vector<16x8xbf16>, vector<16x8xf32> -> vector<16x8xf32>
    %183 = tpu.concatenate %107, %132, %157, %182 in 1 : vector<16x8xf32>, vector<16x8xf32>, vector<16x8xf32>, vector<16x8xf32> -> vector<16x32xf32>
    %c0_73 = arith.constant 0 : index
    %c0_74 = arith.constant 0 : index
    %c0_75 = arith.constant 0 : index
    %184 = vector.load %arg14[%c0_73, %c0_74, %c0_75] : memref<3x32x32xbf16, #tpu.memory_space<vmem>>, vector<1x32x32xbf16>
    %185 = vector.shape_cast %184 : vector<1x32x32xbf16> to vector<32x32xbf16>
    %186 = arith.truncf %183 : vector<16x32xf32> to vector<16x32xbf16>
    %cst_76 = arith.constant dense<0.000000e+00> : vector<16x32xf32>
    %187 = tpu.matmul %186, %185, %cst_76 {dimension_numbers = #tpu.dot_dimension_numbers<[1], [0], [0], [1], [0, 0, 1, 1], [], []>} : vector<16x32xbf16>, vector<32x32xbf16>, vector<16x32xf32> -> vector<16x32xf32>
    %188 = arith.addf %44, %187 : vector<16x32xf32>
    %c0_77 = arith.constant 0 : index
    %c0_78 = arith.constant 0 : index
    %c0_79 = arith.constant 0 : index
    %189 = vector.load %arg15[%c0_77, %c0_78, %c0_79] : memref<3x1x32xf32, #tpu.memory_space<vmem>>, vector<1x1x32xf32>
    %190 = vector.shape_cast %189 : vector<1x1x32xf32> to vector<1x32xf32>
    %191 = vector.broadcast %190 : vector<1x32xf32> to vector<16x32xf32>
    %192 = arith.addf %188, %191 : vector<16x32xf32>
    %cst_80 = arith.constant dense<0.000000e+00> : vector<16xf32>
    %193 = vector.multi_reduction <add>, %192, %cst_80 [1] : vector<16x32xf32> to vector<16xf32>
    %194 = vector.shape_cast %193 : vector<16xf32> to vector<16x1xf32>
    %cst_81 = arith.constant 3.200000e+01 : f32
    %195 = vector.broadcast %cst_81 : f32 to vector<16x1xf32>
    %196 = arith.divf %194, %195 : vector<16x1xf32>
    %197 = arith.mulf %192, %192 : vector<16x32xf32>
    %cst_82 = arith.constant dense<0.000000e+00> : vector<16xf32>
    %198 = vector.multi_reduction <add>, %197, %cst_82 [1] : vector<16x32xf32> to vector<16xf32>
    %199 = vector.shape_cast %198 : vector<16xf32> to vector<16x1xf32>
    %cst_83 = arith.constant 3.200000e+01 : f32
    %200 = vector.broadcast %cst_83 : f32 to vector<16x1xf32>
    %201 = arith.divf %199, %200 : vector<16x1xf32>
    %202 = arith.mulf %196, %196 : vector<16x1xf32>
    %203 = arith.subf %201, %202 : vector<16x1xf32>
    %204 = vector.broadcast %196 : vector<16x1xf32> to vector<16x32xf32>
    %205 = arith.subf %192, %204 : vector<16x32xf32>
    %cst_84 = arith.constant 9.99999974E-6 : f32
    %206 = vector.broadcast %cst_84 : f32 to vector<16x1xf32>
    %207 = arith.addf %203, %206 : vector<16x1xf32>
    %208 = math.rsqrt %207 : vector<16x1xf32>
    %209 = vector.broadcast %208 : vector<16x1xf32> to vector<16x32xf32>
    %210 = arith.mulf %205, %209 : vector<16x32xf32>
    %211 = vector.broadcast %50 : vector<1x32xf32> to vector<16x32xf32>
    %212 = arith.mulf %210, %211 : vector<16x32xf32>
    %213 = vector.broadcast %52 : vector<1x32xf32> to vector<16x32xf32>
    %214 = arith.addf %212, %213 : vector<16x32xf32>
    %c0_85 = arith.constant 0 : index
    %c0_86 = arith.constant 0 : index
    %c0_87 = arith.constant 0 : index
    %215 = vector.load %arg16[%c0_85, %c0_86, %c0_87] : memref<3x32x128xbf16, #tpu.memory_space<vmem>>, vector<1x32x128xbf16>
    %216 = vector.shape_cast %215 : vector<1x32x128xbf16> to vector<32x128xbf16>
    %217 = arith.truncf %214 : vector<16x32xf32> to vector<16x32xbf16>
    %cst_88 = arith.constant dense<0.000000e+00> : vector<16x128xf32>
    %218 = tpu.matmul %217, %216, %cst_88 {dimension_numbers = #tpu.dot_dimension_numbers<[1], [0], [0], [1], [0, 0, 1, 1], [], []>} : vector<16x32xbf16>, vector<32x128xbf16>, vector<16x128xf32> -> vector<16x128xf32>
    %c0_89 = arith.constant 0 : index
    %c0_90 = arith.constant 0 : index
    %c0_91 = arith.constant 0 : index
    %219 = vector.load %arg17[%c0_89, %c0_90, %c0_91] : memref<3x1x128xf32, #tpu.memory_space<vmem>>, vector<1x1x128xf32>
    %220 = vector.shape_cast %219 : vector<1x1x128xf32> to vector<1x128xf32>
    %221 = vector.broadcast %220 : vector<1x128xf32> to vector<16x128xf32>
    %222 = arith.addf %218, %221 : vector<16x128xf32>
    %cst_92 = arith.constant 1.702000e+00 : f32
    %223 = vector.broadcast %cst_92 : f32 to vector<16x128xf32>
    %224 = arith.mulf %223, %222 : vector<16x128xf32>
    %225 = arith.negf %224 : vector<16x128xf32>
    %226 = math.exp %225 : vector<16x128xf32>
    %cst_93 = arith.constant 1.000000e+00 : f32
    %227 = vector.broadcast %cst_93 : f32 to vector<16x128xf32>
    %228 = arith.addf %227, %226 : vector<16x128xf32>
    %229 = arith.divf %227, %228 : vector<16x128xf32>
    %230 = arith.mulf %222, %229 : vector<16x128xf32>
    %c0_94 = arith.constant 0 : index
    %c0_95 = arith.constant 0 : index
    %c0_96 = arith.constant 0 : index
    %231 = vector.load %arg18[%c0_94, %c0_95, %c0_96] : memref<3x128x32xbf16, #tpu.memory_space<vmem>>, vector<1x128x32xbf16>
    %232 = vector.shape_cast %231 : vector<1x128x32xbf16> to vector<128x32xbf16>
    %233 = arith.truncf %230 : vector<16x128xf32> to vector<16x128xbf16>
    %cst_97 = arith.constant dense<0.000000e+00> : vector<16x32xf32>
    %234 = tpu.matmul %233, %232, %cst_97 {dimension_numbers = #tpu.dot_dimension_numbers<[1], [0], [0], [1], [0, 0, 1, 1], [], []>} : vector<16x128xbf16>, vector<128x32xbf16>, vector<16x32xf32> -> vector<16x32xf32>
    %235 = arith.addf %192, %234 : vector<16x32xf32>
    %c0_98 = arith.constant 0 : index
    %c0_99 = arith.constant 0 : index
    %c0_100 = arith.constant 0 : index
    %236 = vector.load %arg19[%c0_98, %c0_99, %c0_100] : memref<3x1x32xf32, #tpu.memory_space<vmem>>, vector<1x1x32xf32>
    %237 = vector.shape_cast %236 : vector<1x1x32xf32> to vector<1x32xf32>
    %238 = vector.broadcast %237 : vector<1x32xf32> to vector<16x32xf32>
    %239 = arith.addf %235, %238 : vector<16x32xf32>
    %c5_i32_101 = arith.constant 5 : i32
    %240 = vector.broadcast %c5_i32_101 : i32 to vector<16x32xi32>
    %241 = arith.cmpi slt, %0, %240 : vector<16x32xi32>
    %c1_102 = arith.constant 1 : index
    %c0_103 = arith.constant 0 : index
    %c0_104 = arith.constant 0 : index
    %242 = vector.load %arg10[%c1_102, %c0_103, %c0_104] : memref<2x16x32xf32, #tpu.memory_space<vmem>>, vector<1x16x32xf32>
    %243 = vector.shape_cast %242 : vector<1x16x32xf32> to vector<16x32xf32>
    %244 = arith.select %241, %239, %243 : vector<16x32xi1>, vector<16x32xf32>
    %c1_105 = arith.constant 1 : index
    %c0_106 = arith.constant 0 : index
    %c0_107 = arith.constant 0 : index
    %245 = vector.load %arg11[%c1_105, %c0_106, %c0_107] : memref<3x4x32xf32, #tpu.memory_space<vmem>>, vector<1x1x32xf32>
    %246 = vector.shape_cast %245 : vector<1x1x32xf32> to vector<1x32xf32>
    %c1_108 = arith.constant 1 : index
    %c1_109 = arith.constant 1 : index
    %c0_110 = arith.constant 0 : index
    %247 = vector.load %arg11[%c1_108, %c1_109, %c0_110] : memref<3x4x32xf32, #tpu.memory_space<vmem>>, vector<1x1x32xf32>
    %248 = vector.shape_cast %247 : vector<1x1x32xf32> to vector<1x32xf32>
    %c1_111 = arith.constant 1 : index
    %c2_112 = arith.constant 2 : index
    %c0_113 = arith.constant 0 : index
    %249 = vector.load %arg11[%c1_111, %c2_112, %c0_113] : memref<3x4x32xf32, #tpu.memory_space<vmem>>, vector<1x1x32xf32>
    %250 = vector.shape_cast %249 : vector<1x1x32xf32> to vector<1x32xf32>
    %c1_114 = arith.constant 1 : index
    %c3_115 = arith.constant 3 : index
    %c0_116 = arith.constant 0 : index
    %251 = vector.load %arg11[%c1_114, %c3_115, %c0_116] : memref<3x4x32xf32, #tpu.memory_space<vmem>>, vector<1x1x32xf32>
    %252 = vector.shape_cast %251 : vector<1x1x32xf32> to vector<1x32xf32>
    %cst_117 = arith.constant dense<0.000000e+00> : vector<16xf32>
    %253 = vector.multi_reduction <add>, %244, %cst_117 [1] : vector<16x32xf32> to vector<16xf32>
    %254 = vector.shape_cast %253 : vector<16xf32> to vector<16x1xf32>
    %cst_118 = arith.constant 3.200000e+01 : f32
    %255 = vector.broadcast %cst_118 : f32 to vector<16x1xf32>
    %256 = arith.divf %254, %255 : vector<16x1xf32>
    %257 = arith.mulf %244, %244 : vector<16x32xf32>
    %cst_119 = arith.constant dense<0.000000e+00> : vector<16xf32>
    %258 = vector.multi_reduction <add>, %257, %cst_119 [1] : vector<16x32xf32> to vector<16xf32>
    %259 = vector.shape_cast %258 : vector<16xf32> to vector<16x1xf32>
    %cst_120 = arith.constant 3.200000e+01 : f32
    %260 = vector.broadcast %cst_120 : f32 to vector<16x1xf32>
    %261 = arith.divf %259, %260 : vector<16x1xf32>
    %262 = arith.mulf %256, %256 : vector<16x1xf32>
    %263 = arith.subf %261, %262 : vector<16x1xf32>
    %264 = vector.broadcast %256 : vector<16x1xf32> to vector<16x32xf32>
    %265 = arith.subf %244, %264 : vector<16x32xf32>
    %cst_121 = arith.constant 9.99999974E-6 : f32
    %266 = vector.broadcast %cst_121 : f32 to vector<16x1xf32>
    %267 = arith.addf %263, %266 : vector<16x1xf32>
    %268 = math.rsqrt %267 : vector<16x1xf32>
    %269 = vector.broadcast %268 : vector<16x1xf32> to vector<16x32xf32>
    %270 = arith.mulf %265, %269 : vector<16x32xf32>
    %271 = vector.broadcast %246 : vector<1x32xf32> to vector<16x32xf32>
    %272 = arith.mulf %270, %271 : vector<16x32xf32>
    %273 = vector.broadcast %248 : vector<1x32xf32> to vector<16x32xf32>
    %274 = arith.addf %272, %273 : vector<16x32xf32>
    %c1_122 = arith.constant 1 : index
    %c0_123 = arith.constant 0 : index
    %c0_124 = arith.constant 0 : index
    %275 = vector.load %arg12[%c1_122, %c0_123, %c0_124] : memref<3x32x96xbf16, #tpu.memory_space<vmem>>, vector<1x32x96xbf16>
    %276 = vector.shape_cast %275 : vector<1x32x96xbf16> to vector<32x96xbf16>
    %277 = arith.truncf %274 : vector<16x32xf32> to vector<16x32xbf16>
    %cst_125 = arith.constant dense<0.000000e+00> : vector<16x96xf32>
    %278 = tpu.matmul %277, %276, %cst_125 {dimension_numbers = #tpu.dot_dimension_numbers<[1], [0], [0], [1], [0, 0, 1, 1], [], []>} : vector<16x32xbf16>, vector<32x96xbf16>, vector<16x96xf32> -> vector<16x96xf32>
    %c1_126 = arith.constant 1 : index
    %c0_127 = arith.constant 0 : index
    %c0_128 = arith.constant 0 : index
    %279 = vector.load %arg13[%c1_126, %c0_127, %c0_128] : memref<3x1x96xf32, #tpu.memory_space<vmem>>, vector<1x1x96xf32>
    %280 = vector.shape_cast %279 : vector<1x1x96xf32> to vector<1x96xf32>
    %281 = vector.broadcast %280 : vector<1x96xf32> to vector<16x96xf32>
    %282 = arith.addf %278, %281 : vector<16x96xf32>
    %283 = vector.extract_strided_slice %282 {offsets = [0, 0], sizes = [16, 8], strides = [1, 1]} : vector<16x96xf32> to vector<16x8xf32>
    %284 = vector.extract_strided_slice %282 {offsets = [0, 32], sizes = [16, 8], strides = [1, 1]} : vector<16x96xf32> to vector<16x8xf32>
    %285 = vector.extract_strided_slice %282 {offsets = [0, 64], sizes = [16, 8], strides = [1, 1]} : vector<16x96xf32> to vector<16x8xf32>
    %286 = arith.truncf %283 : vector<16x8xf32> to vector<16x8xbf16>
    %287 = arith.truncf %284 : vector<16x8xf32> to vector<16x8xbf16>
    %cst_129 = arith.constant dense<0.000000e+00> : vector<16x16xf32>
    %288 = tpu.matmul %286, %287, %cst_129 {dimension_numbers = #tpu.dot_dimension_numbers<[1], [1], [0], [0], [0, 0, 1, 0], [], []>} : vector<16x8xbf16>, vector<16x8xbf16>, vector<16x16xf32> -> vector<16x16xf32>
    %cst_130 = arith.constant 0.353553385 : f32
    %289 = vector.broadcast %cst_130 : f32 to vector<16x16xf32>
    %290 = arith.mulf %288, %289 : vector<16x16xf32>
    %c9_i32_131 = arith.constant 9 : i32
    %291 = vector.broadcast %c9_i32_131 : i32 to vector<16x16xi32>
    %292 = arith.cmpi slt, %1, %291 : vector<16x16xi32>
    %cst_132 = arith.constant -1.000000e+30 : f32
    %293 = vector.broadcast %cst_132 : f32 to vector<16x16xf32>
    %294 = arith.select %292, %290, %293 : vector<16x16xi1>, vector<16x16xf32>
    %cst_133 = arith.constant dense<0xFF800000> : vector<16xf32>
    %295 = vector.multi_reduction <maximumf>, %294, %cst_133 [1] : vector<16x16xf32> to vector<16xf32>
    %296 = vector.shape_cast %295 : vector<16xf32> to vector<16x1xf32>
    %297 = vector.broadcast %296 : vector<16x1xf32> to vector<16x16xf32>
    %298 = arith.subf %294, %297 : vector<16x16xf32>
    %299 = math.exp %298 : vector<16x16xf32>
    %cst_134 = arith.constant dense<0.000000e+00> : vector<16xf32>
    %300 = vector.multi_reduction <add>, %299, %cst_134 [1] : vector<16x16xf32> to vector<16xf32>
    %301 = vector.shape_cast %300 : vector<16xf32> to vector<16x1xf32>
    %302 = tpu.reciprocal %301 {approx = true} : vector<16x1xf32> -> vector<16x1xf32>
    %303 = vector.broadcast %302 : vector<16x1xf32> to vector<16x16xf32>
    %304 = arith.mulf %299, %303 : vector<16x16xf32>
    %305 = arith.truncf %304 : vector<16x16xf32> to vector<16x16xbf16>
    %306 = arith.truncf %285 : vector<16x8xf32> to vector<16x8xbf16>
    %cst_135 = arith.constant dense<0.000000e+00> : vector<16x8xf32>
    %307 = tpu.matmul %305, %306, %cst_135 {dimension_numbers = #tpu.dot_dimension_numbers<[1], [0], [0], [1], [0, 0, 1, 1], [], []>} : vector<16x16xbf16>, vector<16x8xbf16>, vector<16x8xf32> -> vector<16x8xf32>
    %308 = vector.extract_strided_slice %282 {offsets = [0, 8], sizes = [16, 8], strides = [1, 1]} : vector<16x96xf32> to vector<16x8xf32>
    %309 = vector.extract_strided_slice %282 {offsets = [0, 40], sizes = [16, 8], strides = [1, 1]} : vector<16x96xf32> to vector<16x8xf32>
    %310 = vector.extract_strided_slice %282 {offsets = [0, 72], sizes = [16, 8], strides = [1, 1]} : vector<16x96xf32> to vector<16x8xf32>
    %311 = arith.truncf %308 : vector<16x8xf32> to vector<16x8xbf16>
    %312 = arith.truncf %309 : vector<16x8xf32> to vector<16x8xbf16>
    %cst_136 = arith.constant dense<0.000000e+00> : vector<16x16xf32>
    %313 = tpu.matmul %311, %312, %cst_136 {dimension_numbers = #tpu.dot_dimension_numbers<[1], [1], [0], [0], [0, 0, 1, 0], [], []>} : vector<16x8xbf16>, vector<16x8xbf16>, vector<16x16xf32> -> vector<16x16xf32>
    %cst_137 = arith.constant 0.353553385 : f32
    %314 = vector.broadcast %cst_137 : f32 to vector<16x16xf32>
    %315 = arith.mulf %313, %314 : vector<16x16xf32>
    %c9_i32_138 = arith.constant 9 : i32
    %316 = vector.broadcast %c9_i32_138 : i32 to vector<16x16xi32>
    %317 = arith.cmpi slt, %1, %316 : vector<16x16xi32>
    %cst_139 = arith.constant -1.000000e+30 : f32
    %318 = vector.broadcast %cst_139 : f32 to vector<16x16xf32>
    %319 = arith.select %317, %315, %318 : vector<16x16xi1>, vector<16x16xf32>
    %cst_140 = arith.constant dense<0xFF800000> : vector<16xf32>
    %320 = vector.multi_reduction <maximumf>, %319, %cst_140 [1] : vector<16x16xf32> to vector<16xf32>
    %321 = vector.shape_cast %320 : vector<16xf32> to vector<16x1xf32>
    %322 = vector.broadcast %321 : vector<16x1xf32> to vector<16x16xf32>
    %323 = arith.subf %319, %322 : vector<16x16xf32>
    %324 = math.exp %323 : vector<16x16xf32>
    %cst_141 = arith.constant dense<0.000000e+00> : vector<16xf32>
    %325 = vector.multi_reduction <add>, %324, %cst_141 [1] : vector<16x16xf32> to vector<16xf32>
    %326 = vector.shape_cast %325 : vector<16xf32> to vector<16x1xf32>
    %327 = tpu.reciprocal %326 {approx = true} : vector<16x1xf32> -> vector<16x1xf32>
    %328 = vector.broadcast %327 : vector<16x1xf32> to vector<16x16xf32>
    %329 = arith.mulf %324, %328 : vector<16x16xf32>
    %330 = arith.truncf %329 : vector<16x16xf32> to vector<16x16xbf16>
    %331 = arith.truncf %310 : vector<16x8xf32> to vector<16x8xbf16>
    %cst_142 = arith.constant dense<0.000000e+00> : vector<16x8xf32>
    %332 = tpu.matmul %330, %331, %cst_142 {dimension_numbers = #tpu.dot_dimension_numbers<[1], [0], [0], [1], [0, 0, 1, 1], [], []>} : vector<16x16xbf16>, vector<16x8xbf16>, vector<16x8xf32> -> vector<16x8xf32>
    %333 = vector.extract_strided_slice %282 {offsets = [0, 16], sizes = [16, 8], strides = [1, 1]} : vector<16x96xf32> to vector<16x8xf32>
    %334 = vector.extract_strided_slice %282 {offsets = [0, 48], sizes = [16, 8], strides = [1, 1]} : vector<16x96xf32> to vector<16x8xf32>
    %335 = vector.extract_strided_slice %282 {offsets = [0, 80], sizes = [16, 8], strides = [1, 1]} : vector<16x96xf32> to vector<16x8xf32>
    %336 = arith.truncf %333 : vector<16x8xf32> to vector<16x8xbf16>
    %337 = arith.truncf %334 : vector<16x8xf32> to vector<16x8xbf16>
    %cst_143 = arith.constant dense<0.000000e+00> : vector<16x16xf32>
    %338 = tpu.matmul %336, %337, %cst_143 {dimension_numbers = #tpu.dot_dimension_numbers<[1], [1], [0], [0], [0, 0, 1, 0], [], []>} : vector<16x8xbf16>, vector<16x8xbf16>, vector<16x16xf32> -> vector<16x16xf32>
    %cst_144 = arith.constant 0.353553385 : f32
    %339 = vector.broadcast %cst_144 : f32 to vector<16x16xf32>
    %340 = arith.mulf %338, %339 : vector<16x16xf32>
    %c9_i32_145 = arith.constant 9 : i32
    %341 = vector.broadcast %c9_i32_145 : i32 to vector<16x16xi32>
    %342 = arith.cmpi slt, %1, %341 : vector<16x16xi32>
    %cst_146 = arith.constant -1.000000e+30 : f32
    %343 = vector.broadcast %cst_146 : f32 to vector<16x16xf32>
    %344 = arith.select %342, %340, %343 : vector<16x16xi1>, vector<16x16xf32>
    %cst_147 = arith.constant dense<0xFF800000> : vector<16xf32>
    %345 = vector.multi_reduction <maximumf>, %344, %cst_147 [1] : vector<16x16xf32> to vector<16xf32>
    %346 = vector.shape_cast %345 : vector<16xf32> to vector<16x1xf32>
    %347 = vector.broadcast %346 : vector<16x1xf32> to vector<16x16xf32>
    %348 = arith.subf %344, %347 : vector<16x16xf32>
    %349 = math.exp %348 : vector<16x16xf32>
    %cst_148 = arith.constant dense<0.000000e+00> : vector<16xf32>
    %350 = vector.multi_reduction <add>, %349, %cst_148 [1] : vector<16x16xf32> to vector<16xf32>
    %351 = vector.shape_cast %350 : vector<16xf32> to vector<16x1xf32>
    %352 = tpu.reciprocal %351 {approx = true} : vector<16x1xf32> -> vector<16x1xf32>
    %353 = vector.broadcast %352 : vector<16x1xf32> to vector<16x16xf32>
    %354 = arith.mulf %349, %353 : vector<16x16xf32>
    %355 = arith.truncf %354 : vector<16x16xf32> to vector<16x16xbf16>
    %356 = arith.truncf %335 : vector<16x8xf32> to vector<16x8xbf16>
    %cst_149 = arith.constant dense<0.000000e+00> : vector<16x8xf32>
    %357 = tpu.matmul %355, %356, %cst_149 {dimension_numbers = #tpu.dot_dimension_numbers<[1], [0], [0], [1], [0, 0, 1, 1], [], []>} : vector<16x16xbf16>, vector<16x8xbf16>, vector<16x8xf32> -> vector<16x8xf32>
    %358 = vector.extract_strided_slice %282 {offsets = [0, 24], sizes = [16, 8], strides = [1, 1]} : vector<16x96xf32> to vector<16x8xf32>
    %359 = vector.extract_strided_slice %282 {offsets = [0, 56], sizes = [16, 8], strides = [1, 1]} : vector<16x96xf32> to vector<16x8xf32>
    %360 = vector.extract_strided_slice %282 {offsets = [0, 88], sizes = [16, 8], strides = [1, 1]} : vector<16x96xf32> to vector<16x8xf32>
    %361 = arith.truncf %358 : vector<16x8xf32> to vector<16x8xbf16>
    %362 = arith.truncf %359 : vector<16x8xf32> to vector<16x8xbf16>
    %cst_150 = arith.constant dense<0.000000e+00> : vector<16x16xf32>
    %363 = tpu.matmul %361, %362, %cst_150 {dimension_numbers = #tpu.dot_dimension_numbers<[1], [1], [0], [0], [0, 0, 1, 0], [], []>} : vector<16x8xbf16>, vector<16x8xbf16>, vector<16x16xf32> -> vector<16x16xf32>
    %cst_151 = arith.constant 0.353553385 : f32
    %364 = vector.broadcast %cst_151 : f32 to vector<16x16xf32>
    %365 = arith.mulf %363, %364 : vector<16x16xf32>
    %c9_i32_152 = arith.constant 9 : i32
    %366 = vector.broadcast %c9_i32_152 : i32 to vector<16x16xi32>
    %367 = arith.cmpi slt, %1, %366 : vector<16x16xi32>
    %cst_153 = arith.constant -1.000000e+30 : f32
    %368 = vector.broadcast %cst_153 : f32 to vector<16x16xf32>
    %369 = arith.select %367, %365, %368 : vector<16x16xi1>, vector<16x16xf32>
    %cst_154 = arith.constant dense<0xFF800000> : vector<16xf32>
    %370 = vector.multi_reduction <maximumf>, %369, %cst_154 [1] : vector<16x16xf32> to vector<16xf32>
    %371 = vector.shape_cast %370 : vector<16xf32> to vector<16x1xf32>
    %372 = vector.broadcast %371 : vector<16x1xf32> to vector<16x16xf32>
    %373 = arith.subf %369, %372 : vector<16x16xf32>
    %374 = math.exp %373 : vector<16x16xf32>
    %cst_155 = arith.constant dense<0.000000e+00> : vector<16xf32>
    %375 = vector.multi_reduction <add>, %374, %cst_155 [1] : vector<16x16xf32> to vector<16xf32>
    %376 = vector.shape_cast %375 : vector<16xf32> to vector<16x1xf32>
    %377 = tpu.reciprocal %376 {approx = true} : vector<16x1xf32> -> vector<16x1xf32>
    %378 = vector.broadcast %377 : vector<16x1xf32> to vector<16x16xf32>
    %379 = arith.mulf %374, %378 : vector<16x16xf32>
    %380 = arith.truncf %379 : vector<16x16xf32> to vector<16x16xbf16>
    %381 = arith.truncf %360 : vector<16x8xf32> to vector<16x8xbf16>
    %cst_156 = arith.constant dense<0.000000e+00> : vector<16x8xf32>
    %382 = tpu.matmul %380, %381, %cst_156 {dimension_numbers = #tpu.dot_dimension_numbers<[1], [0], [0], [1], [0, 0, 1, 1], [], []>} : vector<16x16xbf16>, vector<16x8xbf16>, vector<16x8xf32> -> vector<16x8xf32>
    %383 = tpu.concatenate %307, %332, %357, %382 in 1 : vector<16x8xf32>, vector<16x8xf32>, vector<16x8xf32>, vector<16x8xf32> -> vector<16x32xf32>
    %c1_157 = arith.constant 1 : index
    %c0_158 = arith.constant 0 : index
    %c0_159 = arith.constant 0 : index
    %384 = vector.load %arg14[%c1_157, %c0_158, %c0_159] : memref<3x32x32xbf16, #tpu.memory_space<vmem>>, vector<1x32x32xbf16>
    %385 = vector.shape_cast %384 : vector<1x32x32xbf16> to vector<32x32xbf16>
    %386 = arith.truncf %383 : vector<16x32xf32> to vector<16x32xbf16>
    %cst_160 = arith.constant dense<0.000000e+00> : vector<16x32xf32>
    %387 = tpu.matmul %386, %385, %cst_160 {dimension_numbers = #tpu.dot_dimension_numbers<[1], [0], [0], [1], [0, 0, 1, 1], [], []>} : vector<16x32xbf16>, vector<32x32xbf16>, vector<16x32xf32> -> vector<16x32xf32>
    %388 = arith.addf %244, %387 : vector<16x32xf32>
    %c1_161 = arith.constant 1 : index
    %c0_162 = arith.constant 0 : index
    %c0_163 = arith.constant 0 : index
    %389 = vector.load %arg15[%c1_161, %c0_162, %c0_163] : memref<3x1x32xf32, #tpu.memory_space<vmem>>, vector<1x1x32xf32>
    %390 = vector.shape_cast %389 : vector<1x1x32xf32> to vector<1x32xf32>
    %391 = vector.broadcast %390 : vector<1x32xf32> to vector<16x32xf32>
    %392 = arith.addf %388, %391 : vector<16x32xf32>
    %cst_164 = arith.constant dense<0.000000e+00> : vector<16xf32>
    %393 = vector.multi_reduction <add>, %392, %cst_164 [1] : vector<16x32xf32> to vector<16xf32>
    %394 = vector.shape_cast %393 : vector<16xf32> to vector<16x1xf32>
    %cst_165 = arith.constant 3.200000e+01 : f32
    %395 = vector.broadcast %cst_165 : f32 to vector<16x1xf32>
    %396 = arith.divf %394, %395 : vector<16x1xf32>
    %397 = arith.mulf %392, %392 : vector<16x32xf32>
    %cst_166 = arith.constant dense<0.000000e+00> : vector<16xf32>
    %398 = vector.multi_reduction <add>, %397, %cst_166 [1] : vector<16x32xf32> to vector<16xf32>
    %399 = vector.shape_cast %398 : vector<16xf32> to vector<16x1xf32>
    %cst_167 = arith.constant 3.200000e+01 : f32
    %400 = vector.broadcast %cst_167 : f32 to vector<16x1xf32>
    %401 = arith.divf %399, %400 : vector<16x1xf32>
    %402 = arith.mulf %396, %396 : vector<16x1xf32>
    %403 = arith.subf %401, %402 : vector<16x1xf32>
    %404 = vector.broadcast %396 : vector<16x1xf32> to vector<16x32xf32>
    %405 = arith.subf %392, %404 : vector<16x32xf32>
    %cst_168 = arith.constant 9.99999974E-6 : f32
    %406 = vector.broadcast %cst_168 : f32 to vector<16x1xf32>
    %407 = arith.addf %403, %406 : vector<16x1xf32>
    %408 = math.rsqrt %407 : vector<16x1xf32>
    %409 = vector.broadcast %408 : vector<16x1xf32> to vector<16x32xf32>
    %410 = arith.mulf %405, %409 : vector<16x32xf32>
    %411 = vector.broadcast %250 : vector<1x32xf32> to vector<16x32xf32>
    %412 = arith.mulf %410, %411 : vector<16x32xf32>
    %413 = vector.broadcast %252 : vector<1x32xf32> to vector<16x32xf32>
    %414 = arith.addf %412, %413 : vector<16x32xf32>
    %c1_169 = arith.constant 1 : index
    %c0_170 = arith.constant 0 : index
    %c0_171 = arith.constant 0 : index
    %415 = vector.load %arg16[%c1_169, %c0_170, %c0_171] : memref<3x32x128xbf16, #tpu.memory_space<vmem>>, vector<1x32x128xbf16>
    %416 = vector.shape_cast %415 : vector<1x32x128xbf16> to vector<32x128xbf16>
    %417 = arith.truncf %414 : vector<16x32xf32> to vector<16x32xbf16>
    %cst_172 = arith.constant dense<0.000000e+00> : vector<16x128xf32>
    %418 = tpu.matmul %417, %416, %cst_172 {dimension_numbers = #tpu.dot_dimension_numbers<[1], [0], [0], [1], [0, 0, 1, 1], [], []>} : vector<16x32xbf16>, vector<32x128xbf16>, vector<16x128xf32> -> vector<16x128xf32>
    %c1_173 = arith.constant 1 : index
    %c0_174 = arith.constant 0 : index
    %c0_175 = arith.constant 0 : index
    %419 = vector.load %arg17[%c1_173, %c0_174, %c0_175] : memref<3x1x128xf32, #tpu.memory_space<vmem>>, vector<1x1x128xf32>
    %420 = vector.shape_cast %419 : vector<1x1x128xf32> to vector<1x128xf32>
    %421 = vector.broadcast %420 : vector<1x128xf32> to vector<16x128xf32>
    %422 = arith.addf %418, %421 : vector<16x128xf32>
    %cst_176 = arith.constant 1.702000e+00 : f32
    %423 = vector.broadcast %cst_176 : f32 to vector<16x128xf32>
    %424 = arith.mulf %423, %422 : vector<16x128xf32>
    %425 = arith.negf %424 : vector<16x128xf32>
    %426 = math.exp %425 : vector<16x128xf32>
    %cst_177 = arith.constant 1.000000e+00 : f32
    %427 = vector.broadcast %cst_177 : f32 to vector<16x128xf32>
    %428 = arith.addf %427, %426 : vector<16x128xf32>
    %429 = arith.divf %427, %428 : vector<16x128xf32>
    %430 = arith.mulf %422, %429 : vector<16x128xf32>
    %c1_178 = arith.constant 1 : index
    %c0_179 = arith.constant 0 : index
    %c0_180 = arith.constant 0 : index
    %431 = vector.load %arg18[%c1_178, %c0_179, %c0_180] : memref<3x128x32xbf16, #tpu.memory_space<vmem>>, vector<1x128x32xbf16>
    %432 = vector.shape_cast %431 : vector<1x128x32xbf16> to vector<128x32xbf16>
    %433 = arith.truncf %430 : vector<16x128xf32> to vector<16x128xbf16>
    %cst_181 = arith.constant dense<0.000000e+00> : vector<16x32xf32>
    %434 = tpu.matmul %433, %432, %cst_181 {dimension_numbers = #tpu.dot_dimension_numbers<[1], [0], [0], [1], [0, 0, 1, 1], [], []>} : vector<16x128xbf16>, vector<128x32xbf16>, vector<16x32xf32> -> vector<16x32xf32>
    %435 = arith.addf %392, %434 : vector<16x32xf32>
    %c1_182 = arith.constant 1 : index
    %c0_183 = arith.constant 0 : index
    %c0_184 = arith.constant 0 : index
    %436 = vector.load %arg19[%c1_182, %c0_183, %c0_184] : memref<3x1x32xf32, #tpu.memory_space<vmem>>, vector<1x1x32xf32>
    %437 = vector.shape_cast %436 : vector<1x1x32xf32> to vector<1x32xf32>
    %438 = vector.broadcast %437 : vector<1x32xf32> to vector<16x32xf32>
    %439 = arith.addf %435, %438 : vector<16x32xf32>
    %c0_185 = arith.constant 0 : index
    %c0_186 = arith.constant 0 : index
    %c0_187 = arith.constant 0 : index
    %440 = vector.load %arg2[%c0_185, %c0_186, %c0_187] : memref<1x2x16xf32, #tpu.memory_space<vmem>>, vector<1x2x16xf32>
    %441 = vector.shape_cast %440 : vector<1x2x16xf32> to vector<2x16xf32>
    %c0_188 = arith.constant 0 : index
    %c0_189 = arith.constant 0 : index
    %c0_190 = arith.constant 0 : index
    %442 = vector.load %arg20[%c0_188, %c0_189, %c0_190] : memref<1x16x32xbf16, #tpu.memory_space<vmem>>, vector<1x16x32xbf16>
    %443 = vector.shape_cast %442 : vector<1x16x32xbf16> to vector<16x32xbf16>
    %444 = arith.truncf %441 : vector<2x16xf32> to vector<2x16xbf16>
    %cst_191 = arith.constant dense<0.000000e+00> : vector<2x32xf32>
    %445 = tpu.matmul %444, %443, %cst_191 {dimension_numbers = #tpu.dot_dimension_numbers<[1], [0], [0], [1], [0, 0, 1, 1], [], []>} : vector<2x16xbf16>, vector<16x32xbf16>, vector<2x32xf32> -> vector<2x32xf32>
    %c0_192 = arith.constant 0 : index
    %c0_193 = arith.constant 0 : index
    %c0_194 = arith.constant 0 : index
    %446 = vector.load %arg21[%c0_192, %c0_193, %c0_194] : memref<1x1x32xf32, #tpu.memory_space<vmem>>, vector<1x1x32xf32>
    %447 = vector.shape_cast %446 : vector<1x1x32xf32> to vector<1x32xf32>
    %448 = vector.broadcast %447 : vector<1x32xf32> to vector<2x32xf32>
    %449 = arith.addf %445, %448 : vector<2x32xf32>
    %c0_195 = arith.constant 0 : index
    %c0_196 = arith.constant 0 : index
    %450 = vector.load %arg5[%c0_195, %c0_196] : memref<16x2xbf16, #tpu.memory_space<vmem>>, vector<16x2xbf16>
    %451 = arith.truncf %449 : vector<2x32xf32> to vector<2x32xbf16>
    %cst_197 = arith.constant dense<0.000000e+00> : vector<16x32xf32>
    %452 = tpu.matmul %450, %451, %cst_197 {dimension_numbers = #tpu.dot_dimension_numbers<[1], [0], [0], [1], [0, 0, 1, 1], [], []>} : vector<16x2xbf16>, vector<2x32xbf16>, vector<16x32xf32> -> vector<16x32xf32>
    %c5_i32_198 = arith.constant 5 : i32
    %453 = vector.broadcast %c5_i32_198 : i32 to vector<16x32xi32>
    %454 = arith.cmpi slt, %0, %453 : vector<16x32xi32>
    %c0_199 = arith.constant 0 : index
    %c0_200 = arith.constant 0 : index
    %c0_201 = arith.constant 0 : index
    %455 = vector.load %arg27[%c0_199, %c0_200, %c0_201] : memref<1x16x32xf32, #tpu.memory_space<vmem>>, vector<1x16x32xf32>
    %456 = vector.shape_cast %455 : vector<1x16x32xf32> to vector<16x32xf32>
    %457 = arith.select %454, %439, %456 : vector<16x32xi1>, vector<16x32xf32>
    %c0_202 = arith.constant 0 : index
    %c0_203 = arith.constant 0 : index
    %c0_204 = arith.constant 0 : index
    %458 = vector.load %arg22[%c0_202, %c0_203, %c0_204] : memref<1x32x32xbf16, #tpu.memory_space<vmem>>, vector<1x32x32xbf16>
    %459 = vector.shape_cast %458 : vector<1x32x32xbf16> to vector<32x32xbf16>
    %460 = arith.truncf %452 : vector<16x32xf32> to vector<16x32xbf16>
    %cst_205 = arith.constant dense<0.000000e+00> : vector<16x32xf32>
    %461 = tpu.matmul %460, %459, %cst_205 {dimension_numbers = #tpu.dot_dimension_numbers<[1], [0], [0], [1], [0, 0, 1, 1], [], []>} : vector<16x32xbf16>, vector<32x32xbf16>, vector<16x32xf32> -> vector<16x32xf32>
    %c0_206 = arith.constant 0 : index
    %c0_207 = arith.constant 0 : index
    %c0_208 = arith.constant 0 : index
    %462 = vector.load %arg23[%c0_206, %c0_207, %c0_208] : memref<1x32x32xbf16, #tpu.memory_space<vmem>>, vector<1x32x32xbf16>
    %463 = vector.shape_cast %462 : vector<1x32x32xbf16> to vector<32x32xbf16>
    %464 = arith.truncf %457 : vector<16x32xf32> to vector<16x32xbf16>
    %cst_209 = arith.constant dense<0.000000e+00> : vector<16x32xf32>
    %465 = tpu.matmul %464, %463, %cst_209 {dimension_numbers = #tpu.dot_dimension_numbers<[1], [0], [0], [1], [0, 0, 1, 1], [], []>} : vector<16x32xbf16>, vector<32x32xbf16>, vector<16x32xf32> -> vector<16x32xf32>
    %466 = arith.truncf %461 : vector<16x32xf32> to vector<16x32xbf16>
    %467 = arith.truncf %465 : vector<16x32xf32> to vector<16x32xbf16>
    %cst_210 = arith.constant dense<0.000000e+00> : vector<16x16xf32>
    %468 = tpu.matmul %466, %467, %cst_210 {dimension_numbers = #tpu.dot_dimension_numbers<[1], [1], [0], [0], [0, 0, 1, 0], [], []>} : vector<16x32xbf16>, vector<16x32xbf16>, vector<16x16xf32> -> vector<16x16xf32>
    %cst_211 = arith.constant 0.176776692 : f32
    %469 = vector.broadcast %cst_211 : f32 to vector<16x16xf32>
    %470 = arith.mulf %468, %469 : vector<16x16xf32>
    %c15_i32 = arith.constant 15 : i32
    %471 = vector.broadcast %c15_i32 : i32 to vector<16x16xi32>
    %472 = arith.cmpi slt, %1, %471 : vector<16x16xi32>
    %cst_212 = arith.constant -1.000000e+30 : f32
    %473 = vector.broadcast %cst_212 : f32 to vector<16x16xf32>
    %474 = arith.select %472, %470, %473 : vector<16x16xi1>, vector<16x16xf32>
    %cst_213 = arith.constant dense<0xFF800000> : vector<16xf32>
    %475 = vector.multi_reduction <maximumf>, %474, %cst_213 [1] : vector<16x16xf32> to vector<16xf32>
    %476 = vector.shape_cast %475 : vector<16xf32> to vector<16x1xf32>
    %477 = vector.broadcast %476 : vector<16x1xf32> to vector<16x16xf32>
    %478 = arith.subf %474, %477 : vector<16x16xf32>
    %479 = math.exp %478 : vector<16x16xf32>
    %cst_214 = arith.constant dense<0.000000e+00> : vector<16xf32>
    %480 = vector.multi_reduction <add>, %479, %cst_214 [1] : vector<16x16xf32> to vector<16xf32>
    %481 = vector.shape_cast %480 : vector<16xf32> to vector<16x1xf32>
    %482 = tpu.reciprocal %481 {approx = true} : vector<16x1xf32> -> vector<16x1xf32>
    %483 = vector.broadcast %482 : vector<16x1xf32> to vector<16x16xf32>
    %484 = arith.mulf %479, %483 : vector<16x16xf32>
    %485 = arith.truncf %484 : vector<16x16xf32> to vector<16x16xbf16>
    %486 = arith.truncf %457 : vector<16x32xf32> to vector<16x32xbf16>
    %cst_215 = arith.constant dense<0.000000e+00> : vector<16x32xf32>
    %487 = tpu.matmul %485, %486, %cst_215 {dimension_numbers = #tpu.dot_dimension_numbers<[1], [0], [0], [1], [0, 0, 1, 1], [], []>} : vector<16x16xbf16>, vector<16x32xbf16>, vector<16x32xf32> -> vector<16x32xf32>
    %c0_216 = arith.constant 0 : index
    %c0_217 = arith.constant 0 : index
    %c0_218 = arith.constant 0 : index
    %488 = vector.load %arg24[%c0_216, %c0_217, %c0_218] : memref<1x32x32xbf16, #tpu.memory_space<vmem>>, vector<1x32x32xbf16>
    %489 = vector.shape_cast %488 : vector<1x32x32xbf16> to vector<32x32xbf16>
    %490 = arith.truncf %487 : vector<16x32xf32> to vector<16x32xbf16>
    %cst_219 = arith.constant dense<0.000000e+00> : vector<16x32xf32>
    %491 = tpu.matmul %490, %489, %cst_219 {dimension_numbers = #tpu.dot_dimension_numbers<[1], [0], [0], [1], [0, 0, 1, 1], [], []>} : vector<16x32xbf16>, vector<32x32xbf16>, vector<16x32xf32> -> vector<16x32xf32>
    %c0_220 = arith.constant 0 : index
    %c0_221 = arith.constant 0 : index
    %c0_222 = arith.constant 0 : index
    %492 = vector.load %arg25[%c0_220, %c0_221, %c0_222] : memref<1x4x32xf32, #tpu.memory_space<vmem>>, vector<1x1x32xf32>
    %493 = vector.shape_cast %492 : vector<1x1x32xf32> to vector<1x32xf32>
    %c0_223 = arith.constant 0 : index
    %c1_224 = arith.constant 1 : index
    %c0_225 = arith.constant 0 : index
    %494 = vector.load %arg25[%c0_223, %c1_224, %c0_225] : memref<1x4x32xf32, #tpu.memory_space<vmem>>, vector<1x1x32xf32>
    %495 = vector.shape_cast %494 : vector<1x1x32xf32> to vector<1x32xf32>
    %cst_226 = arith.constant dense<0.000000e+00> : vector<16xf32>
    %496 = vector.multi_reduction <add>, %491, %cst_226 [1] : vector<16x32xf32> to vector<16xf32>
    %497 = vector.shape_cast %496 : vector<16xf32> to vector<16x1xf32>
    %cst_227 = arith.constant 3.200000e+01 : f32
    %498 = vector.broadcast %cst_227 : f32 to vector<16x1xf32>
    %499 = arith.divf %497, %498 : vector<16x1xf32>
    %500 = arith.mulf %491, %491 : vector<16x32xf32>
    %cst_228 = arith.constant dense<0.000000e+00> : vector<16xf32>
    %501 = vector.multi_reduction <add>, %500, %cst_228 [1] : vector<16x32xf32> to vector<16xf32>
    %502 = vector.shape_cast %501 : vector<16xf32> to vector<16x1xf32>
    %cst_229 = arith.constant 3.200000e+01 : f32
    %503 = vector.broadcast %cst_229 : f32 to vector<16x1xf32>
    %504 = arith.divf %502, %503 : vector<16x1xf32>
    %505 = arith.mulf %499, %499 : vector<16x1xf32>
    %506 = arith.subf %504, %505 : vector<16x1xf32>
    %507 = vector.broadcast %499 : vector<16x1xf32> to vector<16x32xf32>
    %508 = arith.subf %491, %507 : vector<16x32xf32>
    %cst_230 = arith.constant 9.99999974E-6 : f32
    %509 = vector.broadcast %cst_230 : f32 to vector<16x1xf32>
    %510 = arith.addf %506, %509 : vector<16x1xf32>
    %511 = math.rsqrt %510 : vector<16x1xf32>
    %512 = vector.broadcast %511 : vector<16x1xf32> to vector<16x32xf32>
    %513 = arith.mulf %508, %512 : vector<16x32xf32>
    %514 = vector.broadcast %493 : vector<1x32xf32> to vector<16x32xf32>
    %515 = arith.mulf %513, %514 : vector<16x32xf32>
    %516 = vector.broadcast %495 : vector<1x32xf32> to vector<16x32xf32>
    %517 = arith.addf %515, %516 : vector<16x32xf32>
    %c0_231 = arith.constant 0 : index
    %c0_232 = arith.constant 0 : index
    %c0_233 = arith.constant 0 : index
    %518 = vector.load %arg26[%c0_231, %c0_232, %c0_233] : memref<1x32x5xbf16, #tpu.memory_space<vmem>>, vector<1x32x5xbf16>
    %519 = vector.shape_cast %518 : vector<1x32x5xbf16> to vector<32x5xbf16>
    %520 = arith.truncf %517 : vector<16x32xf32> to vector<16x32xbf16>
    %cst_234 = arith.constant dense<0.000000e+00> : vector<16x5xf32>
    %521 = tpu.matmul %520, %519, %cst_234 {dimension_numbers = #tpu.dot_dimension_numbers<[1], [0], [0], [1], [0, 0, 1, 1], [], []>} : vector<16x32xbf16>, vector<32x5xbf16>, vector<16x5xf32> -> vector<16x5xf32>
    %c0_235 = arith.constant 0 : index
    %c0_236 = arith.constant 0 : index
    %c32 = arith.constant 32 : index
    %522 = vector.load %arg28[%c0_235, %c0_236, %c32] : memref<1x16x128xf32, #tpu.memory_space<vmem>>, vector<1x16x5xf32>
    %523 = vector.shape_cast %522 : vector<1x16x5xf32> to vector<16x5xf32>
    %524 = vector.shape_cast %521 : vector<16x5xf32> to vector<1x16x5xf32>
    tpu.vector_store %arg28[%c0_235, %c0_236, %c32], %524 {strides = array<i32>} : memref<1x16x128xf32, #tpu.memory_space<vmem>>, vector<1x16x5xf32>,
    %525 = arith.addf %491, %452 : vector<16x32xf32>
    %c0_237 = arith.constant 0 : index
    %c2_238 = arith.constant 2 : index
    %c0_239 = arith.constant 0 : index
    %526 = vector.load %arg25[%c0_237, %c2_238, %c0_239] : memref<1x4x32xf32, #tpu.memory_space<vmem>>, vector<1x1x32xf32>
    %527 = vector.shape_cast %526 : vector<1x1x32xf32> to vector<1x32xf32>
    %c0_240 = arith.constant 0 : index
    %c3_241 = arith.constant 3 : index
    %c0_242 = arith.constant 0 : index
    %528 = vector.load %arg25[%c0_240, %c3_241, %c0_242] : memref<1x4x32xf32, #tpu.memory_space<vmem>>, vector<1x1x32xf32>
    %529 = vector.shape_cast %528 : vector<1x1x32xf32> to vector<1x32xf32>
    %cst_243 = arith.constant dense<0.000000e+00> : vector<16xf32>
    %530 = vector.multi_reduction <add>, %525, %cst_243 [1] : vector<16x32xf32> to vector<16xf32>
    %531 = vector.shape_cast %530 : vector<16xf32> to vector<16x1xf32>
    %cst_244 = arith.constant 3.200000e+01 : f32
    %532 = vector.broadcast %cst_244 : f32 to vector<16x1xf32>
    %533 = arith.divf %531, %532 : vector<16x1xf32>
    %534 = arith.mulf %525, %525 : vector<16x32xf32>
    %cst_245 = arith.constant dense<0.000000e+00> : vector<16xf32>
    %535 = vector.multi_reduction <add>, %534, %cst_245 [1] : vector<16x32xf32> to vector<16xf32>
    %536 = vector.shape_cast %535 : vector<16xf32> to vector<16x1xf32>
    %cst_246 = arith.constant 3.200000e+01 : f32
    %537 = vector.broadcast %cst_246 : f32 to vector<16x1xf32>
    %538 = arith.divf %536, %537 : vector<16x1xf32>
    %539 = arith.mulf %533, %533 : vector<16x1xf32>
    %540 = arith.subf %538, %539 : vector<16x1xf32>
    %541 = vector.broadcast %533 : vector<16x1xf32> to vector<16x32xf32>
    %542 = arith.subf %525, %541 : vector<16x32xf32>
    %cst_247 = arith.constant 9.99999974E-6 : f32
    %543 = vector.broadcast %cst_247 : f32 to vector<16x1xf32>
    %544 = arith.addf %540, %543 : vector<16x1xf32>
    %545 = math.rsqrt %544 : vector<16x1xf32>
    %546 = vector.broadcast %545 : vector<16x1xf32> to vector<16x32xf32>
    %547 = arith.mulf %542, %546 : vector<16x32xf32>
    %548 = vector.broadcast %527 : vector<1x32xf32> to vector<16x32xf32>
    %549 = arith.mulf %547, %548 : vector<16x32xf32>
    %550 = vector.broadcast %529 : vector<1x32xf32> to vector<16x32xf32>
    %551 = arith.addf %549, %550 : vector<16x32xf32>
    %c0_248 = arith.constant 0 : index
    %c0_249 = arith.constant 0 : index
    %c0_250 = arith.constant 0 : index
    %552 = vector.load %arg28[%c0_248, %c0_249, %c0_250] : memref<1x16x128xf32, #tpu.memory_space<vmem>>, vector<1x16x16xf32>
    %553 = vector.shape_cast %552 : vector<1x16x16xf32> to vector<16x16xf32>
    %554 = vector.shape_cast %484 : vector<16x16xf32> to vector<1x16x16xf32>
    tpu.vector_store %arg28[%c0_248, %c0_249, %c0_250], %554 {strides = array<i32>} : memref<1x16x128xf32, #tpu.memory_space<vmem>>, vector<1x16x16xf32>,
    %c5_i32_251 = arith.constant 5 : i32
    %555 = vector.broadcast %c5_i32_251 : i32 to vector<16x32xi32>
    %556 = arith.cmpi slt, %0, %555 : vector<16x32xi32>
    %557 = arith.select %556, %439, %551 : vector<16x32xi1>, vector<16x32xf32>
    %c2_252 = arith.constant 2 : index
    %c0_253 = arith.constant 0 : index
    %c0_254 = arith.constant 0 : index
    %558 = vector.load %arg11[%c2_252, %c0_253, %c0_254] : memref<3x4x32xf32, #tpu.memory_space<vmem>>, vector<1x1x32xf32>
    %559 = vector.shape_cast %558 : vector<1x1x32xf32> to vector<1x32xf32>
    %c2_255 = arith.constant 2 : index
    %c1_256 = arith.constant 1 : index
    %c0_257 = arith.constant 0 : index
    %560 = vector.load %arg11[%c2_255, %c1_256, %c0_257] : memref<3x4x32xf32, #tpu.memory_space<vmem>>, vector<1x1x32xf32>
    %561 = vector.shape_cast %560 : vector<1x1x32xf32> to vector<1x32xf32>
    %c2_258 = arith.constant 2 : index
    %c2_259 = arith.constant 2 : index
    %c0_260 = arith.constant 0 : index
    %562 = vector.load %arg11[%c2_258, %c2_259, %c0_260] : memref<3x4x32xf32, #tpu.memory_space<vmem>>, vector<1x1x32xf32>
    %563 = vector.shape_cast %562 : vector<1x1x32xf32> to vector<1x32xf32>
    %c2_261 = arith.constant 2 : index
    %c3_262 = arith.constant 3 : index
    %c0_263 = arith.constant 0 : index
    %564 = vector.load %arg11[%c2_261, %c3_262, %c0_263] : memref<3x4x32xf32, #tpu.memory_space<vmem>>, vector<1x1x32xf32>
    %565 = vector.shape_cast %564 : vector<1x1x32xf32> to vector<1x32xf32>
    %cst_264 = arith.constant dense<0.000000e+00> : vector<16xf32>
    %566 = vector.multi_reduction <add>, %557, %cst_264 [1] : vector<16x32xf32> to vector<16xf32>
    %567 = vector.shape_cast %566 : vector<16xf32> to vector<16x1xf32>
    %cst_265 = arith.constant 3.200000e+01 : f32
    %568 = vector.broadcast %cst_265 : f32 to vector<16x1xf32>
    %569 = arith.divf %567, %568 : vector<16x1xf32>
    %570 = arith.mulf %557, %557 : vector<16x32xf32>
    %cst_266 = arith.constant dense<0.000000e+00> : vector<16xf32>
    %571 = vector.multi_reduction <add>, %570, %cst_266 [1] : vector<16x32xf32> to vector<16xf32>
    %572 = vector.shape_cast %571 : vector<16xf32> to vector<16x1xf32>
    %cst_267 = arith.constant 3.200000e+01 : f32
    %573 = vector.broadcast %cst_267 : f32 to vector<16x1xf32>
    %574 = arith.divf %572, %573 : vector<16x1xf32>
    %575 = arith.mulf %569, %569 : vector<16x1xf32>
    %576 = arith.subf %574, %575 : vector<16x1xf32>
    %577 = vector.broadcast %569 : vector<16x1xf32> to vector<16x32xf32>
    %578 = arith.subf %557, %577 : vector<16x32xf32>
    %cst_268 = arith.constant 9.99999974E-6 : f32
    %579 = vector.broadcast %cst_268 : f32 to vector<16x1xf32>
    %580 = arith.addf %576, %579 : vector<16x1xf32>
    %581 = math.rsqrt %580 : vector<16x1xf32>
    %582 = vector.broadcast %581 : vector<16x1xf32> to vector<16x32xf32>
    %583 = arith.mulf %578, %582 : vector<16x32xf32>
    %584 = vector.broadcast %559 : vector<1x32xf32> to vector<16x32xf32>
    %585 = arith.mulf %583, %584 : vector<16x32xf32>
    %586 = vector.broadcast %561 : vector<1x32xf32> to vector<16x32xf32>
    %587 = arith.addf %585, %586 : vector<16x32xf32>
    %c2_269 = arith.constant 2 : index
    %c0_270 = arith.constant 0 : index
    %c0_271 = arith.constant 0 : index
    %588 = vector.load %arg12[%c2_269, %c0_270, %c0_271] : memref<3x32x96xbf16, #tpu.memory_space<vmem>>, vector<1x32x96xbf16>
    %589 = vector.shape_cast %588 : vector<1x32x96xbf16> to vector<32x96xbf16>
    %590 = arith.truncf %587 : vector<16x32xf32> to vector<16x32xbf16>
    %cst_272 = arith.constant dense<0.000000e+00> : vector<16x96xf32>
    %591 = tpu.matmul %590, %589, %cst_272 {dimension_numbers = #tpu.dot_dimension_numbers<[1], [0], [0], [1], [0, 0, 1, 1], [], []>} : vector<16x32xbf16>, vector<32x96xbf16>, vector<16x96xf32> -> vector<16x96xf32>
    %c2_273 = arith.constant 2 : index
    %c0_274 = arith.constant 0 : index
    %c0_275 = arith.constant 0 : index
    %592 = vector.load %arg13[%c2_273, %c0_274, %c0_275] : memref<3x1x96xf32, #tpu.memory_space<vmem>>, vector<1x1x96xf32>
    %593 = vector.shape_cast %592 : vector<1x1x96xf32> to vector<1x96xf32>
    %594 = vector.broadcast %593 : vector<1x96xf32> to vector<16x96xf32>
    %595 = arith.addf %591, %594 : vector<16x96xf32>
    %596 = vector.extract_strided_slice %595 {offsets = [0, 0], sizes = [16, 8], strides = [1, 1]} : vector<16x96xf32> to vector<16x8xf32>
    %597 = vector.extract_strided_slice %595 {offsets = [0, 32], sizes = [16, 8], strides = [1, 1]} : vector<16x96xf32> to vector<16x8xf32>
    %598 = vector.extract_strided_slice %595 {offsets = [0, 64], sizes = [16, 8], strides = [1, 1]} : vector<16x96xf32> to vector<16x8xf32>
    %599 = arith.truncf %596 : vector<16x8xf32> to vector<16x8xbf16>
    %600 = arith.truncf %597 : vector<16x8xf32> to vector<16x8xbf16>
    %cst_276 = arith.constant dense<0.000000e+00> : vector<16x16xf32>
    %601 = tpu.matmul %599, %600, %cst_276 {dimension_numbers = #tpu.dot_dimension_numbers<[1], [1], [0], [0], [0, 0, 1, 0], [], []>} : vector<16x8xbf16>, vector<16x8xbf16>, vector<16x16xf32> -> vector<16x16xf32>
    %cst_277 = arith.constant 0.353553385 : f32
    %602 = vector.broadcast %cst_277 : f32 to vector<16x16xf32>
    %603 = arith.mulf %601, %602 : vector<16x16xf32>
    %c7_i32 = arith.constant 7 : i32
    %604 = vector.broadcast %c7_i32 : i32 to vector<16x16xi32>
    %605 = arith.cmpi slt, %1, %604 : vector<16x16xi32>
    %cst_278 = arith.constant -1.000000e+30 : f32
    %606 = vector.broadcast %cst_278 : f32 to vector<16x16xf32>
    %607 = arith.select %605, %603, %606 : vector<16x16xi1>, vector<16x16xf32>
    %cst_279 = arith.constant dense<0xFF800000> : vector<16xf32>
    %608 = vector.multi_reduction <maximumf>, %607, %cst_279 [1] : vector<16x16xf32> to vector<16xf32>
    %609 = vector.shape_cast %608 : vector<16xf32> to vector<16x1xf32>
    %610 = vector.broadcast %609 : vector<16x1xf32> to vector<16x16xf32>
    %611 = arith.subf %607, %610 : vector<16x16xf32>
    %612 = math.exp %611 : vector<16x16xf32>
    %cst_280 = arith.constant dense<0.000000e+00> : vector<16xf32>
    %613 = vector.multi_reduction <add>, %612, %cst_280 [1] : vector<16x16xf32> to vector<16xf32>
    %614 = vector.shape_cast %613 : vector<16xf32> to vector<16x1xf32>
    %615 = tpu.reciprocal %614 {approx = true} : vector<16x1xf32> -> vector<16x1xf32>
    %616 = vector.broadcast %615 : vector<16x1xf32> to vector<16x16xf32>
    %617 = arith.mulf %612, %616 : vector<16x16xf32>
    %618 = arith.truncf %617 : vector<16x16xf32> to vector<16x16xbf16>
    %619 = arith.truncf %598 : vector<16x8xf32> to vector<16x8xbf16>
    %cst_281 = arith.constant dense<0.000000e+00> : vector<16x8xf32>
    %620 = tpu.matmul %618, %619, %cst_281 {dimension_numbers = #tpu.dot_dimension_numbers<[1], [0], [0], [1], [0, 0, 1, 1], [], []>} : vector<16x16xbf16>, vector<16x8xbf16>, vector<16x8xf32> -> vector<16x8xf32>
    %621 = vector.extract_strided_slice %595 {offsets = [0, 8], sizes = [16, 8], strides = [1, 1]} : vector<16x96xf32> to vector<16x8xf32>
    %622 = vector.extract_strided_slice %595 {offsets = [0, 40], sizes = [16, 8], strides = [1, 1]} : vector<16x96xf32> to vector<16x8xf32>
    %623 = vector.extract_strided_slice %595 {offsets = [0, 72], sizes = [16, 8], strides = [1, 1]} : vector<16x96xf32> to vector<16x8xf32>
    %624 = arith.truncf %621 : vector<16x8xf32> to vector<16x8xbf16>
    %625 = arith.truncf %622 : vector<16x8xf32> to vector<16x8xbf16>
    %cst_282 = arith.constant dense<0.000000e+00> : vector<16x16xf32>
    %626 = tpu.matmul %624, %625, %cst_282 {dimension_numbers = #tpu.dot_dimension_numbers<[1], [1], [0], [0], [0, 0, 1, 0], [], []>} : vector<16x8xbf16>, vector<16x8xbf16>, vector<16x16xf32> -> vector<16x16xf32>
    %cst_283 = arith.constant 0.353553385 : f32
    %627 = vector.broadcast %cst_283 : f32 to vector<16x16xf32>
    %628 = arith.mulf %626, %627 : vector<16x16xf32>
    %c7_i32_284 = arith.constant 7 : i32
    %629 = vector.broadcast %c7_i32_284 : i32 to vector<16x16xi32>
    %630 = arith.cmpi slt, %1, %629 : vector<16x16xi32>
    %cst_285 = arith.constant -1.000000e+30 : f32
    %631 = vector.broadcast %cst_285 : f32 to vector<16x16xf32>
    %632 = arith.select %630, %628, %631 : vector<16x16xi1>, vector<16x16xf32>
    %cst_286 = arith.constant dense<0xFF800000> : vector<16xf32>
    %633 = vector.multi_reduction <maximumf>, %632, %cst_286 [1] : vector<16x16xf32> to vector<16xf32>
    %634 = vector.shape_cast %633 : vector<16xf32> to vector<16x1xf32>
    %635 = vector.broadcast %634 : vector<16x1xf32> to vector<16x16xf32>
    %636 = arith.subf %632, %635 : vector<16x16xf32>
    %637 = math.exp %636 : vector<16x16xf32>
    %cst_287 = arith.constant dense<0.000000e+00> : vector<16xf32>
    %638 = vector.multi_reduction <add>, %637, %cst_287 [1] : vector<16x16xf32> to vector<16xf32>
    %639 = vector.shape_cast %638 : vector<16xf32> to vector<16x1xf32>
    %640 = tpu.reciprocal %639 {approx = true} : vector<16x1xf32> -> vector<16x1xf32>
    %641 = vector.broadcast %640 : vector<16x1xf32> to vector<16x16xf32>
    %642 = arith.mulf %637, %641 : vector<16x16xf32>
    %643 = arith.truncf %642 : vector<16x16xf32> to vector<16x16xbf16>
    %644 = arith.truncf %623 : vector<16x8xf32> to vector<16x8xbf16>
    %cst_288 = arith.constant dense<0.000000e+00> : vector<16x8xf32>
    %645 = tpu.matmul %643, %644, %cst_288 {dimension_numbers = #tpu.dot_dimension_numbers<[1], [0], [0], [1], [0, 0, 1, 1], [], []>} : vector<16x16xbf16>, vector<16x8xbf16>, vector<16x8xf32> -> vector<16x8xf32>
    %646 = vector.extract_strided_slice %595 {offsets = [0, 16], sizes = [16, 8], strides = [1, 1]} : vector<16x96xf32> to vector<16x8xf32>
    %647 = vector.extract_strided_slice %595 {offsets = [0, 48], sizes = [16, 8], strides = [1, 1]} : vector<16x96xf32> to vector<16x8xf32>
    %648 = vector.extract_strided_slice %595 {offsets = [0, 80], sizes = [16, 8], strides = [1, 1]} : vector<16x96xf32> to vector<16x8xf32>
    %649 = arith.truncf %646 : vector<16x8xf32> to vector<16x8xbf16>
    %650 = arith.truncf %647 : vector<16x8xf32> to vector<16x8xbf16>
    %cst_289 = arith.constant dense<0.000000e+00> : vector<16x16xf32>
    %651 = tpu.matmul %649, %650, %cst_289 {dimension_numbers = #tpu.dot_dimension_numbers<[1], [1], [0], [0], [0, 0, 1, 0], [], []>} : vector<16x8xbf16>, vector<16x8xbf16>, vector<16x16xf32> -> vector<16x16xf32>
    %cst_290 = arith.constant 0.353553385 : f32
    %652 = vector.broadcast %cst_290 : f32 to vector<16x16xf32>
    %653 = arith.mulf %651, %652 : vector<16x16xf32>
    %c7_i32_291 = arith.constant 7 : i32
    %654 = vector.broadcast %c7_i32_291 : i32 to vector<16x16xi32>
    %655 = arith.cmpi slt, %1, %654 : vector<16x16xi32>
    %cst_292 = arith.constant -1.000000e+30 : f32
    %656 = vector.broadcast %cst_292 : f32 to vector<16x16xf32>
    %657 = arith.select %655, %653, %656 : vector<16x16xi1>, vector<16x16xf32>
    %cst_293 = arith.constant dense<0xFF800000> : vector<16xf32>
    %658 = vector.multi_reduction <maximumf>, %657, %cst_293 [1] : vector<16x16xf32> to vector<16xf32>
    %659 = vector.shape_cast %658 : vector<16xf32> to vector<16x1xf32>
    %660 = vector.broadcast %659 : vector<16x1xf32> to vector<16x16xf32>
    %661 = arith.subf %657, %660 : vector<16x16xf32>
    %662 = math.exp %661 : vector<16x16xf32>
    %cst_294 = arith.constant dense<0.000000e+00> : vector<16xf32>
    %663 = vector.multi_reduction <add>, %662, %cst_294 [1] : vector<16x16xf32> to vector<16xf32>
    %664 = vector.shape_cast %663 : vector<16xf32> to vector<16x1xf32>
    %665 = tpu.reciprocal %664 {approx = true} : vector<16x1xf32> -> vector<16x1xf32>
    %666 = vector.broadcast %665 : vector<16x1xf32> to vector<16x16xf32>
    %667 = arith.mulf %662, %666 : vector<16x16xf32>
    %668 = arith.truncf %667 : vector<16x16xf32> to vector<16x16xbf16>
    %669 = arith.truncf %648 : vector<16x8xf32> to vector<16x8xbf16>
    %cst_295 = arith.constant dense<0.000000e+00> : vector<16x8xf32>
    %670 = tpu.matmul %668, %669, %cst_295 {dimension_numbers = #tpu.dot_dimension_numbers<[1], [0], [0], [1], [0, 0, 1, 1], [], []>} : vector<16x16xbf16>, vector<16x8xbf16>, vector<16x8xf32> -> vector<16x8xf32>
    %671 = vector.extract_strided_slice %595 {offsets = [0, 24], sizes = [16, 8], strides = [1, 1]} : vector<16x96xf32> to vector<16x8xf32>
    %672 = vector.extract_strided_slice %595 {offsets = [0, 56], sizes = [16, 8], strides = [1, 1]} : vector<16x96xf32> to vector<16x8xf32>
    %673 = vector.extract_strided_slice %595 {offsets = [0, 88], sizes = [16, 8], strides = [1, 1]} : vector<16x96xf32> to vector<16x8xf32>
    %674 = arith.truncf %671 : vector<16x8xf32> to vector<16x8xbf16>
    %675 = arith.truncf %672 : vector<16x8xf32> to vector<16x8xbf16>
    %cst_296 = arith.constant dense<0.000000e+00> : vector<16x16xf32>
    %676 = tpu.matmul %674, %675, %cst_296 {dimension_numbers = #tpu.dot_dimension_numbers<[1], [1], [0], [0], [0, 0, 1, 0], [], []>} : vector<16x8xbf16>, vector<16x8xbf16>, vector<16x16xf32> -> vector<16x16xf32>
    %cst_297 = arith.constant 0.353553385 : f32
    %677 = vector.broadcast %cst_297 : f32 to vector<16x16xf32>
    %678 = arith.mulf %676, %677 : vector<16x16xf32>
    %c7_i32_298 = arith.constant 7 : i32
    %679 = vector.broadcast %c7_i32_298 : i32 to vector<16x16xi32>
    %680 = arith.cmpi slt, %1, %679 : vector<16x16xi32>
    %cst_299 = arith.constant -1.000000e+30 : f32
    %681 = vector.broadcast %cst_299 : f32 to vector<16x16xf32>
    %682 = arith.select %680, %678, %681 : vector<16x16xi1>, vector<16x16xf32>
    %cst_300 = arith.constant dense<0xFF800000> : vector<16xf32>
    %683 = vector.multi_reduction <maximumf>, %682, %cst_300 [1] : vector<16x16xf32> to vector<16xf32>
    %684 = vector.shape_cast %683 : vector<16xf32> to vector<16x1xf32>
    %685 = vector.broadcast %684 : vector<16x1xf32> to vector<16x16xf32>
    %686 = arith.subf %682, %685 : vector<16x16xf32>
    %687 = math.exp %686 : vector<16x16xf32>
    %cst_301 = arith.constant dense<0.000000e+00> : vector<16xf32>
    %688 = vector.multi_reduction <add>, %687, %cst_301 [1] : vector<16x16xf32> to vector<16xf32>
    %689 = vector.shape_cast %688 : vector<16xf32> to vector<16x1xf32>
    %690 = tpu.reciprocal %689 {approx = true} : vector<16x1xf32> -> vector<16x1xf32>
    %691 = vector.broadcast %690 : vector<16x1xf32> to vector<16x16xf32>
    %692 = arith.mulf %687, %691 : vector<16x16xf32>
    %693 = arith.truncf %692 : vector<16x16xf32> to vector<16x16xbf16>
    %694 = arith.truncf %673 : vector<16x8xf32> to vector<16x8xbf16>
    %cst_302 = arith.constant dense<0.000000e+00> : vector<16x8xf32>
    %695 = tpu.matmul %693, %694, %cst_302 {dimension_numbers = #tpu.dot_dimension_numbers<[1], [0], [0], [1], [0, 0, 1, 1], [], []>} : vector<16x16xbf16>, vector<16x8xbf16>, vector<16x8xf32> -> vector<16x8xf32>
    %696 = tpu.concatenate %620, %645, %670, %695 in 1 : vector<16x8xf32>, vector<16x8xf32>, vector<16x8xf32>, vector<16x8xf32> -> vector<16x32xf32>
    %c2_303 = arith.constant 2 : index
    %c0_304 = arith.constant 0 : index
    %c0_305 = arith.constant 0 : index
    %697 = vector.load %arg14[%c2_303, %c0_304, %c0_305] : memref<3x32x32xbf16, #tpu.memory_space<vmem>>, vector<1x32x32xbf16>
    %698 = vector.shape_cast %697 : vector<1x32x32xbf16> to vector<32x32xbf16>
    %699 = arith.truncf %696 : vector<16x32xf32> to vector<16x32xbf16>
    %cst_306 = arith.constant dense<0.000000e+00> : vector<16x32xf32>
    %700 = tpu.matmul %699, %698, %cst_306 {dimension_numbers = #tpu.dot_dimension_numbers<[1], [0], [0], [1], [0, 0, 1, 1], [], []>} : vector<16x32xbf16>, vector<32x32xbf16>, vector<16x32xf32> -> vector<16x32xf32>
    %701 = arith.addf %557, %700 : vector<16x32xf32>
    %c2_307 = arith.constant 2 : index
    %c0_308 = arith.constant 0 : index
    %c0_309 = arith.constant 0 : index
    %702 = vector.load %arg15[%c2_307, %c0_308, %c0_309] : memref<3x1x32xf32, #tpu.memory_space<vmem>>, vector<1x1x32xf32>
    %703 = vector.shape_cast %702 : vector<1x1x32xf32> to vector<1x32xf32>
    %704 = vector.broadcast %703 : vector<1x32xf32> to vector<16x32xf32>
    %705 = arith.addf %701, %704 : vector<16x32xf32>
    %cst_310 = arith.constant dense<0.000000e+00> : vector<16xf32>
    %706 = vector.multi_reduction <add>, %705, %cst_310 [1] : vector<16x32xf32> to vector<16xf32>
    %707 = vector.shape_cast %706 : vector<16xf32> to vector<16x1xf32>
    %cst_311 = arith.constant 3.200000e+01 : f32
    %708 = vector.broadcast %cst_311 : f32 to vector<16x1xf32>
    %709 = arith.divf %707, %708 : vector<16x1xf32>
    %710 = arith.mulf %705, %705 : vector<16x32xf32>
    %cst_312 = arith.constant dense<0.000000e+00> : vector<16xf32>
    %711 = vector.multi_reduction <add>, %710, %cst_312 [1] : vector<16x32xf32> to vector<16xf32>
    %712 = vector.shape_cast %711 : vector<16xf32> to vector<16x1xf32>
    %cst_313 = arith.constant 3.200000e+01 : f32
    %713 = vector.broadcast %cst_313 : f32 to vector<16x1xf32>
    %714 = arith.divf %712, %713 : vector<16x1xf32>
    %715 = arith.mulf %709, %709 : vector<16x1xf32>
    %716 = arith.subf %714, %715 : vector<16x1xf32>
    %717 = vector.broadcast %709 : vector<16x1xf32> to vector<16x32xf32>
    %718 = arith.subf %705, %717 : vector<16x32xf32>
    %cst_314 = arith.constant 9.99999974E-6 : f32
    %719 = vector.broadcast %cst_314 : f32 to vector<16x1xf32>
    %720 = arith.addf %716, %719 : vector<16x1xf32>
    %721 = math.rsqrt %720 : vector<16x1xf32>
    %722 = vector.broadcast %721 : vector<16x1xf32> to vector<16x32xf32>
    %723 = arith.mulf %718, %722 : vector<16x32xf32>
    %724 = vector.broadcast %563 : vector<1x32xf32> to vector<16x32xf32>
    %725 = arith.mulf %723, %724 : vector<16x32xf32>
    %726 = vector.broadcast %565 : vector<1x32xf32> to vector<16x32xf32>
    %727 = arith.addf %725, %726 : vector<16x32xf32>
    %c2_315 = arith.constant 2 : index
    %c0_316 = arith.constant 0 : index
    %c0_317 = arith.constant 0 : index
    %728 = vector.load %arg16[%c2_315, %c0_316, %c0_317] : memref<3x32x128xbf16, #tpu.memory_space<vmem>>, vector<1x32x128xbf16>
    %729 = vector.shape_cast %728 : vector<1x32x128xbf16> to vector<32x128xbf16>
    %730 = arith.truncf %727 : vector<16x32xf32> to vector<16x32xbf16>
    %cst_318 = arith.constant dense<0.000000e+00> : vector<16x128xf32>
    %731 = tpu.matmul %730, %729, %cst_318 {dimension_numbers = #tpu.dot_dimension_numbers<[1], [0], [0], [1], [0, 0, 1, 1], [], []>} : vector<16x32xbf16>, vector<32x128xbf16>, vector<16x128xf32> -> vector<16x128xf32>
    %c2_319 = arith.constant 2 : index
    %c0_320 = arith.constant 0 : index
    %c0_321 = arith.constant 0 : index
    %732 = vector.load %arg17[%c2_319, %c0_320, %c0_321] : memref<3x1x128xf32, #tpu.memory_space<vmem>>, vector<1x1x128xf32>
    %733 = vector.shape_cast %732 : vector<1x1x128xf32> to vector<1x128xf32>
    %734 = vector.broadcast %733 : vector<1x128xf32> to vector<16x128xf32>
    %735 = arith.addf %731, %734 : vector<16x128xf32>
    %cst_322 = arith.constant 1.702000e+00 : f32
    %736 = vector.broadcast %cst_322 : f32 to vector<16x128xf32>
    %737 = arith.mulf %736, %735 : vector<16x128xf32>
    %738 = arith.negf %737 : vector<16x128xf32>
    %739 = math.exp %738 : vector<16x128xf32>
    %cst_323 = arith.constant 1.000000e+00 : f32
    %740 = vector.broadcast %cst_323 : f32 to vector<16x128xf32>
    %741 = arith.addf %740, %739 : vector<16x128xf32>
    %742 = arith.divf %740, %741 : vector<16x128xf32>
    %743 = arith.mulf %735, %742 : vector<16x128xf32>
    %c2_324 = arith.constant 2 : index
    %c0_325 = arith.constant 0 : index
    %c0_326 = arith.constant 0 : index
    %744 = vector.load %arg18[%c2_324, %c0_325, %c0_326] : memref<3x128x32xbf16, #tpu.memory_space<vmem>>, vector<1x128x32xbf16>
    %745 = vector.shape_cast %744 : vector<1x128x32xbf16> to vector<128x32xbf16>
    %746 = arith.truncf %743 : vector<16x128xf32> to vector<16x128xbf16>
    %cst_327 = arith.constant dense<0.000000e+00> : vector<16x32xf32>
    %747 = tpu.matmul %746, %745, %cst_327 {dimension_numbers = #tpu.dot_dimension_numbers<[1], [0], [0], [1], [0, 0, 1, 1], [], []>} : vector<16x128xbf16>, vector<128x32xbf16>, vector<16x32xf32> -> vector<16x32xf32>
    %748 = arith.addf %705, %747 : vector<16x32xf32>
    %c2_328 = arith.constant 2 : index
    %c0_329 = arith.constant 0 : index
    %c0_330 = arith.constant 0 : index
    %749 = vector.load %arg19[%c2_328, %c0_329, %c0_330] : memref<3x1x32xf32, #tpu.memory_space<vmem>>, vector<1x1x32xf32>
    %750 = vector.shape_cast %749 : vector<1x1x32xf32> to vector<1x32xf32>
    %751 = vector.broadcast %750 : vector<1x32xf32> to vector<16x32xf32>
    %752 = arith.addf %748, %751 : vector<16x32xf32>
    %753 = vector.extract_strided_slice %752 {offsets = [0, 0], sizes = [1, 32], strides = [1, 1]} : vector<16x32xf32> to vector<1x32xf32>
    %c0_331 = arith.constant 0 : index
    %c0_332 = arith.constant 0 : index
    %754 = vector.load %arg8[%c0_331, %c0_332] : memref<2x32xf32, #tpu.memory_space<vmem>>, vector<1x32xf32>
    %c1_333 = arith.constant 1 : index
    %c0_334 = arith.constant 0 : index
    %755 = vector.load %arg8[%c1_333, %c0_334] : memref<2x32xf32, #tpu.memory_space<vmem>>, vector<1x32xf32>
    %cst_335 = arith.constant dense<0.000000e+00> : vector<1xf32>
    %756 = vector.multi_reduction <add>, %753, %cst_335 [1] : vector<1x32xf32> to vector<1xf32>
    %757 = vector.shape_cast %756 : vector<1xf32> to vector<1x1xf32>
    %cst_336 = arith.constant 3.200000e+01 : f32
    %758 = vector.broadcast %cst_336 : f32 to vector<1x1xf32>
    %759 = arith.divf %757, %758 : vector<1x1xf32>
    %760 = arith.mulf %753, %753 : vector<1x32xf32>
    %cst_337 = arith.constant dense<0.000000e+00> : vector<1xf32>
    %761 = vector.multi_reduction <add>, %760, %cst_337 [1] : vector<1x32xf32> to vector<1xf32>
    %762 = vector.shape_cast %761 : vector<1xf32> to vector<1x1xf32>
    %cst_338 = arith.constant 3.200000e+01 : f32
    %763 = vector.broadcast %cst_338 : f32 to vector<1x1xf32>
    %764 = arith.divf %762, %763 : vector<1x1xf32>
    %765 = arith.mulf %759, %759 : vector<1x1xf32>
    %766 = arith.subf %764, %765 : vector<1x1xf32>
    %767 = vector.broadcast %759 : vector<1x1xf32> to vector<1x32xf32>
    %768 = arith.subf %753, %767 : vector<1x32xf32>
    %cst_339 = arith.constant 9.99999974E-6 : f32
    %769 = vector.broadcast %cst_339 : f32 to vector<1x1xf32>
    %770 = arith.addf %766, %769 : vector<1x1xf32>
    %771 = math.rsqrt %770 : vector<1x1xf32>
    %772 = vector.broadcast %771 : vector<1x1xf32> to vector<1x32xf32>
    %773 = arith.mulf %768, %772 : vector<1x32xf32>
    %774 = arith.mulf %773, %754 : vector<1x32xf32>
    %775 = arith.addf %774, %755 : vector<1x32xf32>
    %c0_340 = arith.constant 0 : index
    %c0_341 = arith.constant 0 : index
    %776 = vector.load %arg9[%c0_340, %c0_341] : memref<32x16xbf16, #tpu.memory_space<vmem>>, vector<32x16xbf16>
    %777 = arith.truncf %775 : vector<1x32xf32> to vector<1x32xbf16>
    %cst_342 = arith.constant dense<0.000000e+00> : vector<1x16xf32>
    %778 = tpu.matmul %777, %776, %cst_342 {dimension_numbers = #tpu.dot_dimension_numbers<[1], [0], [0], [1], [0, 0, 1, 1], [], []>} : vector<1x32xbf16>, vector<32x16xbf16>, vector<1x16xf32> -> vector<1x16xf32>
    %c0_343 = arith.constant 0 : index
    %c0_344 = arith.constant 0 : index
    %c16 = arith.constant 16 : index
    %779 = vector.load %arg28[%c0_343, %c0_344, %c16] : memref<1x16x128xf32, #tpu.memory_space<vmem>>, vector<1x1x16xf32>
    %780 = vector.shape_cast %779 : vector<1x1x16xf32> to vector<1x16xf32>
    %781 = vector.shape_cast %778 : vector<1x16xf32> to vector<1x1x16xf32>
    tpu.vector_store %arg28[%c0_343, %c0_344, %c16], %781 {strides = array<i32>} : memref<1x16x128xf32, #tpu.memory_space<vmem>>, vector<1x1x16xf32>,
    return
  }
  func.func @transform_0(%arg0: i32) -> (i32, i32, i32) {
    %c0_i32 = arith.constant 0 : i32
    %c0_i32_0 = arith.constant 0 : i32
    %c0_i32_1 = arith.constant 0 : i32
    return %arg0, %c0_i32, %c0_i32_0 : i32, i32, i32
  }
  func.func @transform_1(%arg0: i32) -> (i32, i32, i32) {
    %c0_i32 = arith.constant 0 : i32
    %c0_i32_0 = arith.constant 0 : i32
    %c0_i32_1 = arith.constant 0 : i32
    return %arg0, %c0_i32, %c0_i32_0 : i32, i32, i32
  }
  func.func @transform_2(%arg0: i32) -> (i32, i32) {
    %c0_i32 = arith.constant 0 : i32
    %c0_i32_0 = arith.constant 0 : i32
    %c0_i32_1 = arith.constant 0 : i32
    return %c0_i32, %c0_i32_0 : i32, i32
  }
  func.func @transform_3(%arg0: i32) -> (i32, i32) {
    %c0_i32 = arith.constant 0 : i32
    %c0_i32_0 = arith.constant 0 : i32
    %c0_i32_1 = arith.constant 0 : i32
    return %c0_i32, %c0_i32_0 : i32, i32
  }
  func.func @transform_4(%arg0: i32) -> (i32, i32) {
    %c0_i32 = arith.constant 0 : i32
    %c0_i32_0 = arith.constant 0 : i32
    %c0_i32_1 = arith.constant 0 : i32
    return %c0_i32, %c0_i32_0 : i32, i32
  }
  func.func @transform_5(%arg0: i32) -> (i32, i32) {
    %c0_i32 = arith.constant 0 : i32
    %c0_i32_0 = arith.constant 0 : i32
    %c0_i32_1 = arith.constant 0 : i32
    return %c0_i32, %c0_i32_0 : i32, i32
  }
  func.func @transform_6(%arg0: i32) -> (i32, i32) {
    %c0_i32 = arith.constant 0 : i32
    %c0_i32_0 = arith.constant 0 : i32
    %c0_i32_1 = arith.constant 0 : i32
    return %c0_i32, %c0_i32_0 : i32, i32
  }
  func.func @transform_7(%arg0: i32) -> (i32, i32) {
    %c0_i32 = arith.constant 0 : i32
    %c0_i32_0 = arith.constant 0 : i32
    %c0_i32_1 = arith.constant 0 : i32
    return %c0_i32, %c0_i32_0 : i32, i32
  }
  func.func @transform_8(%arg0: i32) -> (i32, i32) {
    %c0_i32 = arith.constant 0 : i32
    %c0_i32_0 = arith.constant 0 : i32
    %c0_i32_1 = arith.constant 0 : i32
    return %c0_i32, %c0_i32_0 : i32, i32
  }
  func.func @transform_9(%arg0: i32) -> (i32, i32, i32) {
    %c0_i32 = arith.constant 0 : i32
    %c0_i32_0 = arith.constant 0 : i32
    %c0_i32_1 = arith.constant 0 : i32
    %c0_i32_2 = arith.constant 0 : i32
    return %c0_i32, %c0_i32_0, %c0_i32_1 : i32, i32, i32
  }
  func.func @transform_10(%arg0: i32) -> (i32, i32, i32) {
    %c0_i32 = arith.constant 0 : i32
    %c0_i32_0 = arith.constant 0 : i32
    %c0_i32_1 = arith.constant 0 : i32
    %c0_i32_2 = arith.constant 0 : i32
    return %c0_i32, %c0_i32_0, %c0_i32_1 : i32, i32, i32
  }
  func.func @transform_11(%arg0: i32) -> (i32, i32, i32) {
    %c0_i32 = arith.constant 0 : i32
    %c0_i32_0 = arith.constant 0 : i32
    %c0_i32_1 = arith.constant 0 : i32
    %c0_i32_2 = arith.constant 0 : i32
    return %c0_i32, %c0_i32_0, %c0_i32_1 : i32, i32, i32
  }
  func.func @transform_12(%arg0: i32) -> (i32, i32, i32) {
    %c0_i32 = arith.constant 0 : i32
    %c0_i32_0 = arith.constant 0 : i32
    %c0_i32_1 = arith.constant 0 : i32
    %c0_i32_2 = arith.constant 0 : i32
    return %c0_i32, %c0_i32_0, %c0_i32_1 : i32, i32, i32
  }
  func.func @transform_13(%arg0: i32) -> (i32, i32, i32) {
    %c0_i32 = arith.constant 0 : i32
    %c0_i32_0 = arith.constant 0 : i32
    %c0_i32_1 = arith.constant 0 : i32
    %c0_i32_2 = arith.constant 0 : i32
    return %c0_i32, %c0_i32_0, %c0_i32_1 : i32, i32, i32
  }
  func.func @transform_14(%arg0: i32) -> (i32, i32, i32) {
    %c0_i32 = arith.constant 0 : i32
    %c0_i32_0 = arith.constant 0 : i32
    %c0_i32_1 = arith.constant 0 : i32
    %c0_i32_2 = arith.constant 0 : i32
    return %c0_i32, %c0_i32_0, %c0_i32_1 : i32, i32, i32
  }
  func.func @transform_15(%arg0: i32) -> (i32, i32, i32) {
    %c0_i32 = arith.constant 0 : i32
    %c0_i32_0 = arith.constant 0 : i32
    %c0_i32_1 = arith.constant 0 : i32
    %c0_i32_2 = arith.constant 0 : i32
    return %c0_i32, %c0_i32_0, %c0_i32_1 : i32, i32, i32
  }
  func.func @transform_16(%arg0: i32) -> (i32, i32, i32) {
    %c0_i32 = arith.constant 0 : i32
    %c0_i32_0 = arith.constant 0 : i32
    %c0_i32_1 = arith.constant 0 : i32
    %c0_i32_2 = arith.constant 0 : i32
    return %c0_i32, %c0_i32_0, %c0_i32_1 : i32, i32, i32
  }
  func.func @transform_17(%arg0: i32) -> (i32, i32, i32) {
    %c0_i32 = arith.constant 0 : i32
    %c0_i32_0 = arith.constant 0 : i32
    %c0_i32_1 = arith.constant 0 : i32
    %c0_i32_2 = arith.constant 0 : i32
    return %c0_i32, %c0_i32_0, %c0_i32_1 : i32, i32, i32
  }
  func.func @transform_18(%arg0: i32) -> (i32, i32, i32) {
    %c0_i32 = arith.constant 0 : i32
    %c0_i32_0 = arith.constant 0 : i32
    %c0_i32_1 = arith.constant 0 : i32
    %c0_i32_2 = arith.constant 0 : i32
    return %c0_i32, %c0_i32_0, %c0_i32_1 : i32, i32, i32
  }
  func.func @transform_19(%arg0: i32) -> (i32, i32, i32) {
    %c0_i32 = arith.constant 0 : i32
    %c0_i32_0 = arith.constant 0 : i32
    %c0_i32_1 = arith.constant 0 : i32
    %c0_i32_2 = arith.constant 0 : i32
    return %c0_i32, %c0_i32_0, %c0_i32_1 : i32, i32, i32
  }
  func.func @transform_20(%arg0: i32) -> (i32, i32, i32) {
    %c0_i32 = arith.constant 0 : i32
    %c0_i32_0 = arith.constant 0 : i32
    %c0_i32_1 = arith.constant 0 : i32
    %c0_i32_2 = arith.constant 0 : i32
    return %c0_i32, %c0_i32_0, %c0_i32_1 : i32, i32, i32
  }
  func.func @transform_21(%arg0: i32) -> (i32, i32, i32) {
    %c0_i32 = arith.constant 0 : i32
    %c0_i32_0 = arith.constant 0 : i32
    %c0_i32_1 = arith.constant 0 : i32
    %c0_i32_2 = arith.constant 0 : i32
    return %c0_i32, %c0_i32_0, %c0_i32_1 : i32, i32, i32
  }
  func.func @transform_22(%arg0: i32) -> (i32, i32, i32) {
    %c0_i32 = arith.constant 0 : i32
    %c0_i32_0 = arith.constant 0 : i32
    %c0_i32_1 = arith.constant 0 : i32
    %c0_i32_2 = arith.constant 0 : i32
    return %c0_i32, %c0_i32_0, %c0_i32_1 : i32, i32, i32
  }
  func.func @transform_23(%arg0: i32) -> (i32, i32, i32) {
    %c0_i32 = arith.constant 0 : i32
    %c0_i32_0 = arith.constant 0 : i32
    %c0_i32_1 = arith.constant 0 : i32
    %c0_i32_2 = arith.constant 0 : i32
    return %c0_i32, %c0_i32_0, %c0_i32_1 : i32, i32, i32
  }
  func.func @transform_24(%arg0: i32) -> (i32, i32, i32) {
    %c0_i32 = arith.constant 0 : i32
    %c0_i32_0 = arith.constant 0 : i32
    %c0_i32_1 = arith.constant 0 : i32
    %c0_i32_2 = arith.constant 0 : i32
    return %c0_i32, %c0_i32_0, %c0_i32_1 : i32, i32, i32
  }
  func.func @transform_25(%arg0: i32) -> (i32, i32, i32) {
    %c0_i32 = arith.constant 0 : i32
    %c0_i32_0 = arith.constant 0 : i32
    %c0_i32_1 = arith.constant 0 : i32
    %c0_i32_2 = arith.constant 0 : i32
    return %c0_i32, %c0_i32_0, %c0_i32_1 : i32, i32, i32
  }
  func.func @transform_26(%arg0: i32) -> (i32, i32, i32) {
    %c0_i32 = arith.constant 0 : i32
    %c0_i32_0 = arith.constant 0 : i32
    %c0_i32_1 = arith.constant 0 : i32
    %c0_i32_2 = arith.constant 0 : i32
    return %c0_i32, %c0_i32_0, %c0_i32_1 : i32, i32, i32
  }
  func.func @transform_27(%arg0: i32) -> (i32, i32, i32) {
    %c0_i32 = arith.constant 0 : i32
    %c0_i32_0 = arith.constant 0 : i32
    %c0_i32_1 = arith.constant 0 : i32
    return %arg0, %c0_i32, %c0_i32_0 : i32, i32, i32
  }
}

</mosaic_0001>

<bundles_post_ra>
// kernel: image_encoder_vptd.1
= control target key start
LH: loop header
LB: loop body
LE: loop exit
PB: predicated region body
PF: predicated region fallthrough
CT: control target
= control target key end

     0   :  { %s6889_s0 = inlined_call_operand.vmem [shape: f32[2,4,192], index: 0, kind: input, shape index: {}]   ;;  %s6890_s1 = inlined_call_operand.vmem [shape: f32[2,2,16], index: 1, kind: input, shape index: {}]   ;;  %s6891_s2 = inlined_call_operand.vmem [shape: bf16[192,32], index: 2, kind: input, shape index: {}]   ;;  %s6892_s3 = inlined_call_operand.vmem [shape: bf16[16,4], index: 3, kind: input, shape index: {}]   ;;  %s6893_s4 = inlined_call_operand.vmem [shape: bf16[16,2], index: 4, kind: input, shape index: {}]   ;;  %s6894_s5 = inlined_call_operand.vmem [shape: f32[16,32], index: 5, kind: input, shape index: {}]   ;;  %s6895_s6 = inlined_call_operand.vmem [shape: f32[2,32], index: 6, kind: input, shape index: {}]   ;;  %s6896_s7 = inlined_call_operand.vmem [shape: f32[2,32], index: 7, kind: input, shape index: {}]   ;;  %s6897_s8 = inlined_call_operand.vmem [shape: bf16[32,16], index: 8, kind: input, shape index: {}]   ;;  %s6898_s9 = inlined_call_operand.vmem [shape: f32[2,16,32], index: 9, kind: input, shape index: {}]   ;;  %s6899_s10 = inlined_call_operand.vmem [shape: f32[3,4,32], index: 10, kind: input, shape index: {}]   ;;  %s6900_s11 = inlined_call_operand.vmem [shape: bf16[3,32,96], index: 11, kind: input, shape index: {}]   ;;  %s6901_s12 = inlined_call_operand.vmem [shape: f32[3,1,96], index: 12, kind: input, shape index: {}]   ;;  %s6902_s13 = inlined_call_operand.vmem [shape: bf16[3,32,32], index: 13, kind: input, shape index: {}]   ;;  %s6903_s14 = inlined_call_operand.vmem [shape: f32[3,1,32], index: 14, kind: input, shape index: {}]   ;;  %s6904_s15 = inlined_call_operand.vmem [shape: bf16[3,32,128], index: 15, kind: input, shape index: {}]   ;;  %s6905_s16 = inlined_call_operand.vmem [shape: f32[3,1,128], index: 16, kind: input, shape index: {}]   ;;  %s6906_s17 = inlined_call_operand.vmem [shape: bf16[3,128,32], index: 17, kind: input, shape index: {}]   ;;  %s6907_s18 = inlined_call_operand.vmem [shape: f32[3,1,32], index: 18, kind: input, shape index: {}]   ;;  %s6908_s19 = inlined_call_operand.vmem [shape: bf16[1,16,32], index: 19, kind: input, shape index: {}]   ;;  %s6909_s20 = inlined_call_operand.vmem [shape: f32[1,1,32], index: 20, kind: input, shape index: {}]   ;;  %s6910_s21 = inlined_call_operand.vmem [shape: bf16[1,32,32], index: 21, kind: input, shape index: {}]   ;;  %s6911_s22 = inlined_call_operand.vmem [shape: bf16[1,32,32], index: 22, kind: input, shape index: {}]   ;;  %s6912_s23 = inlined_call_operand.vmem [shape: bf16[1,32,32], index: 23, kind: input, shape index: {}]   ;;  %s6913_s24 = inlined_call_operand.vmem [shape: f32[1,4,32], index: 24, kind: input, shape index: {}]   ;;  %s6914_s25 = inlined_call_operand.vmem [shape: bf16[1,32,5], index: 25, kind: input, shape index: {}]   ;;  %s6915_s26 = inlined_call_operand.vmem [shape: f32[1,16,32], index: 26, kind: input, shape index: {}]   ;;  %s6916_s27 = inlined_call_operand.vmem [shape: f32[2,16,128], index: 27, kind: output, shape index: {}]  }
   0x1   :  { %6958 = sst [smem:[#allocation3_spill]] %s6889_s0 }
   0x2   :  { %6959 = sst [smem:[#allocation4_spill]] %s6890_s1 }
   0x3   :  { %6960 = sst [smem:[#allocation5_spill]] %s6891_s2 }
   0x4   :  { %6961 = sst [smem:[#allocation6_spill]] %s6892_s3 }
   0x5   :  { %6962 = sst [smem:[#allocation7_spill]] %s6893_s4 }
   0x6   :  { %6963 = sst [smem:[#allocation8_spill]] %s6894_s5 }
   0x7   :  { %6964 = sst [smem:[#allocation9_spill]] %s6895_s6 }
   0x8   :  { %6965 = sst [smem:[#allocation10_spill]] %s6896_s7  ;;  %s5927_s7 = smov 0  }
   0x9   :  { %6966 = sst [smem:[#allocation11_spill]] %s6897_s8 }
   0xa   :  { %6967 = sst [smem:[#allocation12_spill]] %s6898_s9 }
   0xb   :  { %6968 = sst [smem:[#allocation13_spill]] %s6899_s10 }
   0xc   :  { %6969 = sst [smem:[#allocation14_spill]] %s6900_s11 }
   0xd   :  { %6970 = sst [smem:[#allocation15_spill]] %s6902_s13 }
   0xe   :  { %6971 = sst [smem:[#allocation16_spill]] %s6903_s14 }
   0xf   :  { %6972 = sst [smem:[#allocation17_spill]] %s6904_s15 }
  0x10   :  { %6973 = sst [smem:[#allocation18_spill]] %s6916_s27 }
  0x11 LB: > { %6974 = sst [smem:[#allocation2_spill]] %s5767_s7  ;;  %s4747_s4 = sadd.s32 4294967295, %s5767_s7   ;;  %s5767_s7 = sphi %s5927_s7, %s37_s7  }
  0x12   : > { %p4751_p0 = scmp.ge.s32.totalorder %s5767_s7, 1  ;;  %p746_p1 = scmp.lt.s32.totalorder %s5767_s7, 3 }
  0x14   : > { %p747_p2 = pnand %p4751_p0, %p746_p1 }
  0x15   : > { %s6975_s9 = sld [smem:[#allocation5_spill]] (!%p747_p2)  ;;  %v5769_v1 = vmov (!%p747_p2), 0   ;;  %p822_p3 = scmp.lt.s32.totalorder (!%p747_p2), %s4747_s4, 1  ;;  %vm946_vm0 = vcmask (!%p747_p2), 523264   ;;  %v5770_v17 = vmov (!%p747_p2), 0.0   ;;  %vm5771_vm1 = vmmov (!%p747_p2), 0  }
  0x16   : > { %750 = sbr.rel (%p747_p2) target bundleno = 10987 (0x2aeb), region = 128  ;;  %950 = vmatprep.subr.bf16.mxu0 (!%p747_p2), %v5769_v1  ;;  %s6976_s11 = sld [smem:[#allocation3_spill]] (!%p747_p2)  ;;  %5110 = vmatprep.subr.bf16.mxu1 (!%p747_p2), %v5770_v17  ;;  %vm1004_vm2 = vcmask (!%p747_p2), 1041408   ;;  %vm1000_vm3 = vcmask (!%p747_p2), 31744   ;;  %vm1051_vm4 = vcmask (!%p747_p2), 261120   ;;  %v837_v43 = vlaneseq (!%p747_p2) }
  0x17   : > { %s6977_s27 = sld [smem:[#allocation18_spill]] (!%p747_p2)  ;;  %5112 = vmatprep.mubr.msk.bf16.mxu1 (!%p747_p2), %vm5771_vm1, %v5770_v17  ;;  %s6978_s3 = sld [smem:[#allocation6_spill]] (!%p747_p2)  ;;  %vm1219_vm6 = vcmask (!%p747_p2), 64512   ;;  %vm1272_vm8 = vcmask (!%p747_p2), 130048   ;;  %vm1746_vm9 = vcmask (!%p747_p2), 195584   ;;  %vm3109_vm10 = vcmask (!%p747_p2), 1040384  }
  0x18   : > { %s6979_s5 = sld [smem:[#allocation8_spill]] (!%p747_p2)  ;;  %v6012_v46 = vshrl.u32 (!%p747_p2), %v837_v43, 7  ;;  %s6982_s0 = sld [smem:[#allocation14_spill]] (!%p747_p2)  ;;  %vm3105_vm11 = vcmask (!%p747_p2), 15360   ;;  %vm4596_vm14 = vcmask (!%p747_p2), 253952   ;;  %vm3575_vm15 = vcmask (!%p747_p2), 302336  }
  0x19   : > { %s6983_s8 = sld [smem:[#allocation13_spill]] (!%p747_p2)  ;;  %s6950_s1 = smov (!%p747_p2), 96  }
  0x1a   : > { %vm1095_vm5 = vcmp.lt.s32.totalorder (!%p747_p2), %v6012_v46, 5  ;;  %s6926_s30 = smov (!%p747_p2), 64   ;;  %s6924_s28 = smov (!%p747_p2), 112  }
  0x1b   : > { %v5527_v0 = vld [vmem:[%s6975_s9] sm:$0xff] (!%p747_p2)   ;;  %v5528_v2 = vld [vmem:[%s6975_s9 + $0x8] sm:$0xff] (!%p747_p2)   ;;  %v5529_v3 = vld [vmem:[%s6975_s9 + $0x10] sm:$0xff] (!%p747_p2)   ;;  %s6984_s13 = sld [smem:[#allocation15_spill]] (!%p747_p2)  ;;  %s6985_s14 = sld [smem:[#allocation16_spill]] (!%p747_p2) }
  0x1c   : > { %951 = vmatpush1.bf16.msra.mxu0 (!%p747_p2), %v5527_v0  ;;  %v5530_v4 = vld [vmem:[%s6975_s9 + $0x18] sm:$0xff] (!%p747_p2)   ;;  %v5531_v5 = vld [vmem:[%s6975_s9 + $0x20] sm:$0xff] (!%p747_p2)   ;;  %v5532_v9 = vld [vmem:[%s6975_s9 + $0x28] sm:$0xff] (!%p747_p2)   ;;  %s6986_s15 = sld [smem:[#allocation17_spill]] (!%p747_p2)  ;;  %s7000_s7 = smov (!%p747_p2), 24  }
  0x1d   : > { %952 = vmatprep.subr.bf16.mxu0 %v5769_v1  ;;  %s7018_s4 = smov (!%p822_p3, %s4747_s4), 1  ;;  %v5533_v10 = vld [vmem:[%s6975_s9 + $0x30] sm:$0xff]   ;;  %v5534_v11 = vld [vmem:[%s6975_s9 + $0x38] sm:$0xff]   ;;  %v5535_v12 = vld [vmem:[%s6975_s9 + $0x40] sm:$0xff]  }
  0x1e   : > { %s4981_s29 = sshll.u32 %s7018_s4, 3  ;;  %v5536_v13 = vld [vmem:[%s6975_s9 + $0x48] sm:$0xff]   ;;  %v5537_v14 = vld [vmem:[%s6975_s9 + $0x50] sm:$0xff]   ;;  %v5538_v15 = vld [vmem:[%s6975_s9 + $0x58] sm:$0xff]   ;;  %s4982_s10 = sshll.u32 %s7018_s4, 4 }
  0x1f   : > { %s826_s2 = scalar_lea.vmem %s6976_s11, %s4981_s29  ;;  %s5981_s6 = scalar_lea.vmem %s6977_s27, %s4982_s10  ;;  %v5540_v24 = vld [vmem:[%s6978_s3] sm:$0xff]   ;;  %v5542_v60 = vld [vmem:[%s6982_s0 + $0x8] sm:$0xff]  }
  0x20   : > { %953 = vmatpush1.bf16.msra.mxu0 %v5528_v2  ;;  %v844_v6 = vld [vmem:[%s826_s2] sm:$0xff]  ;;  %842 = vst [vmem:[%s5981_s6] sm:$0xff] %v5770_v17  ;;  %843 = vst [vmem:[%s5981_s6 + $0x8] sm:$0xff] %v5770_v17  ;;  %s6980_s10 = sld [smem:[#allocation12_spill]]  ;;  %s6981_s11 = sld [smem:[#allocation9_spill]] }
  0x21   : > { %954 = vmatprep.subr.bf16.mxu0 %v5769_v1  ;;  %v870_v7 = vcombine.high %v844_v6, %v844_v6  ;;  %v872_v16 = vpack.c.bf16 %v844_v6, %v844_v6  ;;  %v993_v25 = vld [vmem:[%s6979_s5] sm:$0xff]  ;;  %s6948_s2 = smov 88   ;;  %s6942_s3 = smov 120  }
  0x22   : > { %v5541_v59 = vld [vmem:[%s6982_s0] sm:$0xff]   ;;  %s6940_s5 = smov 80   ;;  %s6932_s29 = smov 72  }
  0x23   : > { %v873_v8 = vpack.c.bf16 %v870_v7, %v870_v7  ;;  %s6994_s9 = smov 104   ;;  %s6997_s27 = smov 40  }
  0x24   : > { %955 = vmatpush1.bf16.msra.mxu0 %v5529_v3 }
  0x25   : > { %956 = vmatprep.subr.bf16.mxu0 %v5769_v1  ;;  %4769 = vmatprep.mubr.msk.bf16.mxu0 %vm946_vm0, %v873_v8  ;;  %vm4678_vm0 = vcmask 254080  }
  0x26   : > { %v6007_v34 = vld [vmem:[%s6980_s10 + $0x8] sm:$0xff]  ;;  %v4772_v47 = vld [vmem:[%s6981_s11] ss:$0 sm:$0xff]  ;;  %v4773_v49 = vld [vmem:[%s6981_s11 + $0x1] ss:$0 sm:$0xff]  ;;  %s6996_s11 = smov 56  }
  0x27   : > { %v1108_v35 = vsel %vm1051_vm4, %v6007_v34, 0.0  ;;  %v1097_v51 = vld [vmem:[%s6980_s10] sm:$0xff]  ;;  %v1114_v53 = vmul.f32 %v6007_v34, %v6007_v34 }
  0x28   : > { %957 = vmatpush1.bf16.msra.mxu0 %v5530_v4  ;;  %1109 = vadd.xlane.f32.xlu1 %v1108_v35 }
  0x29   : > { %958 = vmatprep.subr.bf16.mxu0 %v5769_v1  ;;  %v1118_v58 = vsel %vm1051_vm4, %v1114_v53, 0.0 }
  0x2c   : > { %959 = vmatpush1.bf16.msra.mxu0 %v5531_v5 }
  0x2d   : > { %960 = vmatprep.subr.bf16.mxu0 %v5769_v1 }
  0x30   : > { %961 = vmatpush1.bf16.msra.mxu0 %v5532_v9 }
  0x31   : > { %962 = vmatprep.subr.bf16.mxu0 %v5769_v1 }
  0x34   : > { %963 = vmatpush1.bf16.msra.mxu0 %v5533_v10 }
  0x35   : > { %964 = vmatprep.subr.bf16.mxu0 %v5769_v1 }
  0x38   : > { %965 = vmatpush1.bf16.msra.mxu0 %v5534_v11 }
  0x39   : > { %966 = vmatprep.subr.bf16.mxu0 %v5769_v1 }
  0x3c   : > { %967 = vmatpush1.bf16.msra.mxu0 %v5535_v12 }
  0x3d   : > { %968 = vmatprep.subr.bf16.mxu0 %v5769_v1 }
  0x40   : > { %969 = vmatpush1.bf16.msra.mxu0 %v5536_v13  ;;  %v4774_v13 = vld [vmem:[%s6983_s8] ss:$0 sm:$0xff] }
  0x41   : > { %970 = vmatprep.subr.bf16.mxu0 %v5769_v1 }
  0x44   : > { %971 = vmatpush1.bf16.msra.mxu0 %v5537_v14 }
  0x45   : > { %972 = vmatprep.subr.bf16.mxu0 %v5769_v1 }
  0x48   : > { %973 = vmatpush1.bf16.msra.mxu0 %v5538_v15 }
  0x49   : > { %5116 = vmatprep.subr.bf16.mxu0 %v5770_v17 }
  0x4b   : > { %983 = vmatmul.mubr.bf16.vlgmr.msra.gmra.mrb[0].mxu0 %v872_v16 }
  0x4c   : > { %5120 = vmatprep.mubr.msk.bf16.mxu0 %vm5771_vm1, %v5770_v17  ;;  %5117 = vmatpush3.bf16.msra.mxu0 %v5541_v59 }
  0x4d   : > { %5118 = vmatprep.subr.bf16.mxu0 %v5770_v17 }
  0x50   : > { %5119 = vmatpush3.bf16.msra.mxu0 %v5542_v60 }
  0x51   : > { %5154 = vmatprep.subr.bf16.mxu0 %v5770_v17 }
  0xb5   : > { %v1110_v61 = vpop.xlane.xlu1 %1109 }
  0xb6   : > { %v1112_v63 = vmul.f32 0.03125, %v1110_v61 }
  0xb8   : > { %v1124_v5 = vmul.f32 %v1112_v63, %v1112_v63  ;;  %v1128_v14 = vsub.f32 %v6007_v34, %v1112_v63 }
 0x11e   : > { %v984_v18 = vpop.f32.mrb[0].mxu0 }
 0x11f   : > { %v992_v19 = vpack.c.bf16 %v984_v18, %v984_v18  ;;  %v986_v20 = vpop.f32.mrb[1].mxu0 }
 0x120   : > { %v987_v21 = vpop.f32.mrb[2].mxu0  ;;  %v4775_v20 = vld [vmem:[%s6983_s8 + $0x1] ss:$0 sm:$0xff] }
 0x121   : > { %v988_v22 = vpop.f32.mrb[3].mxu0  ;;  %v1006_v23 = vsel %vm1004_vm2, %v992_v19, 0 }
 0x122   : > { %5111 = vmatpush3.bf16.msra.mxu1 %v1006_v23 }
 0x123   : > { %5124 = vmatprep.subr.bf16.mxu1 %v5770_v17 }
 0x125   : > { %5113 = vmatmul.mubr.msk.bf16.vlgmr.msra.gmra.mrb[0].mxu1 %vm1000_vm3, %v5540_v24 }
 0x126   : > { %5126 = vmatprep.mubr.msk.bf16.mxu1 %vm5771_vm1, %v5770_v17 }
 0x1f8   : > { %v1042_v26 = vpop.f32.mrb[0].mxu1 }
 0x1f9   : > { %v1043_v27 = vadd.f32 %v1042_v26, %v993_v25  ;;  %v5114_v28 = vpop.f32.mrb[1].mxu1  ;;  %v4776_v25 = vld [vmem:[%s6901_s12] ss:$0 sm:$0xff] }
 0x1fa   : > { %v1045_v29 = vpop.f32.mrb[2].mxu1 }
 0x1fb   : > { %v5115_v30 = vpop.f32.mrb[3].mxu1  ;;  %v1052_v31 = vsel %vm1051_vm4, %v1043_v27, 0.0  ;;  %v1061_v32 = vmul.f32 %v1043_v27, %v1043_v27 }
 0x1fc   : > { %1053 = vadd.xlane.f32.xlu0 %v1052_v31 }
 0x1fd   : > { %v1063_v33 = vsel %vm1051_vm4, %v1061_v32, 0.0 }
 0x200   : > { %1064 = vadd.xlane.f32.xlu0 %v1063_v33 }
 0x289   : > { %v1054_v36 = vpop.xlane.xlu0 %1053 }
 0x28a   : > { %v1059_v37 = vmul.f32 0.03125, %v1054_v36  ;;  %v6073_v36 = vand.u32 127, %v837_v43 }
 0x28c   : > { %v1071_v39 = vmul.f32 %v1059_v37, %v1059_v37  ;;  %v1075_v44 = vsub.f32 %v1043_v27, %v1059_v37  ;;  %vm1269_vm7 = vcmp.lt.s32.totalorder %v6073_v36, 9  ;;  %vm3331_vm12 = vcmp.lt.s32.totalorder %v6073_v36, 15 }
 0x28d   : > { %v1065_v38 = vpop.xlane.xlu0 %1064  ;;  %vm3798_vm13 = vcmp.lt.s32.totalorder %v6073_v36, 7 }
 0x28e   : > { %v1069_v40 = vmul.f32 0.03125, %v1065_v38 }
 0x290   : > { %v1073_v41 = vsub.f32 %v1069_v40, %v1071_v39 }
 0x292   : > { %v1077_v42 = vadd.f32 1e-05, %v1073_v41 }
 0x294   : > { %5595 = vrsqrt.f32 %v1077_v42 }
 0x29e   : > { %v5596_v45 = vpop.eup %5595 }
 0x29f   : > { %v1081_v48 = vmul.f32 %v5596_v45, %v1075_v44 }
 0x2a1   : > { %v1087_v50 = vmul.f32 %v4772_v47, %v1081_v48 }
 0x2a3   : > { %v1093_v52 = vadd.f32 %v4773_v49, %v1087_v50 }
 0x2a5   : > { %v6028_v54 = vsel %vm1095_vm5, %v1093_v52, %v1097_v51 }
 0x2a6   : > { %v1105_v55 = vsel %vm1051_vm4, %v6028_v54, 0.0  ;;  %v1113_v56 = vmul.f32 %v6028_v54, %v6028_v54 }
 0x2a7   : > { %1106 = vadd.xlane.f32.xlu1 %v1105_v55 }
 0x2a8   : > { %v1115_v57 = vsel %vm1051_vm4, %v1113_v56, 0.0 }
 0x2a9   : > { %1116 = vadd.xlane.f32.xlu0 %v1115_v57 }
 0x2ab   : > { %1119 = vadd.xlane.f32.xlu1 %v1118_v58 }
 0x334   : > { %v1107_v62 = vpop.xlane.xlu1 %1106 }
 0x335   : > { %v1111_v0 = vmul.f32 0.03125, %v1107_v62 }
 0x336   : > { %v1117_v1 = vpop.xlane.xlu0 %1116 }
 0x337   : > { %v1123_v2 = vmul.f32 %v1111_v0, %v1111_v0  ;;  %v1121_v3 = vmul.f32 0.03125, %v1117_v1  ;;  %v1127_v11 = vsub.f32 %v6028_v54, %v1111_v0 }
 0x338   : > { %v1120_v4 = vpop.xlane.xlu1 %1119 }
 0x339   : > { %v1125_v6 = vsub.f32 %v1121_v3, %v1123_v2  ;;  %v1122_v7 = vmul.f32 0.03125, %v1120_v4 }
 0x33b   : > { %v1129_v8 = vadd.f32 1e-05, %v1125_v6  ;;  %v1126_v9 = vsub.f32 %v1122_v7, %v1124_v5 }
 0x33d   : > { %5597 = vrsqrt.f32 %v1129_v8  ;;  %v1130_v10 = vadd.f32 1e-05, %v1126_v9 }
 0x33f   : > { %5599 = vrsqrt.f32 %v1130_v10 }
 0x347   : > { %v5598_v12 = vpop.eup %5597 }
 0x348   : > { %v1133_v15 = vmul.f32 %v5598_v12, %v1127_v11 }
 0x349   : > { %v5600_v16 = vpop.eup %5599 }
 0x34a   : > { %v1134_v18 = vmul.f32 %v5600_v16, %v1128_v14  ;;  %v1139_v19 = vmul.f32 %v4774_v13, %v1133_v15 }
 0x34c   : > { %v1140_v21 = vmul.f32 %v4774_v13, %v1134_v18  ;;  %v1145_v22 = vadd.f32 %v4775_v20, %v1139_v19 }
 0x34e   : > { %v1146_v23 = vadd.f32 %v4775_v20, %v1140_v21 }
 0x350   : > { %v1151_v24 = vpack.c.bf16 %v1146_v23, %v1145_v22 }
 0x352   : > { %5121 = vmatmul.mubr.msk.bf16.vlgmr.msra.gmra.mrb[4].mxu0 %vm1051_vm4, %v1151_v24 }
 0x353   : > { %5156 = vmatprep.mubr.msk.bf16.mxu0 %vm5771_vm1, %v5770_v17 }
 0x425   : > { %v1208_v26 = vpop.f32.mrb[4].mxu0 }
 0x426   : > { %v5122_v27 = vpop.f32.mrb[5].mxu0  ;;  %v1209_v29 = vadd.f32 %v4776_v25, %v1208_v26 }
 0x427   : > { %v1211_v28 = vpop.f32.mrb[6].mxu0 }
 0x428   : > { %v1212_v30 = vadd.f32 %v4776_v25, %v1211_v28  ;;  %v5123_v31 = vpop.f32.mrb[7].mxu0 }
 0x42a   : > { %v6058_v32 = vpack.c.bf16 %v1212_v30, %v1209_v29 }
 0x42c   : > { %1217 = vrot.lane.b32.xlu0 %v6058_v32, %s6950_s1  ;;  %s6987_s1 = smov 96  }
 0x430   : > { %1345 = vrot.lane.b32.xlu0 %v6058_v32, %s6948_s2  ;;  %s6990_s2 = smov 80  }
 0x434   : > { %1343 = vrot.lane.b32.xlu0 %v6058_v32, %s6942_s3  ;;  %s6946_s3 = smov 16  }
 0x49e   : > { %v1218_v33 = vpop.permute.xlu0 %1217 }
 0x49f   : > { %v1224_v35 = vsel %vm1219_vm6, %v1218_v33, 0 }
 0x4a0   : > { %5125 = vmatpush3.bf16.xpose.msra.mxu1 %v1224_v35 }
 0x4a1   : > { %5130 = vmatprep.subr.bf16.mxu1 %v5770_v17 }
 0x4a2   : > { %v1346_v2 = vpop.permute.xlu0 %1345 }
 0x4a3   : > { %v1351_v4 = vsel %vm1219_vm6, %v1346_v2, 0 }
 0x4a6   : > { %v1344_v5 = vpop.permute.xlu0 %1343 }
 0x4a7   : > { %5127 = vmatmul.mubr.msk.bf16.vlgmr.msra.gmra.mrb[4].mxu1 %vm1219_vm6, %v6058_v32 }
 0x4a8   : > { %5132 = vmatprep.mubr.msk.bf16.mxu1 %vm5771_vm1, %v5770_v17 }
 0x57a   : > { %v1260_v37 = vpop.f32.mrb[4].mxu1 }
 0x57b   : > { %v1267_v38 = vmul.f32 0.35355338, %v1260_v37  ;;  %v5128_v39 = vpop.f32.mrb[5].mxu1 }
 0x57c   : > { %v1263_v40 = vpop.f32.mrb[6].mxu1 }
 0x57d   : > { %v1268_v41 = vmul.f32 0.35355338, %v1263_v40  ;;  %v5129_v42 = vpop.f32.mrb[7].mxu1  ;;  %v1270_v44 = vsel %vm1269_vm7, %v1267_v38, -1e+30 }
 0x57e   : > { %v1273_v45 = vsel %vm1272_vm8, %v1270_v44, -inf }
 0x57f   : > { %1274 = vmax.xlane.f32.xlu1 %v1273_v45  ;;  %v1271_v47 = vsel %vm1269_vm7, %v1268_v41, -1e+30 }
 0x580   : > { %v1276_v43 = vsel %vm1272_vm8, %v1271_v47, -inf }
 0x583   : > { %1277 = vmax.xlane.f32.xlu1 %v1276_v43 }
 0x60c   : > { %v1275_v48 = vpop.xlane.xlu1 %1274 }
 0x60d   : > { %v1279_v49 = vsub.f32 %v1270_v44, %v1275_v48 }
 0x60f   : > { %v1281_v50 = vmul.f32 1.442695, %v1279_v49 }
 0x610   : > { %v1278_v51 = vpop.xlane.xlu1 %1277 }
 0x611   : > { %5601 = vpow2.f32 %v1281_v50  ;;  %v1280_v52 = vsub.f32 %v1271_v47, %v1278_v51 }
 0x613   : > { %v1283_v53 = vmul.f32 1.442695, %v1280_v52 }
 0x615   : > { %5603 = vpow2.f32 %v1283_v53 }
 0x61b   : > { %v5602_v55 = vpop.eup %5601 }
 0x61c   : > { %v1285_v56 = vsel %vm1272_vm8, %v5602_v55, 0.0 }
 0x61d   : > { %1286 = vadd.xlane.f32.xlu1 %v1285_v56 }
 0x61f   : > { %v5604_v57 = vpop.eup %5603 }
 0x620   : > { %v1288_v58 = vsel %vm1272_vm8, %v5604_v57, 0.0 }
 0x621   : > { %1289 = vadd.xlane.f32.xlu1 %v1288_v58 }
 0x632   : > { %1296 = vrot.lane.b32.xlu1 %v6058_v32, %s6926_s30  ;;  %s6930_s30 = smov 104  }
 0x6aa   : > { %v1287_v59 = vpop.xlane.xlu1 %1286 }
 0x6ab   : > { %5605 = vrcp.f32 %v1287_v59 }
 0x6ae   : > { %v1290_v60 = vpop.xlane.xlu1 %1289 }
 0x6af   : > { %5607 = vrcp.f32 %v1290_v60 }
 0x6b2   : > { %v1297_v61 = vpop.permute.xlu1 %1296 }
 0x6b3   : > { %5131 = vmatpush3.bf16.msra.mxu1 %v1297_v61 }
 0x6b4   : > { %5136 = vmatprep.subr.bf16.mxu1 %v5770_v17 }
 0x6b5   : > { %v5606_v62 = vpop.eup %5605 }
 0x6b6   : > { %v1293_v0 = vmul.f32 %v5606_v62, %v5602_v55 }
 0x6b9   : > { %v5608_v63 = vpop.eup %5607 }
 0x6ba   : > { %v1294_v1 = vmul.f32 %v5608_v63, %v5604_v57 }
 0x6bc   : > { %v1295_v3 = vpack.c.bf16 %v1294_v1, %v1293_v0 }
 0x6be   : > { %5133 = vmatmul.mubr.msk.bf16.vlgmr.msra.gmra.mrb[8].mxu1 %vm1272_vm8, %v1295_v3 }
 0x6bf   : > { %5137 = vmatpush3.bf16.xpose.msra.mxu1 %v1351_v4  ;;  %5138 = vmatprep.mubr.msk.bf16.mxu1 %vm5771_vm1, %v5770_v17 }
 0x6c0   : > { %5142 = vmatprep.subr.bf16.mxu1 %v5770_v17 }
 0x6c6   : > { %5139 = vmatmul.mubr.msk.bf16.vlgmr.msra.gmra.mrb[12].mxu1 %vm1219_vm6, %v1344_v5 }
 0x6c7   : > { %5144 = vmatprep.mubr.msk.bf16.mxu1 %vm5771_vm1, %v5770_v17 }
 0x791   : > { %v6095_v6 = vpop.f32.mrb[8].mxu1 }
 0x792   : > { %v5134_v7 = vpop.f32.mrb[9].mxu1 }
 0x793   : > { %v6097_v8 = vpop.f32.mrb[10].mxu1 }
 0x794   : > { %v5135_v9 = vpop.f32.mrb[11].mxu1 }
 0x799   : > { %v1387_v10 = vpop.f32.mrb[12].mxu1 }
 0x79a   : > { %v1394_v11 = vmul.f32 0.35355338, %v1387_v10  ;;  %v5140_v12 = vpop.f32.mrb[13].mxu1 }
 0x79b   : > { %v1390_v13 = vpop.f32.mrb[14].mxu1 }
 0x79c   : > { %v1395_v14 = vmul.f32 0.35355338, %v1390_v13  ;;  %v5141_v15 = vpop.f32.mrb[15].mxu1  ;;  %v1396_v16 = vsel %vm1269_vm7, %v1394_v11, -1e+30 }
 0x79d   : > { %v1398_v18 = vsel %vm1272_vm8, %v1396_v16, -inf }
 0x79e   : > { %1399 = vmax.xlane.f32.xlu0 %v1398_v18  ;;  %v1397_v19 = vsel %vm1269_vm7, %v1395_v14, -1e+30 }
 0x79f   : > { %v1401_v20 = vsel %vm1272_vm8, %v1397_v19, -inf }
 0x7a0   : > { %1402 = vmax.xlane.f32.xlu1 %v1401_v20 }
 0x7b1   : > { %1470 = vrot.lane.b32.xlu1 %v6058_v32, %s6940_s5  ;;  %s6992_s5 = smov 64  }
 0x7b5   : > { %1468 = vrot.lane.b32.xlu1 %v6058_v32, %s6924_s28  ;;  %s6928_s28 = smov 56  }
 0x7b9   : > { %1595 = vrot.lane.b32.xlu1 %v6058_v32, %s6932_s29  ;;  %s6936_s29 = smov 40  }
 0x82b   : > { %v1400_v21 = vpop.xlane.xlu0 %1399 }
 0x82c   : > { %v1404_v22 = vsub.f32 %v1396_v16, %v1400_v21 }
 0x82d   : > { %v1403_v23 = vpop.xlane.xlu1 %1402 }
 0x82e   : > { %v1406_v24 = vmul.f32 1.442695, %v1404_v22  ;;  %v1405_v25 = vsub.f32 %v1397_v19, %v1403_v23 }
 0x830   : > { %5609 = vpow2.f32 %v1406_v24  ;;  %v1408_v26 = vmul.f32 1.442695, %v1405_v25 }
 0x831   : > { %v1471_v38 = vpop.permute.xlu1 %1470 }
 0x832   : > { %5611 = vpow2.f32 %v1408_v26  ;;  %v1476_v45 = vsel %vm1219_vm6, %v1471_v38, 0 }
 0x835   : > { %v1469_v44 = vpop.permute.xlu1 %1468 }
 0x839   : > { %v1596_v47 = vpop.permute.xlu1 %1595 }
 0x83a   : > { %v5610_v27 = vpop.eup %5609  ;;  %v1601_v43 = vsel %vm1219_vm6, %v1596_v47, 0 }
 0x83b   : > { %v1410_v28 = vsel %vm1272_vm8, %v5610_v27, 0.0 }
 0x83c   : > { %v5612_v29 = vpop.eup %5611  ;;  %1411 = vadd.xlane.f32.xlu0 %v1410_v28 }
 0x83d   : > { %v1413_v30 = vsel %vm1272_vm8, %v5612_v29, 0.0 }
 0x840   : > { %1414 = vadd.xlane.f32.xlu0 %v1413_v30 }
 0x856   : > { %1421 = vrot.lane.b32.xlu0 %v6058_v32, %s6928_s28  ;;  %s6938_s28 = smov 48  }
 0x85a   : > { %1593 = vrot.lane.b32.xlu0 %v6058_v32, %s6930_s30  ;;  %s6934_s30 = smov 8  }
 0x8c9   : > { %v1412_v31 = vpop.xlane.xlu0 %1411 }
 0x8ca   : > { %5613 = vrcp.f32 %v1412_v31 }
 0x8cd   : > { %v1415_v33 = vpop.xlane.xlu0 %1414 }
 0x8ce   : > { %5615 = vrcp.f32 %v1415_v33 }
 0x8d1   : > { %v1422_v35 = vpop.permute.xlu0 %1421 }
 0x8d2   : > { %5143 = vmatpush3.bf16.msra.mxu1 %v1422_v35 }
 0x8d3   : > { %5148 = vmatprep.subr.bf16.mxu1 %v5770_v17 }
 0x8d4   : > { %v5614_v37 = vpop.eup %5613 }
 0x8d5   : > { %v1418_v40 = vmul.f32 %v5614_v37, %v5610_v27  ;;  %v1594_v48 = vpop.permute.xlu0 %1593 }
 0x8d8   : > { %v5616_v39 = vpop.eup %5615 }
 0x8d9   : > { %v1419_v41 = vmul.f32 %v5616_v39, %v5612_v29 }
 0x8db   : > { %v1420_v42 = vpack.c.bf16 %v1419_v41, %v1418_v40 }
 0x8dd   : > { %5145 = vmatmul.mubr.msk.bf16.vlgmr.msra.gmra.mrb[16].mxu1 %vm1272_vm8, %v1420_v42 }
 0x8de   : > { %5149 = vmatpush3.bf16.xpose.msra.mxu1 %v1476_v45  ;;  %5150 = vmatprep.mubr.msk.bf16.mxu1 %vm5771_vm1, %v5770_v17 }
 0x8df   : > { %5160 = vmatprep.subr.bf16.mxu1 %v5770_v17 }
 0x8e5   : > { %5151 = vmatmul.mubr.msk.bf16.vlgmr.msra.gmra.mrb[20].mxu1 %vm1219_vm6, %v1469_v44 }
 0x8e6   : > { %5161 = vmatpush3.bf16.xpose.msra.mxu1 %v1601_v43  ;;  %5162 = vmatprep.mubr.msk.bf16.mxu1 %vm5771_vm1, %v5770_v17 }
 0x8e7   : > { %5172 = vmatprep.subr.bf16.mxu1 %v5770_v17 }
 0x8ed   : > { %5163 = vmatmul.mubr.msk.bf16.vlgmr.msra.gmra.mrb[24].mxu1 %vm1219_vm6, %v1594_v48 }
 0x8ee   : > { %5176 = vmatprep.mubr.msk.bf16.mxu1 %vm5771_vm1, %v5770_v17 }
 0x9b0   : > { %v1461_v49 = vpop.f32.mrb[16].mxu1 }
 0x9b1   : > { %v5146_v50 = vpop.f32.mrb[17].mxu1 }
 0x9b2   : > { %v1464_v51 = vpop.f32.mrb[18].mxu1 }
 0x9b3   : > { %v5482_v52 = vpack.i.bf16 %v1464_v51, %v1461_v49  ;;  %v5147_v53 = vpop.f32.mrb[19].mxu1 }
 0x9b4   : > { %v5543_v53 = vld [vmem:[%s6984_s13] sm:$0xff]  }
 0x9b5   : > { %5173 = vmatpush3.bf16.msra.mxu1 %v5543_v53 }
 0x9b6   : > { %5174 = vmatprep.subr.bf16.mxu1 %v5770_v17 }
 0x9b8   : > { %v1512_v55 = vpop.f32.mrb[20].mxu1 }
 0x9b9   : > { %v1519_v56 = vmul.f32 0.35355338, %v1512_v55  ;;  %v5152_v57 = vpop.f32.mrb[21].mxu1 }
 0x9ba   : > { %v1515_v58 = vpop.f32.mrb[22].mxu1 }
 0x9bb   : > { %v1520_v59 = vmul.f32 0.35355338, %v1515_v58  ;;  %v5153_v60 = vpop.f32.mrb[23].mxu1  ;;  %v1521_v61 = vsel %vm1269_vm7, %v1519_v56, -1e+30 }
 0x9bc   : > { %v1523_v62 = vsel %vm1272_vm8, %v1521_v61, -inf  ;;  %v5544_v60 = vld [vmem:[%s6984_s13 + $0x8] sm:$0xff]  }
 0x9bd   : > { %1524 = vmax.xlane.f32.xlu1 %v1523_v62  ;;  %v1522_v63 = vsel %vm1269_vm7, %v1520_v59, -1e+30  ;;  %5175 = vmatpush3.bf16.msra.mxu1 %v5544_v60  ;;  %v4793_v60 = vld [vmem:[%s6983_s8 + $0x3] ss:$0 sm:$0xff] }
 0x9be   : > { %v1526_v0 = vsel %vm1272_vm8, %v1522_v63, -inf  ;;  %5188 = vmatprep.subr.bf16.mxu1 %v5770_v17 }
 0x9bf   : > { %1527 = vmax.xlane.f32.xlu0 %v1526_v0 }
 0x9c0   : > { %v1637_v1 = vpop.f32.mrb[24].mxu1 }
 0x9c1   : > { %v1644_v2 = vmul.f32 0.35355338, %v1637_v1  ;;  %v5164_v3 = vpop.f32.mrb[25].mxu1 }
 0x9c2   : > { %v1640_v4 = vpop.f32.mrb[26].mxu1 }
 0x9c3   : > { %v1645_v5 = vmul.f32 0.35355338, %v1640_v4  ;;  %v5165_v7 = vpop.f32.mrb[27].mxu1  ;;  %v1646_v9 = vsel %vm1269_vm7, %v1644_v2, -1e+30 }
 0x9c4   : > { %v1648_v10 = vsel %vm1272_vm8, %v1646_v9, -inf }
 0x9c5   : > { %1649 = vmax.xlane.f32.xlu0 %v1648_v10  ;;  %v1647_v11 = vsel %vm1269_vm7, %v1645_v5, -1e+30 }
 0x9c6   : > { %v1651_v12 = vsel %vm1272_vm8, %v1647_v11, -inf }
 0x9c9   : > { %1652 = vmax.xlane.f32.xlu0 %v1651_v12 }
 0xa4a   : > { %v1525_v13 = vpop.xlane.xlu1 %1524 }
 0xa4b   : > { %v1529_v14 = vsub.f32 %v1521_v61, %v1525_v13 }
 0xa4c   : > { %v1528_v15 = vpop.xlane.xlu0 %1527 }
 0xa4d   : > { %v1531_v16 = vmul.f32 1.442695, %v1529_v14  ;;  %v1530_v18 = vsub.f32 %v1522_v63, %v1528_v15 }
 0xa4f   : > { %5617 = vpow2.f32 %v1531_v16  ;;  %v1533_v19 = vmul.f32 1.442695, %v1530_v18 }
 0xa51   : > { %5619 = vpow2.f32 %v1533_v19 }
 0xa52   : > { %v1650_v20 = vpop.xlane.xlu0 %1649 }
 0xa53   : > { %v1654_v21 = vsub.f32 %v1646_v9, %v1650_v20 }
 0xa55   : > { %v1656_v22 = vmul.f32 1.442695, %v1654_v21 }
 0xa56   : > { %v1653_v23 = vpop.xlane.xlu0 %1652 }
 0xa57   : > { %5621 = vpow2.f32 %v1656_v22  ;;  %v1655_v24 = vsub.f32 %v1647_v11, %v1653_v23 }
 0xa59   : > { %v5618_v25 = vpop.eup %5617  ;;  %v1658_v26 = vmul.f32 1.442695, %v1655_v24 }
 0xa5a   : > { %v1535_v27 = vsel %vm1272_vm8, %v5618_v25, 0.0 }
 0xa5b   : > { %v5620_v28 = vpop.eup %5619  ;;  %5623 = vpow2.f32 %v1658_v26  ;;  %1536 = vadd.xlane.f32.xlu1 %v1535_v27 }
 0xa5c   : > { %v1538_v29 = vsel %vm1272_vm8, %v5620_v28, 0.0 }
 0xa5d   : > { %1539 = vadd.xlane.f32.xlu0 %v1538_v29 }
 0xa61   : > { %v5622_v30 = vpop.eup %5621 }
 0xa62   : > { %v1660_v31 = vsel %vm1272_vm8, %v5622_v30, 0.0 }
 0xa63   : > { %1661 = vadd.xlane.f32.xlu1 %v1660_v31 }
 0xa65   : > { %v5624_v33 = vpop.eup %5623 }
 0xa66   : > { %v1663_v35 = vsel %vm1272_vm8, %v5624_v33, 0.0 }
 0xa67   : > { %1664 = vadd.xlane.f32.xlu0 %v1663_v35  ;;  %v5546_v35 = vld [vmem:[%s6986_s15 + $0x8] sm:$0xff]  }
 0xa74   : > { %1546 = vrot.lane.b32.xlu1 %v6058_v32, %s6938_s28  ;;  %s6993_s28 = smov 112  }
 0xa78   : > { %5483 = vrot.lane.b32.xlu1 %v5482_v52, %s6934_s30  ;;  %s6944_s30 = smov 24  }
 0xa7d   : > { %1671 = vrot.lane.b32.xlu0 %v6058_v32, %s6936_s29  ;;  %s6991_s29 = smov 72  }
 0xae8   : > { %v1537_v37 = vpop.xlane.xlu1 %1536 }
 0xae9   : > { %5625 = vrcp.f32 %v1537_v37 }
 0xaea   : > { %v1540_v38 = vpop.xlane.xlu0 %1539 }
 0xaeb   : > { %5627 = vrcp.f32 %v1540_v38 }
 0xaf0   : > { %v1662_v39 = vpop.xlane.xlu1 %1661 }
 0xaf1   : > { %5629 = vrcp.f32 %v1662_v39 }
 0xaf3   : > { %v5626_v40 = vpop.eup %5625 }
 0xaf4   : > { %v1547_v41 = vpop.permute.xlu1 %1546  ;;  %v1665_v42 = vpop.xlane.xlu0 %1664  ;;  %v1543_v45 = vmul.f32 %v5626_v40, %v5618_v25 }
 0xaf5   : > { %v5628_v44 = vpop.eup %5627  ;;  %5631 = vrcp.f32 %v1665_v42  ;;  %5155 = vmatpush3.bf16.msra.mxu0 %v1547_v41 }
 0xaf6   : > { %v1544_v47 = vmul.f32 %v5628_v44, %v5620_v28  ;;  %5166 = vmatprep.subr.bf16.mxu0 %v5770_v17 }
 0xaf8   : > { %v1672_v43 = vpop.permute.xlu0 %1671  ;;  %v1545_v48 = vpack.c.bf16 %v1544_v47, %v1543_v45  ;;  %v5484_v2 = vpop.permute.xlu1 %5483 }
 0xaf9   : > { %v5486_v4 = vunpack.i.h.bf16 %v5484_v2  ;;  %v5485_v5 = vunpack.i.l.bf16 %v5484_v2  ;;  %v5548_v2 = vld [vmem:[%s6906_s17 + $0x8] sm:$0xff]  }
 0xafa   : > { %5157 = vmatmul.mubr.msk.bf16.vlgmr.msra.gmra.mrb[8].mxu0 %vm1272_vm8, %v1545_v48 }
 0xafb   : > { %5167 = vmatpush3.bf16.msra.mxu0 %v1672_v43  ;;  %5168 = vmatprep.mubr.msk.bf16.mxu0 %vm5771_vm1, %v5770_v17  ;;  %v5630_v32 = vpop.eup %5629  ;;  %v1743_v11 = vsel %vm1219_vm6, %v6097_v8, %v5486_v4  ;;  %v1742_v12 = vsel %vm1219_vm6, %v6095_v6, %v5485_v5  ;;  %v4791_v6 = vld [vmem:[%s6985_s14] ss:$0 sm:$0xff]  ;;  %v5550_v4 = vld [vmem:[%s6906_s17 + $0x18] sm:$0xff]  }
 0xafc   : > { %5180 = vmatprep.subr.bf16.mxu0 %v5770_v17  ;;  %v1668_v50 = vmul.f32 %v5630_v32, %v5622_v30  ;;  %v5551_v5 = vld [vmem:[%s6906_s17 + $0x20] sm:$0xff]  }
 0xaff   : > { %v5632_v49 = vpop.eup %5631 }
 0xb00   : > { %v1669_v51 = vmul.f32 %v5632_v49, %v5624_v33 }
 0xb02   : > { %v1670_v52 = vpack.c.bf16 %v1669_v51, %v1668_v50 }
 0xb04   : > { %5169 = vmatmul.mubr.msk.bf16.vlgmr.msra.gmra.mrb[12].mxu0 %vm1272_vm8, %v1670_v52 }
 0xb05   : > { %5184 = vmatprep.mubr.msk.bf16.mxu0 %vm5771_vm1, %v5770_v17 }
 0xbcd   : > { %v1586_v55 = vpop.f32.mrb[8].mxu0 }
 0xbce   : > { %v5158_v56 = vpop.f32.mrb[9].mxu0 }
 0xbcf   : > { %v1589_v57 = vpop.f32.mrb[10].mxu0 }
 0xbd0   : > { %v5487_v58 = vpack.i.bf16 %v1589_v57, %v1586_v55  ;;  %v5159_v59 = vpop.f32.mrb[11].mxu0  ;;  %v4792_v55 = vld [vmem:[%s6983_s8 + $0x2] ss:$0 sm:$0xff] }
 0xbd2   : > { %5488 = vrot.lane.b32.xlu1 %v5487_v58, %s6946_s3  ;;  %s6988_s3 = smov 88  }
 0xbd7   : > { %v1711_v61 = vpop.f32.mrb[12].mxu0 }
 0xbd8   : > { %v5170_v62 = vpop.f32.mrb[13].mxu0 }
 0xbd9   : > { %v1714_v63 = vpop.f32.mrb[14].mxu0 }
 0xbda   : > { %v5492_v0 = vpack.i.bf16 %v1714_v63, %v1711_v61  ;;  %v5171_v1 = vpop.f32.mrb[15].mxu0 }
 0xbdb   : > { %v5547_v1 = vld [vmem:[%s6906_s17] sm:$0xff]  }
 0xbdc   : > { %5493 = vrot.lane.b32.xlu1 %v5492_v0, %s6944_s30  ;;  %s6989_s30 = smov 120  }
 0xc44   : > { %v5489_v3 = vpop.permute.xlu1 %5488 }
 0xc45   : > { %v5491_v7 = vunpack.i.h.bf16 %v5489_v3  ;;  %v5490_v9 = vunpack.i.l.bf16 %v5489_v3  ;;  %v5549_v3 = vld [vmem:[%s6906_s17 + $0x10] sm:$0xff]  }
 0xc47   : > { %v1745_v15 = vsel %vm1272_vm8, %v1743_v11, %v5491_v7  ;;  %v1744_v16 = vsel %vm1272_vm8, %v1742_v12, %v5490_v9  ;;  %v5552_v7 = vld [vmem:[%s6906_s17 + $0x28] sm:$0xff]   ;;  %v5553_v9 = vld [vmem:[%s6906_s17 + $0x30] sm:$0xff]   ;;  %v6248_v11 = vld [vmem:[%s6980_s10 + $0x18] sm:$0xff] }
 0xc48   : > { %v2077_v12 = vsel %vm1051_vm4, %v6248_v11, 0.0 }
 0xc4e   : > { %v5494_v10 = vpop.permute.xlu1 %5493 }
 0xc4f   : > { %v5496_v13 = vunpack.i.h.bf16 %v5494_v10  ;;  %v5495_v14 = vunpack.i.l.bf16 %v5494_v10  ;;  %v5554_v10 = vld [vmem:[%s6906_s17 + $0x38] sm:$0xff]  }
 0xc51   : > { %v1748_v18 = vsel %vm1746_vm9, %v1745_v15, %v5496_v13  ;;  %v1747_v19 = vsel %vm1746_vm9, %v1744_v16, %v5495_v14  ;;  %v2083_v13 = vmul.f32 %v6248_v11, %v6248_v11  ;;  %v4794_v15 = vld [vmem:[%s6905_s16] ss:$0 sm:$0xff] }
 0xc52   : > { %v1753_v20 = vpack.c.bf16 %v1748_v18, %v1747_v19 }
 0xc53   : > { %v2087_v14 = vsel %vm1051_vm4, %v2083_v13, 0.0 }
 0xc54   : > { %5177 = vmatmul.mubr.msk.bf16.vlgmr.msra.gmra.mrb[28].mxu1 %vm1051_vm4, %v1753_v20 }
 0xc55   : > { %5204 = vmatprep.mubr.msk.bf16.mxu1 %vm5771_vm1, %v5770_v17  ;;  %5189 = vmatpush3.bf16.msra.mxu1 %v5547_v1 }
 0xc56   : > { %5190 = vmatprep.subr.bf16.mxu1 %v5770_v17 }
 0xc59   : > { %5191 = vmatpush3.bf16.msra.mxu1 %v5548_v2  ;;  %v4815_v2 = vld [vmem:[%s6983_s8 + $0x4] ss:$0 sm:$0xff] }
 0xc5a   : > { %5192 = vmatprep.subr.bf16.mxu1 %v5770_v17 }
 0xc5d   : > { %5193 = vmatpush3.bf16.msra.mxu1 %v5549_v3 }
 0xc5e   : > { %5194 = vmatprep.subr.bf16.mxu1 %v5770_v17 }
 0xc61   : > { %5195 = vmatpush3.bf16.msra.mxu1 %v5550_v4 }
 0xc62   : > { %5196 = vmatprep.subr.bf16.mxu1 %v5770_v17 }
 0xc65   : > { %5197 = vmatpush3.bf16.msra.mxu1 %v5551_v5 }
 0xc66   : > { %5198 = vmatprep.subr.bf16.mxu1 %v5770_v17 }
 0xc69   : > { %5199 = vmatpush3.bf16.msra.mxu1 %v5552_v7 }
 0xc6a   : > { %5200 = vmatprep.subr.bf16.mxu1 %v5770_v17 }
 0xc6d   : > { %5201 = vmatpush3.bf16.msra.mxu1 %v5553_v9  ;;  %v4816_v9 = vld [vmem:[%s6983_s8 + $0x5] ss:$0 sm:$0xff] }
 0xc6e   : > { %5202 = vmatprep.subr.bf16.mxu1 %v5770_v17 }
 0xc71   : > { %5203 = vmatpush3.bf16.msra.mxu1 %v5554_v10 }
 0xc72   : > { %5234 = vmatprep.subr.bf16.mxu1 %v5770_v17 }
 0xd27   : > { %v1803_v8 = vpop.f32.mrb[28].mxu1 }
 0xd28   : > { %v1810_v21 = vadd.f32 %v1803_v8, %v6028_v54  ;;  %v5178_v22 = vpop.f32.mrb[29].mxu1 }
 0xd29   : > { %v1806_v23 = vpop.f32.mrb[30].mxu1 }
 0xd2a   : > { %v6185_v24 = vadd.f32 %v4791_v6, %v1810_v21  ;;  %v1811_v25 = vadd.f32 %v1806_v23, %v6007_v34  ;;  %v5179_v26 = vpop.f32.mrb[31].mxu1  ;;  %v5545_v34 = vld [vmem:[%s6986_s15] sm:$0xff]  }
 0xd2b   : > { %5181 = vmatpush3.bf16.msra.mxu0 %v5545_v34 }
 0xd2c   : > { %v1820_v27 = vadd.f32 %v4791_v6, %v1811_v25  ;;  %v1821_v28 = vsel %vm1051_vm4, %v6185_v24, 0.0  ;;  %v1829_v29 = vmul.f32 %v6185_v24, %v6185_v24  ;;  %5182 = vmatprep.subr.bf16.mxu0 %v5770_v17 }
 0xd2d   : > { %1822 = vadd.xlane.f32.xlu0 %v1821_v28 }
 0xd2e   : > { %v1824_v30 = vsel %vm1051_vm4, %v1820_v27, 0.0  ;;  %v1831_v54 = vsel %vm1051_vm4, %v1829_v29, 0.0  ;;  %v1830_v31 = vmul.f32 %v1820_v27, %v1820_v27 }
 0xd2f   : > { %1825 = vadd.xlane.f32.xlu1 %v1824_v30  ;;  %5183 = vmatpush3.bf16.msra.mxu0 %v5546_v35 }
 0xd30   : > { %v1834_v33 = vsel %vm1051_vm4, %v1830_v31, 0.0  ;;  %5208 = vmatprep.subr.bf16.mxu0 %v5770_v17 }
 0xd31   : > { %1832 = vadd.xlane.f32.xlu0 %v1831_v54 }
 0xd33   : > { %2078 = vadd.xlane.f32.xlu1 %v2077_v12 }
 0xd35   : > { %1835 = vadd.xlane.f32.xlu0 %v1834_v33 }
 0xd37   : > { %2088 = vadd.xlane.f32.xlu1 %v2087_v14 }
 0xdba   : > { %v1823_v37 = vpop.xlane.xlu0 %1822 }
 0xdbb   : > { %v1827_v38 = vmul.f32 0.03125, %v1823_v37  ;;  %v4808_v37 = vld [vmem:[%s6907_s18] ss:$0 sm:$0xff] }
 0xdbc   : > { %v1826_v39 = vpop.xlane.xlu1 %1825 }
 0xdbd   : > { %v1839_v41 = vmul.f32 %v1827_v38, %v1827_v38  ;;  %v1828_v42 = vmul.f32 0.03125, %v1826_v39  ;;  %v1843_v51 = vsub.f32 %v6185_v24, %v1827_v38 }
 0xdbe   : > { %v1833_v40 = vpop.xlane.xlu0 %1832 }
 0xdbf   : > { %v1837_v44 = vmul.f32 0.03125, %v1833_v40  ;;  %v1840_v43 = vmul.f32 %v1828_v42, %v1828_v42  ;;  %v1844_v56 = vsub.f32 %v1820_v27, %v1828_v42 }
 0xdc1   : > { %v1841_v45 = vsub.f32 %v1837_v44, %v1839_v41  ;;  %v4809_v41 = vld [vmem:[%s6980_s10 + $0x10] sm:$0xff]  ;;  %s6995_s10 = smov 48  }
 0xdc2   : > { %v1836_v47 = vpop.xlane.xlu0 %1835 }
 0xdc3   : > { %v1845_v48 = vadd.f32 1e-05, %v1841_v45  ;;  %v1838_v32 = vmul.f32 0.03125, %v1836_v47 }
 0xdc5   : > { %5633 = vrsqrt.f32 %v1845_v48  ;;  %v1842_v49 = vsub.f32 %v1838_v32, %v1840_v43  ;;  %v5555_v48 = vld [vmem:[%s6982_s0 + $0x10] sm:$0xff]   ;;  %v5556_v32 = vld [vmem:[%s6982_s0 + $0x18] sm:$0xff]  }
 0xdc7   : > { %v1846_v50 = vadd.f32 1e-05, %v1842_v49  ;;  %v2079_v49 = vpop.xlane.xlu1 %2078 }
 0xdc9   : > { %5635 = vrsqrt.f32 %v1846_v50  ;;  %v2081_v50 = vmul.f32 0.03125, %v2079_v49 }
 0xdcf   : > { %v5634_v52 = vpop.eup %5633 }
 0xdd0   : > { %v1849_v53 = vmul.f32 %v5634_v52, %v1843_v51  ;;  %v2089_v51 = vpop.xlane.xlu1 %2088  ;;  %v2093_v52 = vmul.f32 %v2081_v50, %v2081_v50 }
 0xdd2   : > { %v1855_v59 = vmul.f32 %v4792_v55, %v1849_v53  ;;  %v2091_v53 = vmul.f32 0.03125, %v2089_v51 }
 0xdd3   : > { %v5636_v57 = vpop.eup %5635 }
 0xdd4   : > { %v1850_v58 = vmul.f32 %v5636_v57, %v1844_v56  ;;  %v1861_v62 = vadd.f32 %v4793_v60, %v1855_v59 }
 0xdd6   : > { %v1856_v61 = vmul.f32 %v4792_v55, %v1850_v58  ;;  %v2095_v55 = vsub.f32 %v2091_v53, %v2093_v52 }
 0xdd8   : > { %v1862_v63 = vadd.f32 %v4793_v60, %v1856_v61  ;;  %v2099_v57 = vadd.f32 1e-05, %v2095_v55 }
 0xdda   : > { %v1867_v0 = vpack.c.bf16 %v1862_v63, %v1861_v62 }
 0xddc   : > { %5185 = vmatmul.mubr.msk.bf16.vlgmr.msra.gmra.mrb[16].mxu0 %vm1051_vm4, %v1867_v0  ;;  %v2097_v0 = vsub.f32 %v6248_v11, %v2081_v50 }
 0xddd   : > { %5212 = vmatprep.mubr.msk.bf16.mxu0 %vm5771_vm1, %v5770_v17  ;;  %5209 = vmatpush3.bf16.msra.mxu0 %v5555_v48 }
 0xdde   : > { %5210 = vmatprep.subr.bf16.mxu0 %v5770_v17 }
 0xde1   : > { %5211 = vmatpush3.bf16.msra.mxu0 %v5556_v32 }
 0xde2   : > { %5216 = vmatprep.subr.bf16.mxu0 %v5770_v17 }
 0xeaf   : > { %v1924_v16 = vpop.f32.mrb[16].mxu0 }
 0xeb0   : > { %v1925_v18 = vadd.f32 %v4794_v15, %v1924_v16  ;;  %v5186_v19 = vpop.f32.mrb[17].mxu0  ;;  %v4822_v16 = vld [vmem:[%s6901_s12 + $0x1] ss:$0 sm:$0xff] }
 0xeb1   : > { %v1927_v20 = vpop.f32.mrb[18].mxu0 }
 0xeb2   : > { %v4798_v8 = vmul.f32 -1.702, %v1925_v18  ;;  %v1928_v6 = vadd.f32 %v4794_v15, %v1927_v20  ;;  %v5187_v21 = vpop.f32.mrb[19].mxu0  ;;  %v6294_v15 = vld [vmem:[%s5981_s6] sm:$0xff] }
 0xeb4   : > { %v1935_v22 = vmul.f32 1.442695, %v4798_v8  ;;  %v4799_v23 = vmul.f32 -1.702, %v1928_v6 }
 0xeb6   : > { %5637 = vpow2.f32 %v1935_v22  ;;  %v1937_v25 = vmul.f32 1.442695, %v4799_v23 }
 0xeb8   : > { %5639 = vpow2.f32 %v1937_v25 }
 0xec0   : > { %v5638_v26 = vpop.eup %5637 }
 0xec1   : > { %v1939_v27 = vadd.f32 1.0, %v5638_v26 }
 0xec2   : > { %v5640_v28 = vpop.eup %5639 }
 0xec3   : > { %5641 = vrcp.f32 %v1939_v27  ;;  %v1940_v29 = vadd.f32 1.0, %v5640_v28 }
 0xec5   : > { %5643 = vrcp.f32 %v1940_v29 }
 0xec6   : > { %5645 = vrsqrt.f32 %v2099_v57 }
 0xecd   : > { %v5642_v30 = vpop.eup %5641 }
 0xece   : > { %v1945_v31 = vmul.f32 %v5642_v30, %v1925_v18 }
 0xecf   : > { %v5644_v54 = vpop.eup %5643 }
 0xed0   : > { %v1946_v33 = vmul.f32 %v5644_v54, %v1928_v6 }
 0xed2   : > { %v1963_v34 = vpack.c.bf16 %v1946_v33, %v1945_v31 }
 0xed4   : > { %5205 = vmatmul.mubr.bf16.vlgmr.msra.gmra.mrb[32].mxu1 %v1963_v34 }
 0xed5   : > { %5236 = vmatprep.mubr.msk.bf16.mxu1 %vm5771_vm1, %v5770_v17  ;;  %v5646_v17 = vpop.eup %5645 }
 0xed6   : > { %v2103_v1 = vmul.f32 %v5646_v17, %v2097_v0 }
 0xed8   : > { %v2109_v7 = vmul.f32 %v4815_v2, %v2103_v1 }
 0xeda   : > { %v2115_v13 = vadd.f32 %v4816_v9, %v2109_v7 }
 0xfa7   : > { %v2046_v35 = vpop.f32.mrb[32].mxu1 }
 0xfa8   : > { %v2053_v38 = vadd.f32 %v2046_v35, %v6185_v24  ;;  %v5206_v39 = vpop.f32.mrb[33].mxu1 }
 0xfa9   : > { %v2049_v40 = vpop.f32.mrb[34].mxu1 }
 0xfaa   : > { %v2062_v42 = vadd.f32 %v4808_v37, %v2053_v38  ;;  %v5207_v44 = vpop.f32.mrb[35].mxu1 }
 0xfac   : > { %v6269_v45 = vsel %vm1095_vm5, %v2062_v42, %v4809_v41 }
 0xfad   : > { %v2074_v47 = vsel %vm1051_vm4, %v6269_v45, 0.0  ;;  %v2082_v43 = vmul.f32 %v6269_v45, %v6269_v45 }
 0xfae   : > { %2075 = vadd.xlane.f32.xlu0 %v2074_v47 }
 0xfaf   : > { %v2084_v24 = vsel %vm1051_vm4, %v2082_v43, 0.0 }
 0xfb2   : > { %2085 = vadd.xlane.f32.xlu0 %v2084_v24 }
0x103b   : > { %v2076_v56 = vpop.xlane.xlu0 %2075 }
0x103c   : > { %v2080_v58 = vmul.f32 0.03125, %v2076_v56 }
0x103e   : > { %v2092_v60 = vmul.f32 %v2080_v58, %v2080_v58  ;;  %v2096_v3 = vsub.f32 %v6269_v45, %v2080_v58 }
0x103f   : > { %v2086_v59 = vpop.xlane.xlu0 %2085 }
0x1040   : > { %v2090_v61 = vmul.f32 0.03125, %v2086_v59 }
0x1042   : > { %v2094_v62 = vsub.f32 %v2090_v61, %v2092_v60 }
0x1044   : > { %v2098_v63 = vadd.f32 1e-05, %v2094_v62 }
0x1046   : > { %5647 = vrsqrt.f32 %v2098_v63 }
0x1050   : > { %v5648_v4 = vpop.eup %5647 }
0x1051   : > { %v2102_v5 = vmul.f32 %v5648_v4, %v2096_v3 }
0x1053   : > { %v2108_v10 = vmul.f32 %v4815_v2, %v2102_v5 }
0x1055   : > { %v2114_v12 = vadd.f32 %v4816_v9, %v2108_v10 }
0x1057   : > { %v2121_v14 = vpack.c.bf16 %v2115_v13, %v2114_v12 }
0x1059   : > { %5213 = vmatmul.mubr.msk.bf16.vlgmr.msra.gmra.mrb[20].mxu0 %vm1051_vm4, %v2121_v14 }
0x105a   : > { %5218 = vmatprep.mubr.msk.bf16.mxu0 %vm5771_vm1, %v6294_v15 }
0x112c   : > { %v2179_v18 = vpop.f32.mrb[20].mxu0 }
0x112d   : > { %v5214_v19 = vpop.f32.mrb[21].mxu0  ;;  %v2180_v8 = vadd.f32 %v4822_v16, %v2179_v18 }
0x112e   : > { %v2182_v20 = vpop.f32.mrb[22].mxu0 }
0x112f   : > { %v2183_v6 = vadd.f32 %v4822_v16, %v2182_v20  ;;  %v5215_v21 = vpop.f32.mrb[23].mxu0 }
0x1131   : > { %v6301_v22 = vpack.c.bf16 %v2183_v6, %v2180_v8 }
0x1133   : > { %2188 = vrot.lane.b32.xlu0 %v6301_v22, %s6987_s1 }
0x1137   : > { %2313 = vrot.lane.b32.xlu0 %v6301_v22, %s6988_s3 }
0x113b   : > { %2311 = vrot.lane.b32.xlu0 %v6301_v22, %s6989_s30 }
0x113f   : > { %2438 = vrot.lane.b32.xlu0 %v6301_v22, %s6990_s2 }
0x1143   : > { %2563 = vrot.lane.b32.xlu0 %v6301_v22, %s6991_s29 }
0x11a5   : > { %v2189_v23 = vpop.permute.xlu0 %2188 }
0x11a6   : > { %v2194_v25 = vsel %vm1219_vm6, %v2189_v23, 0 }
0x11a7   : > { %5217 = vmatpush3.bf16.xpose.msra.mxu0 %v2194_v25 }
0x11a8   : > { %5222 = vmatprep.subr.bf16.mxu0 %v6294_v15 }
0x11a9   : > { %v2314_v51 = vpop.permute.xlu0 %2313 }
0x11aa   : > { %v2319_v58 = vsel %vm1219_vm6, %v2314_v51, 0 }
0x11ad   : > { %v2312_v57 = vpop.permute.xlu0 %2311 }
0x11ae   : > { %5219 = vmatmul.mubr.msk.bf16.vlgmr.msra.gmra.mrb[24].mxu0 %vm1219_vm6, %v6301_v22 }
0x11af   : > { %5224 = vmatprep.mubr.msk.bf16.mxu0 %vm5771_vm1, %v6294_v15 }
0x11b1   : > { %v2439_v59 = vpop.permute.xlu0 %2438 }
0x11b2   : > { %v2444_v60 = vsel %vm1219_vm6, %v2439_v59, 0 }
0x11b5   : > { %v2564_v61 = vpop.permute.xlu0 %2563 }
0x11b6   : > { %v2569_v63 = vsel %vm1219_vm6, %v2564_v61, 0 }
0x1281   : > { %v2230_v26 = vpop.f32.mrb[24].mxu0 }
0x1282   : > { %v2237_v27 = vmul.f32 0.35355338, %v2230_v26  ;;  %v5220_v28 = vpop.f32.mrb[25].mxu0 }
0x1283   : > { %v2233_v29 = vpop.f32.mrb[26].mxu0 }
0x1284   : > { %v2238_v30 = vmul.f32 0.35355338, %v2233_v29  ;;  %v5221_v54 = vpop.f32.mrb[27].mxu0  ;;  %v2239_v31 = vsel %vm1269_vm7, %v2237_v27, -1e+30 }
0x1285   : > { %v2241_v33 = vsel %vm1272_vm8, %v2239_v31, -inf }
0x1286   : > { %2242 = vmax.xlane.f32.xlu1 %v2241_v33  ;;  %v2240_v34 = vsel %vm1269_vm7, %v2238_v30, -1e+30 }
0x1287   : > { %v2244_v35 = vsel %vm1272_vm8, %v2240_v34, -inf }
0x128a   : > { %2245 = vmax.xlane.f32.xlu1 %v2244_v35 }
0x1313   : > { %v2243_v37 = vpop.xlane.xlu1 %2242 }
0x1314   : > { %v2247_v38 = vsub.f32 %v2239_v31, %v2243_v37 }
0x1316   : > { %v2249_v39 = vmul.f32 1.442695, %v2247_v38 }
0x1317   : > { %v2246_v40 = vpop.xlane.xlu1 %2245 }
0x1318   : > { %5649 = vpow2.f32 %v2249_v39  ;;  %v2248_v41 = vsub.f32 %v2240_v34, %v2246_v40 }
0x131a   : > { %v2251_v42 = vmul.f32 1.442695, %v2248_v41 }
0x131c   : > { %5651 = vpow2.f32 %v2251_v42 }
0x1322   : > { %v5650_v44 = vpop.eup %5649 }
0x1323   : > { %v2253_v47 = vsel %vm1272_vm8, %v5650_v44, 0.0 }
0x1324   : > { %2254 = vadd.xlane.f32.xlu1 %v2253_v47 }
0x1326   : > { %v5652_v43 = vpop.eup %5651 }
0x1327   : > { %v2256_v24 = vsel %vm1272_vm8, %v5652_v43, 0.0 }
0x1328   : > { %2257 = vadd.xlane.f32.xlu1 %v2256_v24 }
0x1339   : > { %2264 = vrot.lane.b32.xlu1 %v6301_v22, %s6992_s5  ;;  %s7001_s5 = sld [smem:[#allocation4_spill]] }
0x133d   : > { %2436 = vrot.lane.b32.xlu1 %v6301_v22, %s6993_s28 }
0x1341   : > { %2561 = vrot.lane.b32.xlu1 %v6301_v22, %s6994_s9 }
0x13b1   : > { %v2255_v48 = vpop.xlane.xlu1 %2254 }
0x13b2   : > { %5653 = vrcp.f32 %v2255_v48 }
0x13b5   : > { %v2258_v32 = vpop.xlane.xlu1 %2257 }
0x13b6   : > { %5655 = vrcp.f32 %v2258_v32 }
0x13b9   : > { %v2265_v49 = vpop.permute.xlu1 %2264 }
0x13ba   : > { %5223 = vmatpush3.bf16.msra.mxu0 %v2265_v49 }
0x13bb   : > { %5228 = vmatprep.subr.bf16.mxu0 %v6294_v15 }
0x13bc   : > { %v5654_v50 = vpop.eup %5653 }
0x13bd   : > { %v2261_v53 = vmul.f32 %v5654_v50, %v5650_v44  ;;  %v2437_v62 = vpop.permute.xlu1 %2436 }
0x13c0   : > { %v5656_v52 = vpop.eup %5655 }
0x13c1   : > { %v2262_v55 = vmul.f32 %v5656_v52, %v5652_v43  ;;  %v2562_v0 = vpop.permute.xlu1 %2561 }
0x13c3   : > { %v2263_v56 = vpack.c.bf16 %v2262_v55, %v2261_v53 }
0x13c5   : > { %5225 = vmatmul.mubr.msk.bf16.vlgmr.msra.gmra.mrb[28].mxu0 %vm1272_vm8, %v2263_v56 }
0x13c6   : > { %5229 = vmatpush3.bf16.xpose.msra.mxu0 %v2319_v58  ;;  %5230 = vmatprep.mubr.msk.bf16.mxu0 %vm5771_vm1, %v6294_v15 }
0x13c7   : > { %5240 = vmatprep.subr.bf16.mxu0 %v6294_v15 }
0x13cd   : > { %5231 = vmatmul.mubr.msk.bf16.vlgmr.msra.gmra.mrb[32].mxu0 %vm1219_vm6, %v2312_v57 }
0x13ce   : > { %5241 = vmatpush3.bf16.xpose.msra.mxu0 %v2444_v60  ;;  %5242 = vmatprep.mubr.msk.bf16.mxu0 %vm5771_vm1, %v6294_v15 }
0x13cf   : > { %5252 = vmatprep.subr.bf16.mxu0 %v6294_v15 }
0x13d5   : > { %5243 = vmatmul.mubr.msk.bf16.vlgmr.msra.gmra.mrb[36].mxu0 %vm1219_vm6, %v2437_v62 }
0x13d6   : > { %5253 = vmatpush3.bf16.xpose.msra.mxu0 %v2569_v63  ;;  %5254 = vmatprep.mubr.msk.bf16.mxu0 %vm5771_vm1, %v6294_v15 }
0x13d7   : > { %5264 = vmatprep.subr.bf16.mxu0 %v6294_v15 }
0x13dd   : > { %5255 = vmatmul.mubr.msk.bf16.vlgmr.msra.gmra.mrb[40].mxu0 %vm1219_vm6, %v2562_v0 }
0x13de   : > { %5268 = vmatprep.mubr.msk.bf16.mxu0 %vm5771_vm1, %v6294_v15 }
0x1498   : > { %v6352_v17 = vpop.f32.mrb[28].mxu0 }
0x1499   : > { %v5226_v1 = vpop.f32.mrb[29].mxu0 }
0x149a   : > { %v6354_v2 = vpop.f32.mrb[30].mxu0 }
0x149b   : > { %v5227_v3 = vpop.f32.mrb[31].mxu0 }
0x14a0   : > { %v2355_v4 = vpop.f32.mrb[32].mxu0 }
0x14a1   : > { %v2362_v5 = vmul.f32 0.35355338, %v2355_v4  ;;  %v5232_v7 = vpop.f32.mrb[33].mxu0 }
0x14a2   : > { %v2358_v9 = vpop.f32.mrb[34].mxu0 }
0x14a3   : > { %v2363_v10 = vmul.f32 0.35355338, %v2358_v9  ;;  %v5233_v12 = vpop.f32.mrb[35].mxu0  ;;  %v2364_v13 = vsel %vm1269_vm7, %v2362_v5, -1e+30 }
0x14a4   : > { %v2366_v14 = vsel %vm1272_vm8, %v2364_v13, -inf }
0x14a5   : > { %2367 = vmax.xlane.f32.xlu0 %v2366_v14  ;;  %v2365_v16 = vsel %vm1269_vm7, %v2363_v10, -1e+30 }
0x14a6   : > { %v2369_v18 = vsel %vm1272_vm8, %v2365_v16, -inf }
0x14a7   : > { %2370 = vmax.xlane.f32.xlu1 %v2369_v18 }
0x14a8   : > { %v2480_v19 = vpop.f32.mrb[36].mxu0 }
0x14a9   : > { %v2487_v20 = vmul.f32 0.35355338, %v2480_v19  ;;  %v5244_v8 = vpop.f32.mrb[37].mxu0 }
0x14aa   : > { %v2483_v6 = vpop.f32.mrb[38].mxu0 }
0x14ab   : > { %v2488_v21 = vmul.f32 0.35355338, %v2483_v6  ;;  %v5245_v23 = vpop.f32.mrb[39].mxu0  ;;  %v2489_v25 = vsel %vm1269_vm7, %v2487_v20, -1e+30 }
0x14ac   : > { %v2491_v26 = vsel %vm1272_vm8, %v2489_v25, -inf }
0x14ad   : > { %2492 = vmax.xlane.f32.xlu0 %v2491_v26  ;;  %v2490_v27 = vsel %vm1269_vm7, %v2488_v21, -1e+30 }
0x14ae   : > { %v2494_v29 = vsel %vm1272_vm8, %v2490_v27, -inf }
0x14b0   : > { %v2605_v28 = vpop.f32.mrb[40].mxu0 }
0x14b1   : > { %v2612_v30 = vmul.f32 0.35355338, %v2605_v28  ;;  %2495 = vmax.xlane.f32.xlu0 %v2494_v29  ;;  %v5256_v54 = vpop.f32.mrb[41].mxu0 }
0x14b2   : > { %v2608_v31 = vpop.f32.mrb[42].mxu0 }
0x14b3   : > { %v2613_v33 = vmul.f32 0.35355338, %v2608_v31  ;;  %v5257_v34 = vpop.f32.mrb[43].mxu0  ;;  %v2614_v35 = vsel %vm1269_vm7, %v2612_v30, -1e+30 }
0x14b4   : > { %v2616_v37 = vsel %vm1272_vm8, %v2614_v35, -inf }
0x14b5   : > { %2617 = vmax.xlane.f32.xlu0 %v2616_v37  ;;  %v2615_v38 = vsel %vm1269_vm7, %v2613_v33, -1e+30 }
0x14b6   : > { %v2619_v39 = vsel %vm1272_vm8, %v2615_v38, -inf }
0x14b7   : > { %2620 = vmax.xlane.f32.xlu1 %v2619_v39 }
0x1532   : > { %v2368_v40 = vpop.xlane.xlu0 %2367 }
0x1533   : > { %v2372_v41 = vsub.f32 %v2364_v13, %v2368_v40  ;;  %v5557_v40 = vld [vmem:[%s6984_s13 + $0x10] sm:$0xff]  }
0x1534   : > { %v2371_v42 = vpop.xlane.xlu1 %2370  ;;  %5265 = vmatpush3.bf16.msra.mxu0 %v5557_v40 }
0x1535   : > { %v2374_v44 = vmul.f32 1.442695, %v2372_v41  ;;  %v2373_v47 = vsub.f32 %v2365_v16, %v2371_v42  ;;  %5266 = vmatprep.subr.bf16.mxu0 %v6294_v15 }
0x1537   : > { %5657 = vpow2.f32 %v2374_v44  ;;  %v2376_v43 = vmul.f32 1.442695, %v2373_v47 }
0x1539   : > { %5659 = vpow2.f32 %v2376_v43 }
0x153a   : > { %v2493_v24 = vpop.xlane.xlu0 %2492 }
0x153b   : > { %v2497_v48 = vsub.f32 %v2489_v25, %v2493_v24 }
0x153d   : > { %v2499_v32 = vmul.f32 1.442695, %v2497_v48 }
0x153e   : > { %v2496_v49 = vpop.xlane.xlu0 %2495 }
0x153f   : > { %5661 = vpow2.f32 %v2499_v32  ;;  %v2498_v50 = vsub.f32 %v2490_v27, %v2496_v49  ;;  %v5558_v32 = vld [vmem:[%s6984_s13 + $0x18] sm:$0xff]  }
0x1540   : > { %5267 = vmatpush3.bf16.msra.mxu0 %v5558_v32  ;;  %v4844_v32 = vld [vmem:[%s6983_s8 + $0x7] ss:$0 sm:$0xff] }
0x1541   : > { %v5658_v51 = vpop.eup %5657  ;;  %v2501_v52 = vmul.f32 1.442695, %v2498_v50  ;;  %5280 = vmatprep.subr.bf16.mxu0 %v6294_v15 }
0x1542   : > { %v2618_v53 = vpop.xlane.xlu0 %2617  ;;  %v2378_v55 = vsel %vm1272_vm8, %v5658_v51, 0.0 }
0x1543   : > { %v5660_v56 = vpop.eup %5659  ;;  %5663 = vpow2.f32 %v2501_v52  ;;  %v2622_v57 = vsub.f32 %v2614_v35, %v2618_v53  ;;  %2379 = vadd.xlane.f32.xlu0 %v2378_v55 }
0x1544   : > { %v2381_v58 = vsel %vm1272_vm8, %v5660_v56, 0.0  ;;  %v2621_v3 = vpop.xlane.xlu1 %2620 }
0x1545   : > { %v2624_v59 = vmul.f32 1.442695, %v2622_v57  ;;  %2382 = vadd.xlane.f32.xlu1 %v2381_v58  ;;  %v2623_v4 = vsub.f32 %v2615_v38, %v2621_v3 }
0x1547   : > { %5665 = vpow2.f32 %v2624_v59  ;;  %v2626_v5 = vmul.f32 1.442695, %v2623_v4 }
0x1549   : > { %v5662_v60 = vpop.eup %5661  ;;  %5667 = vpow2.f32 %v2626_v5 }
0x154a   : > { %v2503_v61 = vsel %vm1272_vm8, %v5662_v60, 0.0 }
0x154b   : > { %2504 = vadd.xlane.f32.xlu0 %v2503_v61 }
0x154d   : > { %v5664_v62 = vpop.eup %5663 }
0x154e   : > { %v2506_v63 = vsel %vm1272_vm8, %v5664_v62, 0.0 }
0x154f   : > { %2507 = vadd.xlane.f32.xlu1 %v2506_v63 }
0x1551   : > { %v5666_v0 = vpop.eup %5665 }
0x1552   : > { %v2628_v1 = vsel %vm1272_vm8, %v5666_v0, 0.0 }
0x1553   : > { %2629 = vadd.xlane.f32.xlu0 %v2628_v1  ;;  %v5668_v7 = vpop.eup %5667 }
0x1554   : > { %v2631_v9 = vsel %vm1272_vm8, %v5668_v7, 0.0 }
0x1560   : > { %2514 = vrot.lane.b32.xlu1 %v6301_v22, %s6995_s10  ;;  %s6999_s10 = smov 16  }
0x1569   : > { %2389 = vrot.lane.b32.xlu0 %v6301_v22, %s6996_s11 }
0x1584   : > { %2632 = vadd.xlane.f32.xlu1 %v2631_v9 }
0x1595   : > { %2639 = vrot.lane.b32.xlu1 %v6301_v22, %s6997_s27  ;;  %s6998_s27 = smov 8  }
0x15d0   : > { %v2380_v12 = vpop.xlane.xlu0 %2379 }
0x15d2   : > { %v2383_v10 = vpop.xlane.xlu1 %2382 }
0x15d3   : > { %5669 = vrcp.f32 %v2383_v10 }
0x15d4   : > { %5671 = vrcp.f32 %v2380_v12 }
0x15d8   : > { %v2505_v13 = vpop.xlane.xlu0 %2504 }
0x15dc   : > { %v2508_v14 = vpop.xlane.xlu1 %2507 }
0x15dd   : > { %5673 = vrcp.f32 %v2508_v14  ;;  %v5670_v16 = vpop.eup %5669 }
0x15de   : > { %5675 = vrcp.f32 %v2505_v13  ;;  %v5672_v19 = vpop.eup %5671  ;;  %v2387_v20 = vmul.f32 %v5670_v16, %v5660_v56 }
0x15df   : > { %v2386_v8 = vmul.f32 %v5672_v19, %v5658_v51 }
0x15e0   : > { %v2630_v18 = vpop.xlane.xlu0 %2629  ;;  %v2515_v22 = vpop.permute.xlu1 %2514 }
0x15e1   : > { %v2388_v21 = vpack.c.bf16 %v2387_v20, %v2386_v8  ;;  %5677 = vrcp.f32 %v2630_v18 }
0x15e4   : > { %v2390_v6 = vpop.permute.xlu0 %2389 }
0x15e5   : > { %5235 = vmatpush3.bf16.msra.mxu1 %v2390_v6 }
0x15e6   : > { %5246 = vmatprep.subr.bf16.mxu1 %v6294_v15 }
0x15e7   : > { %v5674_v23 = vpop.eup %5673 }
0x15e8   : > { %5237 = vmatmul.mubr.msk.bf16.vlgmr.msra.gmra.mrb[36].mxu1 %vm1272_vm8, %v2388_v21  ;;  %v5676_v25 = vpop.eup %5675  ;;  %v2512_v26 = vmul.f32 %v5674_v23, %v5664_v62 }
0x15e9   : > { %5247 = vmatpush3.bf16.msra.mxu1 %v2515_v22  ;;  %5248 = vmatprep.mubr.msk.bf16.mxu1 %vm5771_vm1, %v6294_v15  ;;  %v2511_v27 = vmul.f32 %v5676_v25, %v5662_v60  ;;  %v5560_v22 = vld [vmem:[%s6986_s15 + $0x18] sm:$0xff]  }
0x15ea   : > { %5258 = vmatprep.subr.bf16.mxu1 %v6294_v15 }
0x15eb   : > { %v2513_v28 = vpack.c.bf16 %v2512_v26, %v2511_v27  ;;  %v5678_v54 = vpop.eup %5677 }
0x15ec   : > { %v2636_v33 = vmul.f32 %v5678_v54, %v5666_v0 }
0x15f0   : > { %5249 = vmatmul.mubr.msk.bf16.vlgmr.msra.gmra.mrb[40].mxu1 %vm1272_vm8, %v2513_v28 }
0x15f1   : > { %5260 = vmatprep.mubr.msk.bf16.mxu1 %vm5771_vm1, %v6294_v15 }
0x1611   : > { %v2633_v29 = vpop.xlane.xlu1 %2632 }
0x1612   : > { %5679 = vrcp.f32 %v2633_v29 }
0x1615   : > { %v2640_v30 = vpop.permute.xlu1 %2639 }
0x1616   : > { %5259 = vmatpush3.bf16.msra.mxu1 %v2640_v30 }
0x1617   : > { %5272 = vmatprep.subr.bf16.mxu1 %v6294_v15 }
0x161c   : > { %v5680_v31 = vpop.eup %5679 }
0x161d   : > { %v2637_v34 = vmul.f32 %v5680_v31, %v5668_v7 }
0x161f   : > { %v2638_v35 = vpack.c.bf16 %v2637_v34, %v2636_v33 }
0x1621   : > { %5261 = vmatmul.mubr.msk.bf16.vlgmr.msra.gmra.mrb[44].mxu1 %vm1272_vm8, %v2638_v35 }
0x1622   : > { %5276 = vmatprep.mubr.msk.bf16.mxu1 %vm5771_vm1, %v6294_v15 }
0x16bb   : > { %v2429_v37 = vpop.f32.mrb[36].mxu1 }
0x16bc   : > { %v5238_v38 = vpop.f32.mrb[37].mxu1 }
0x16bd   : > { %v2432_v39 = vpop.f32.mrb[38].mxu1 }
0x16be   : > { %v5497_v41 = vpack.i.bf16 %v2432_v39, %v2429_v37  ;;  %v5239_v42 = vpop.f32.mrb[39].mxu1 }
0x16c0   : > { %5498 = vrot.lane.b32.xlu1 %v5497_v41, %s6998_s27 }
0x16c3   : > { %v2554_v44 = vpop.f32.mrb[40].mxu1 }
0x16c4   : > { %v5250_v47 = vpop.f32.mrb[41].mxu1 }
0x16c5   : > { %v2557_v43 = vpop.f32.mrb[42].mxu1 }
0x16c6   : > { %v5502_v24 = vpack.i.bf16 %v2557_v43, %v2554_v44  ;;  %v5251_v48 = vpop.f32.mrb[43].mxu1  ;;  %v4843_v44 = vld [vmem:[%s6983_s8 + $0x6] ss:$0 sm:$0xff] }
0x16c8   : > { %5503 = vrot.lane.b32.xlu0 %v5502_v24, %s6999_s10 }
0x16f4   : > { %v2679_v49 = vpop.f32.mrb[44].mxu1 }
0x16f5   : > { %v5262_v50 = vpop.f32.mrb[45].mxu1 }
0x16f6   : > { %v2682_v51 = vpop.f32.mrb[46].mxu1 }
0x16f7   : > { %v5507_v52 = vpack.i.bf16 %v2682_v51, %v2679_v49  ;;  %v5263_v53 = vpop.f32.mrb[47].mxu1 }
0x16f9   : > { %5508 = vrot.lane.b32.xlu1 %v5507_v52, %s7000_s7  ;;  %v5561_v52 = vld [vmem:[%s6908_s19] sm:$0xff]   ;;  %s7009_s7 = smov 8  }
0x1732   : > { %v5499_v55 = vpop.permute.xlu1 %5498 }
0x1733   : > { %v5501_v57 = vunpack.i.h.bf16 %v5499_v55  ;;  %v5500_v58 = vunpack.i.l.bf16 %v5499_v55 }
0x1735   : > { %v2711_v62 = vsel %vm1219_vm6, %v6354_v2, %v5501_v57  ;;  %v2710_v63 = vsel %vm1219_vm6, %v6352_v17, %v5500_v58  ;;  %v4842_v17 = vld [vmem:[%s6985_s14 + $0x1] ss:$0 sm:$0xff]  ;;  %v5563_v58 = vld [vmem:[%s6906_s17 + $0x48] sm:$0xff]   ;;  %s7010_s14 = smov 16  }
0x1736   : > { %v5562_v57 = vld [vmem:[%s6906_s17 + $0x40] sm:$0xff]  }
0x173a   : > { %v5504_v56 = vpop.permute.xlu0 %5503 }
0x173b   : > { %v5506_v59 = vunpack.i.h.bf16 %v5504_v56  ;;  %v5505_v60 = vunpack.i.l.bf16 %v5504_v56 }
0x173d   : > { %v2712_v3 = vsel %vm1272_vm8, %v2710_v63, %v5505_v60  ;;  %v2713_v4 = vsel %vm1272_vm8, %v2711_v62, %v5506_v59  ;;  %v5564_v59 = vld [vmem:[%s6906_s17 + $0x50] sm:$0xff]   ;;  %v5565_v60 = vld [vmem:[%s6906_s17 + $0x58] sm:$0xff]   ;;  %v5567_v62 = vld [vmem:[%s6906_s17 + $0x68] sm:$0xff]  }
0x173e   : > { %v5569_v63 = vld [vmem:[%s6906_s17 + $0x70] sm:$0xff]  }
0x176b   : > { %v5509_v61 = vpop.permute.xlu1 %5508 }
0x176c   : > { %v5511_v0 = vunpack.i.h.bf16 %v5509_v61  ;;  %v5510_v1 = vunpack.i.l.bf16 %v5509_v61  ;;  %v5566_v61 = vld [vmem:[%s6906_s17 + $0x60] sm:$0xff]  }
0x176e   : > { %v2714_v5 = vsel %vm1746_vm9, %v2712_v3, %v5510_v1  ;;  %v2715_v7 = vsel %vm1746_vm9, %v2713_v4, %v5511_v0  ;;  %v5570_v0 = vld [vmem:[%s6906_s17 + $0x78] sm:$0xff]   ;;  %v4850_v1 = vld [vmem:[%s6905_s16 + $0x1] ss:$0 sm:$0xff] }
0x176f   : > { %v2721_v9 = vpack.c.bf16 %v2715_v7, %v2714_v5 }
0x1771   : > { %5269 = vmatmul.mubr.msk.bf16.vlgmr.msra.gmra.mrb[44].mxu0 %vm1051_vm4, %v2721_v9 }
0x1772   : > { %5296 = vmatprep.mubr.msk.bf16.mxu0 %vm5771_vm1, %v6294_v15  ;;  %5281 = vmatpush3.bf16.msra.mxu0 %v5562_v57 }
0x1773   : > { %5282 = vmatprep.subr.bf16.mxu0 %v6294_v15 }
0x1776   : > { %5283 = vmatpush3.bf16.msra.mxu0 %v5563_v58 }
0x1777   : > { %5284 = vmatprep.subr.bf16.mxu0 %v6294_v15 }
0x177a   : > { %5285 = vmatpush3.bf16.msra.mxu0 %v5564_v59 }
0x177b   : > { %5286 = vmatprep.subr.bf16.mxu0 %v6294_v15 }
0x177e   : > { %5287 = vmatpush3.bf16.msra.mxu0 %v5565_v60 }
0x177f   : > { %5288 = vmatprep.subr.bf16.mxu0 %v6294_v15 }
0x1782   : > { %5289 = vmatpush3.bf16.msra.mxu0 %v5566_v61 }
0x1783   : > { %5290 = vmatprep.subr.bf16.mxu0 %v6294_v15 }
0x1786   : > { %5291 = vmatpush3.bf16.msra.mxu0 %v5567_v62 }
0x1787   : > { %5292 = vmatprep.subr.bf16.mxu0 %v6294_v15 }
0x178a   : > { %5293 = vmatpush3.bf16.msra.mxu0 %v5569_v63 }
0x178b   : > { %5294 = vmatprep.subr.bf16.mxu0 %v6294_v15 }
0x178e   : > { %5295 = vmatpush3.bf16.msra.mxu0 %v5570_v0 }
0x178f   : > { %5328 = vmatprep.subr.bf16.mxu0 %v6294_v15 }
0x1844   : > { %v2771_v2 = vpop.f32.mrb[44].mxu0 }
0x1845   : > { %v2778_v10 = vadd.f32 %v2771_v2, %v6269_v45  ;;  %v5270_v12 = vpop.f32.mrb[45].mxu0 }
0x1846   : > { %v2774_v13 = vpop.f32.mrb[46].mxu0 }
0x1847   : > { %v6424_v14 = vadd.f32 %v4842_v17, %v2778_v10  ;;  %v2779_v16 = vadd.f32 %v6248_v11, %v2774_v13  ;;  %v5271_v18 = vpop.f32.mrb[47].mxu0  ;;  %v5559_v11 = vld [vmem:[%s6986_s15 + $0x10] sm:$0xff]   ;;  %s4754_s15 = sshll.u32 %s7018_s4, 1  ;;  %v4882_v13 = vld [vmem:[%s6909_s20] ss:$0 sm:$0xff] }
0x1848   : > { %5273 = vmatpush3.bf16.msra.mxu1 %v5559_v11  ;;  %s830_s13 = scalar_lea.vmem %s7001_s5, %s4754_s15  ;;  %s7002_s15 = sld [smem:[#allocation7_spill]]  ;;  %v5571_v11 = vld [vmem:[%s6910_s21] sm:$0xff]  }
0x1849   : > { %v2789_v19 = vadd.f32 %v4842_v17, %v2779_v16  ;;  %v2790_v20 = vsel %vm1051_vm4, %v6424_v14, 0.0  ;;  %v2798_v8 = vmul.f32 %v6424_v14, %v6424_v14  ;;  %5274 = vmatprep.subr.bf16.mxu1 %v6294_v15  ;;  %v3037_v55 = vld [vmem:[%s830_s13] sm:$0x3]  ;;  %s7008_s13 = sld [smem:[#allocation15_spill]]  ;;  %s7011_s5 = smov 24  }
0x184a   : > { %2791 = vadd.xlane.f32.xlu0 %v2790_v20  ;;  %v3040_v56 = vpack.c.bf16 %v3037_v55, %v3037_v55 }
0x184b   : > { %v2793_v6 = vsel %vm1051_vm4, %v2789_v19, 0.0  ;;  %v2800_v45 = vsel %vm1051_vm4, %v2798_v8, 0.0  ;;  %v2799_v21 = vmul.f32 %v2789_v19, %v2789_v19 }
0x184c   : > { %2794 = vadd.xlane.f32.xlu1 %v2793_v6  ;;  %5275 = vmatpush3.bf16.msra.mxu1 %v5560_v22 }
0x184d   : > { %v2803_v23 = vsel %vm1051_vm4, %v2799_v21, 0.0  ;;  %5300 = vmatprep.subr.bf16.mxu1 %v6294_v15 }
0x184e   : > { %2801 = vadd.xlane.f32.xlu0 %v2800_v45 }
0x1852   : > { %2804 = vadd.xlane.f32.xlu0 %v2803_v23  ;;  %v5568_v23 = vld [vmem:[%s7002_s15] sm:$0xff]   ;;  %s7012_s15 = sld [smem:[#allocation16_spill]] }
0x18d7   : > { %v2792_v25 = vpop.xlane.xlu0 %2791 }
0x18d8   : > { %v2796_v26 = vmul.f32 0.03125, %v2792_v25 }
0x18d9   : > { %v2795_v27 = vpop.xlane.xlu1 %2794 }
0x18da   : > { %v2808_v29 = vmul.f32 %v2796_v26, %v2796_v26  ;;  %v2797_v30 = vmul.f32 0.03125, %v2795_v27  ;;  %v2812_v40 = vsub.f32 %v6424_v14, %v2796_v26 }
0x18db   : > { %v2802_v28 = vpop.xlane.xlu0 %2801 }
0x18dc   : > { %v2806_v54 = vmul.f32 0.03125, %v2802_v28  ;;  %v2809_v34 = vmul.f32 %v2797_v30, %v2797_v30  ;;  %v2813_v47 = vsub.f32 %v2789_v19, %v2797_v30 }
0x18de   : > { %v2810_v31 = vsub.f32 %v2806_v54, %v2808_v29 }
0x18df   : > { %v2805_v33 = vpop.xlane.xlu0 %2804 }
0x18e0   : > { %v2814_v35 = vadd.f32 1e-05, %v2810_v31  ;;  %v2807_v37 = vmul.f32 0.03125, %v2805_v33  ;;  %v5572_v33 = vld [vmem:[%s6910_s21 + $0x8] sm:$0xff]  }
0x18e2   : > { %5681 = vrsqrt.f32 %v2814_v35  ;;  %v2811_v38 = vsub.f32 %v2807_v37, %v2809_v34 }
0x18e4   : > { %v2815_v39 = vadd.f32 1e-05, %v2811_v38  ;;  %v5573_v38 = vld [vmem:[%s6911_s22] sm:$0xff]  }
0x18e6   : > { %5683 = vrsqrt.f32 %v2815_v39 }
0x18ec   : > { %v5682_v41 = vpop.eup %5681 }
0x18ed   : > { %v2818_v42 = vmul.f32 %v5682_v41, %v2812_v40  ;;  %v5574_v41 = vld [vmem:[%s6911_s22 + $0x8] sm:$0xff]  }
0x18ef   : > { %v2824_v48 = vmul.f32 %v4843_v44, %v2818_v42 }
0x18f0   : > { %v5684_v43 = vpop.eup %5683 }
0x18f1   : > { %v2819_v24 = vmul.f32 %v5684_v43, %v2813_v47  ;;  %v2830_v50 = vadd.f32 %v4844_v32, %v2824_v48 }
0x18f3   : > { %v2825_v49 = vmul.f32 %v4843_v44, %v2819_v24  ;;  %v4881_v44 = vld [vmem:[%s6907_s18 + $0x1] ss:$0 sm:$0xff] }
0x18f4   : > { %v3154_v24 = vld [vmem:[%s6915_s26] sm:$0xff] }
0x18f5   : > { %v2831_v51 = vadd.f32 %v4844_v32, %v2825_v49  ;;  %v3155_v49 = vld [vmem:[%s6915_s26 + $0x8] sm:$0xff] }
0x18f7   : > { %v2837_v53 = vpack.c.bf16 %v2831_v51, %v2830_v50 }
0x18f9   : > { %5277 = vmatmul.mubr.msk.bf16.vlgmr.msra.gmra.mrb[48].mxu1 %vm1051_vm4, %v2837_v53 }
0x18fa   : > { %5301 = vmatpush3.bf16.msra.mxu1 %v5561_v52  ;;  %5302 = vmatprep.mubr.msk.bf16.mxu1 %vm5771_vm1, %v6294_v15 }
0x18fb   : > { %5306 = vmatprep.subr.bf16.mxu1 %v6294_v15 }
0x1901   : > { %5303 = vmatmul.mubr.msk.bf16.vlgmr.msra.gmra.mrb[52].mxu1 %vm1272_vm8, %v3040_v56 }
0x1902   : > { %5308 = vmatprep.mubr.msk.bf16.mxu1 %vm5771_vm1, %v6294_v15 }
0x19cc   : > { %v2895_v3 = vpop.f32.mrb[48].mxu1 }
0x19cd   : > { %v2896_v4 = vadd.f32 %v4850_v1, %v2895_v3  ;;  %v5278_v5 = vpop.f32.mrb[49].mxu1 }
0x19ce   : > { %v2898_v7 = vpop.f32.mrb[50].mxu1 }
0x19cf   : > { %v4854_v9 = vmul.f32 -1.702, %v2896_v4  ;;  %v2899_v2 = vadd.f32 %v4850_v1, %v2898_v7  ;;  %v5279_v17 = vpop.f32.mrb[51].mxu1 }
0x19d1   : > { %v2906_v10 = vmul.f32 1.442695, %v4854_v9  ;;  %v4855_v12 = vmul.f32 -1.702, %v2899_v2 }
0x19d3   : > { %5685 = vpow2.f32 %v2906_v10  ;;  %v2908_v16 = vmul.f32 1.442695, %v4855_v12 }
0x19d4   : > { %v3091_v18 = vpop.f32.mrb[52].mxu1 }
0x19d5   : > { %5687 = vpow2.f32 %v2908_v16  ;;  %v3092_v19 = vadd.f32 %v4882_v13, %v3091_v18  ;;  %v5304_v20 = vpop.f32.mrb[53].mxu1 }
0x19d6   : > { %v3094_v8 = vpop.f32.mrb[54].mxu1 }
0x19d7   : > { %v3099_v6 = vpack.c.bf16 %v3092_v19, %v3092_v19  ;;  %v5305_v45 = vpop.f32.mrb[55].mxu1 }
0x19d9   : > { %v3111_v21 = vsel %vm3109_vm10, %v3099_v6, 0 }
0x19da   : > { %5307 = vmatpush3.bf16.msra.mxu1 %v3111_v21 }
0x19db   : > { %5312 = vmatprep.subr.bf16.mxu1 %v6294_v15 }
0x19dd   : > { %v5686_v22 = vpop.eup %5685  ;;  %5309 = vmatmul.mubr.msk.bf16.vlgmr.msra.gmra.mrb[56].mxu1 %vm3105_vm11, %v5568_v23  ;;  %v5575_v23 = vld [vmem:[%s6912_s23] sm:$0xff]  }
0x19de   : > { %v2910_v25 = vadd.f32 1.0, %v5686_v22  ;;  %5313 = vmatpush3.bf16.msra.mxu1 %v5571_v11  ;;  %5316 = vmatprep.mubr.msk.bf16.mxu1 %vm5771_vm1, %v6294_v15 }
0x19df   : > { %v5688_v26 = vpop.eup %5687  ;;  %5314 = vmatprep.subr.bf16.mxu1 %v6294_v15 }
0x19e0   : > { %5689 = vrcp.f32 %v2910_v25  ;;  %v2911_v27 = vadd.f32 1.0, %v5688_v26 }
0x19e2   : > { %5691 = vrcp.f32 %v2911_v27  ;;  %5315 = vmatpush3.bf16.msra.mxu1 %v5572_v33 }
0x19e3   : > { %5320 = vmatprep.subr.bf16.mxu1 %v6294_v15 }
0x19ea   : > { %v5690_v28 = vpop.eup %5689 }
0x19eb   : > { %v2916_v30 = vmul.f32 %v5690_v28, %v2896_v4 }
0x19ec   : > { %v5692_v29 = vpop.eup %5691 }
0x19ed   : > { %v2917_v54 = vmul.f32 %v5692_v29, %v2899_v2 }
0x19ef   : > { %v2935_v31 = vpack.c.bf16 %v2917_v54, %v2916_v30  ;;  %v5576_v30 = vld [vmem:[%s6912_s23 + $0x8] sm:$0xff]  }
0x19f1   : > { %5297 = vmatmul.mubr.bf16.vlgmr.msra.gmra.mrb[48].mxu0 %v2935_v31 }
0x19f2   : > { %5330 = vmatprep.mubr.msk.bf16.mxu0 %vm5771_vm1, %v6294_v15 }
0x1ab0   : > { %v6517_v34 = vpop.f32.mrb[56].mxu1 }
0x1ab1   : > { %v5310_v35 = vpop.f32.mrb[57].mxu1 }
0x1ab2   : > { %v6519_v37 = vpop.f32.mrb[58].mxu1 }
0x1ab3   : > { %v3162_v39 = vpack.c.bf16 %v6519_v37, %v6517_v34  ;;  %v5311_v40 = vpop.f32.mrb[59].mxu1 }
0x1ab5   : > { %5317 = vmatmul.mubr.msk.bf16.vlgmr.msra.gmra.mrb[60].mxu1 %vm1051_vm4, %v3162_v39 }
0x1ab6   : > { %5321 = vmatpush3.bf16.msra.mxu1 %v5573_v38  ;;  %5324 = vmatprep.mubr.msk.bf16.mxu1 %vm5771_vm1, %v6294_v15 }
0x1ab7   : > { %5322 = vmatprep.subr.bf16.mxu1 %v6294_v15 }
0x1aba   : > { %5323 = vmatpush3.bf16.msra.mxu1 %v5574_v41 }
0x1abb   : > { %5334 = vmatprep.subr.bf16.mxu1 %v6294_v15 }
0x1ac4   : > { %v3018_v42 = vpop.f32.mrb[48].mxu0 }
0x1ac5   : > { %v3025_v47 = vadd.f32 %v3018_v42, %v6424_v14  ;;  %v5298_v43 = vpop.f32.mrb[49].mxu0 }
0x1ac6   : > { %v3021_v48 = vpop.f32.mrb[50].mxu0 }
0x1ac7   : > { %v6541_v32 = vadd.f32 %v4881_v44, %v3025_v47  ;;  %v5299_v50 = vpop.f32.mrb[51].mxu0 }
0x1ac9   : > { %v3156_v51 = vsel %vm1095_vm5, %v6541_v32, %v3154_v24 }
0x1aca   : > { %v3223_v52 = vpack.c.bf16 %v3155_v49, %v3156_v51 }
0x1acc   : > { %5325 = vmatmul.mubr.msk.bf16.vlgmr.msra.gmra.mrb[64].mxu1 %vm1051_vm4, %v3223_v52 }
0x1acd   : > { %5335 = vmatpush3.bf16.msra.mxu1 %v3223_v52  ;;  %5336 = vmatprep.mubr.msk.bf16.mxu1 %vm5771_vm1, %v6294_v15 }
0x1ace   : > { %5348 = vmatprep.subr.bf16.mxu1 %v6294_v15 }
0x1b88   : > { %v3212_v14 = vpop.f32.mrb[60].mxu1 }
0x1b89   : > { %v5318_v53 = vpop.f32.mrb[61].mxu1 }
0x1b8a   : > { %v3215_v55 = vpop.f32.mrb[62].mxu1 }
0x1b8b   : > { %v3280_v56 = vpack.c.bf16 %v3215_v55, %v3212_v14  ;;  %v5319_v57 = vpop.f32.mrb[63].mxu1 }
0x1b9f   : > { %v3273_v58 = vpop.f32.mrb[64].mxu1 }
0x1ba0   : > { %v5326_v59 = vpop.f32.mrb[65].mxu1 }
0x1ba1   : > { %v3276_v60 = vpop.f32.mrb[66].mxu1 }
0x1ba2   : > { %v3281_v61 = vpack.c.bf16 %v3276_v60, %v3273_v58  ;;  %v5327_v62 = vpop.f32.mrb[67].mxu1 }
0x1ba4   : > { %v3286_v63 = vsel %vm1051_vm4, %v3281_v61, 0 }
0x1ba5   : > { %5329 = vmatpush3.bf16.xpose.msra.mxu0 %v3286_v63 }
0x1ba6   : > { %5340 = vmatprep.subr.bf16.mxu0 %v6294_v15 }
0x1bac   : > { %5331 = vmatmul.mubr.msk.bf16.vlgmr.msra.gmra.mrb[52].mxu0 %vm1051_vm4, %v3280_v56 }
0x1bad   : > { %5344 = vmatprep.mubr.msk.bf16.mxu0 %vm5771_vm1, %v6294_v15  ;;  %5341 = vmatpush3.bf16.msra.mxu0 %v5575_v23 }
0x1bae   : > { %5342 = vmatprep.subr.bf16.mxu0 %v6294_v15 }
0x1bb1   : > { %5343 = vmatpush3.bf16.msra.mxu0 %v5576_v30  ;;  %v5580_v30 = vld [vmem:[%s6914_s25 + $0x8] sm:$0xff]  }
0x1bb2   : > { %5356 = vmatprep.subr.bf16.mxu0 %v6294_v15 }
0x1c7f   : > { %v3322_v0 = vpop.f32.mrb[52].mxu0 }
0x1c80   : > { %v3329_v1 = vmul.f32 0.17677669, %v3322_v0  ;;  %v5332_v3 = vpop.f32.mrb[53].mxu0 }
0x1c81   : > { %v3325_v4 = vpop.f32.mrb[54].mxu0 }
0x1c82   : > { %v3330_v5 = vmul.f32 0.17677669, %v3325_v4  ;;  %v5333_v7 = vpop.f32.mrb[55].mxu0  ;;  %v3332_v9 = vsel %vm3331_vm12, %v3329_v1, -1e+30 }
0x1c83   : > { %v3334_v2 = vsel %vm1272_vm8, %v3332_v9, -inf  ;;  %v4903_v1 = vld [vmem:[%s6913_s24 + $0x2] ss:$0 sm:$0xff]  ;;  %v4904_v7 = vld [vmem:[%s6913_s24 + $0x3] ss:$0 sm:$0xff] }
0x1c84   : > { %3335 = vmax.xlane.f32.xlu0 %v3334_v2  ;;  %v3333_v17 = vsel %vm3331_vm12, %v3330_v5, -1e+30 }
0x1c85   : > { %v3337_v10 = vsel %vm1272_vm8, %v3333_v17, -inf }
0x1c86   : > { %3338 = vmax.xlane.f32.xlu1 %v3337_v10 }
0x1d11   : > { %v3336_v12 = vpop.xlane.xlu0 %3335 }
0x1d12   : > { %v3340_v13 = vsub.f32 %v3332_v9, %v3336_v12 }
0x1d13   : > { %v3339_v16 = vpop.xlane.xlu1 %3338 }
0x1d14   : > { %v3342_v18 = vmul.f32 1.442695, %v3340_v13  ;;  %v3341_v19 = vsub.f32 %v3333_v17, %v3339_v16 }
0x1d16   : > { %5693 = vpow2.f32 %v3342_v18  ;;  %v3344_v20 = vmul.f32 1.442695, %v3341_v19 }
0x1d18   : > { %5695 = vpow2.f32 %v3344_v20 }
0x1d20   : > { %v5694_v8 = vpop.eup %5693 }
0x1d21   : > { %v3346_v6 = vsel %vm1272_vm8, %v5694_v8, 0.0 }
0x1d22   : > { %v5696_v45 = vpop.eup %5695  ;;  %3347 = vadd.xlane.f32.xlu0 %v3346_v6 }
0x1d23   : > { %v3349_v21 = vsel %vm1272_vm8, %v5696_v45, 0.0 }
0x1d24   : > { %3350 = vadd.xlane.f32.xlu1 %v3349_v21 }
0x1daf   : > { %v3348_v11 = vpop.xlane.xlu0 %3347 }
0x1db0   : > { %5697 = vrcp.f32 %v3348_v11 }
0x1db1   : > { %v3351_v22 = vpop.xlane.xlu1 %3350 }
0x1db2   : > { %5699 = vrcp.f32 %v3351_v22  ;;  %v5577_v22 = vld [vmem:[%s6982_s0 + $0x20] sm:$0xff]  }
0x1dba   : > { %v5698_v25 = vpop.eup %5697 }
0x1dbb   : > { %v6567_v27 = vmul.f32 %v5698_v25, %v5694_v8  ;;  %v6632_v25 = vld [vmem:[%s5981_s6] sm:$0xff] }
0x1dbc   : > { %v5700_v26 = vpop.eup %5699 }
0x1dbd   : > { %v6569_v28 = vmul.f32 %v5700_v26, %v5696_v45  ;;  %v5578_v26 = vld [vmem:[%s6982_s0 + $0x28] sm:$0xff]  }
0x1dbf   : > { %v3356_v29 = vpack.c.bf16 %v6569_v28, %v6567_v27 }
0x1dc1   : > { %5337 = vmatmul.mubr.msk.bf16.vlgmr.msra.gmra.mrb[68].mxu1 %vm1272_vm8, %v3356_v29  ;;  %v5579_v29 = vld [vmem:[%s6914_s25] sm:$0xff]  }
0x1dc2   : > { %5352 = vmatprep.mubr.msk.bf16.mxu1 %vm5771_vm1, %v6294_v15  ;;  %5349 = vmatpush3.bf16.msra.mxu1 %v5579_v29 }
0x1dc3   : > { %5350 = vmatprep.subr.bf16.mxu1 %v6632_v25 }
0x1dc6   : > { %5351 = vmatpush3.bf16.msra.mxu1 %v5580_v30 }
0x1dc7   : > { %5364 = vmatprep.subr.bf16.mxu1 %v6632_v25 }
0x1e94   : > { %v3394_v54 = vpop.f32.mrb[68].mxu1 }
0x1e95   : > { %v5338_v31 = vpop.f32.mrb[69].mxu1 }
0x1e96   : > { %v3397_v33 = vpop.f32.mrb[70].mxu1 }
0x1e97   : > { %v3405_v35 = vpack.c.bf16 %v3397_v33, %v3394_v54  ;;  %v5339_v38 = vpop.f32.mrb[71].mxu1 }
0x1e99   : > { %5345 = vmatmul.mubr.msk.bf16.vlgmr.msra.gmra.mrb[56].mxu0 %vm1051_vm4, %v3405_v35 }
0x1e9a   : > { %5360 = vmatprep.mubr.msk.bf16.mxu0 %vm5771_vm1, %v6294_v15  ;;  %5357 = vmatpush3.bf16.msra.mxu0 %v5577_v22  ;;  %v4916_v22 = vld [vmem:[%s6901_s12 + $0x2] ss:$0 sm:$0xff] }
0x1e9b   : > { %5358 = vmatprep.subr.bf16.mxu0 %v6632_v25 }
0x1e9e   : > { %5359 = vmatpush3.bf16.msra.mxu0 %v5578_v26 }
0x1e9f   : > { %5370 = vmatprep.subr.bf16.mxu0 %v6632_v25 }
0x1f6c   : > { %v6583_v39 = vpop.f32.mrb[56].mxu0 }
0x1f6d   : > { %v5346_v40 = vpop.f32.mrb[57].mxu0  ;;  %v3578_v41 = vadd.f32 %v6583_v39, %v6517_v34  ;;  %v3464_v8 = vsel %vm1051_vm4, %v6583_v39, 0.0  ;;  %v3472_v6 = vmul.f32 %v6583_v39, %v6583_v39 }
0x1f6e   : > { %v6587_v42 = vpop.f32.mrb[58].mxu0 }
0x1f6f   : > { %v5347_v44 = vpop.f32.mrb[59].mxu0  ;;  %v3582_v47 = vsel %vm1051_vm4, %v3578_v41, 0.0  ;;  %v3579_v43 = vadd.f32 %v6587_v42, %v6519_v37  ;;  %v3590_v24 = vmul.f32 %v3578_v41, %v3578_v41  ;;  %v3467_v45 = vsel %vm1051_vm4, %v6587_v42, 0.0 }
0x1f70   : > { %3583 = vadd.xlane.f32.xlu0 %v3582_v47  ;;  %v3473_v21 = vmul.f32 %v6587_v42, %v6587_v42  ;;  %v3474_v23 = vsel %vm1051_vm4, %v3472_v6, 0.0 }
0x1f71   : > { %v3585_v48 = vsel %vm1051_vm4, %v3579_v43, 0.0  ;;  %v3591_v49 = vmul.f32 %v3579_v43, %v3579_v43  ;;  %v3592_v15 = vsel %vm1051_vm4, %v3590_v24, 0.0 }
0x1f72   : > { %3586 = vadd.xlane.f32.xlu1 %v3585_v48  ;;  %v3477_v11 = vsel %vm1051_vm4, %v3473_v21, 0.0 }
0x1f73   : > { %v3595_v50 = vsel %vm1051_vm4, %v3591_v49, 0.0 }
0x1f74   : > { %3593 = vadd.xlane.f32.xlu0 %v3592_v15 }
0x1f76   : > { %3596 = vadd.xlane.f32.xlu1 %v3595_v50 }
0x1ffd   : > { %v3584_v34 = vpop.xlane.xlu0 %3583 }
0x1ffe   : > { %v3588_v51 = vmul.f32 0.03125, %v3584_v34 }
0x1fff   : > { %v3587_v52 = vpop.xlane.xlu1 %3586 }
0x2000   : > { %v3589_v14 = vmul.f32 0.03125, %v3587_v52  ;;  %v3600_v55 = vmul.f32 %v3588_v51, %v3588_v51  ;;  %v3604_v63 = vsub.f32 %v3578_v41, %v3588_v51 }
0x2001   : > { %v3594_v53 = vpop.xlane.xlu0 %3593 }
0x2002   : > { %v3598_v56 = vmul.f32 0.03125, %v3594_v53  ;;  %v3601_v57 = vmul.f32 %v3589_v14, %v3589_v14  ;;  %v3605_v3 = vsub.f32 %v3579_v43, %v3589_v14 }
0x2003   : > { %v3597_v37 = vpop.xlane.xlu1 %3596 }
0x2004   : > { %v3602_v58 = vsub.f32 %v3598_v56, %v3600_v55  ;;  %v3599_v59 = vmul.f32 0.03125, %v3597_v37 }
0x2006   : > { %v3606_v60 = vadd.f32 1e-05, %v3602_v58  ;;  %v3603_v61 = vsub.f32 %v3599_v59, %v3601_v57 }
0x2008   : > { %5701 = vrsqrt.f32 %v3606_v60  ;;  %v3607_v62 = vadd.f32 1e-05, %v3603_v61 }
0x200a   : > { %5703 = vrsqrt.f32 %v3607_v62 }
0x2012   : > { %v5702_v0 = vpop.eup %5701 }
0x2013   : > { %v3610_v4 = vmul.f32 %v5702_v0, %v3604_v63 }
0x2014   : > { %v5704_v5 = vpop.eup %5703 }
0x2015   : > { %v3616_v9 = vmul.f32 %v4903_v1, %v3610_v4  ;;  %v3611_v2 = vmul.f32 %v5704_v5, %v3605_v3 }
0x2017   : > { %v3622_v17 = vadd.f32 %v4904_v7, %v3616_v9  ;;  %v3617_v10 = vmul.f32 %v4903_v1, %v3611_v2  ;;  %v4909_v1 = vld [vmem:[%s6983_s8 + $0x8] ss:$0 sm:$0xff] }
0x2019   : > { %v6604_v12 = vsel %vm1095_vm5, %v6541_v32, %v3622_v17  ;;  %v6606_v13 = vadd.f32 %v4904_v7, %v3617_v10  ;;  %v4910_v7 = vld [vmem:[%s6983_s8 + $0x9] ss:$0 sm:$0xff] }
0x201a   : > { %v3633_v16 = vsel %vm1051_vm4, %v6604_v12, 0.0  ;;  %v3641_v18 = vmul.f32 %v6604_v12, %v6604_v12 }
0x201b   : > { %3634 = vadd.xlane.f32.xlu0 %v3633_v16  ;;  %v3636_v19 = vsel %vm1051_vm4, %v6606_v13, 0.0  ;;  %v3642_v20 = vmul.f32 %v6606_v13, %v6606_v13 }
0x201c   : > { %3637 = vadd.xlane.f32.xlu1 %v3636_v19  ;;  %v3643_v46 = vsel %vm1051_vm4, %v3641_v18, 0.0 }
0x201d   : > { %v3646_v32 = vsel %vm1051_vm4, %v3642_v20, 0.0 }
0x201f   : > { %3644 = vadd.xlane.f32.xlu0 %v3643_v46  ;;  %v4898_v46 = vld [vmem:[%s6913_s24] ss:$0 sm:$0xff] }
0x2020   : > { %3647 = vadd.xlane.f32.xlu1 %v3646_v32 }
0x2023   : > { %3465 = vadd.xlane.f32.xlu0 %v3464_v8 }
0x2024   : > { %3468 = vadd.xlane.f32.xlu1 %v3467_v45  ;;  %v4899_v45 = vld [vmem:[%s6913_s24 + $0x1] ss:$0 sm:$0xff] }
0x2027   : > { %3475 = vadd.xlane.f32.xlu0 %v3474_v23 }
0x2028   : > { %3478 = vadd.xlane.f32.xlu1 %v3477_v11 }
0x20a8   : > { %v3635_v54 = vpop.xlane.xlu0 %3634 }
0x20a9   : > { %v3639_v31 = vmul.f32 0.03125, %v3635_v54  ;;  %v3638_v33 = vpop.xlane.xlu1 %3637 }
0x20aa   : > { %v3640_v35 = vmul.f32 0.03125, %v3638_v33 }
0x20ab   : > { %v3651_v40 = vmul.f32 %v3639_v31, %v3639_v31  ;;  %v3655_v62 = vsub.f32 %v6604_v12, %v3639_v31 }
0x20ac   : > { %v3645_v38 = vpop.xlane.xlu0 %3644  ;;  %v3652_v47 = vmul.f32 %v3640_v35, %v3640_v35  ;;  %v3656_v0 = vsub.f32 %v6606_v13, %v3640_v35 }
0x20ad   : > { %v3649_v41 = vmul.f32 0.03125, %v3645_v38  ;;  %v3648_v44 = vpop.xlane.xlu1 %3647 }
0x20ae   : > { %v3650_v43 = vmul.f32 0.03125, %v3648_v44 }
0x20af   : > { %v3653_v24 = vsub.f32 %v3649_v41, %v3651_v40 }
0x20b0   : > { %v3654_v48 = vsub.f32 %v3650_v43, %v3652_v47  ;;  %v3466_v49 = vpop.xlane.xlu0 %3465 }
0x20b1   : > { %v3657_v15 = vadd.f32 1e-05, %v3653_v24  ;;  %v3470_v50 = vmul.f32 0.03125, %v3466_v49  ;;  %v3469_v34 = vpop.xlane.xlu1 %3468 }
0x20b2   : > { %v3658_v51 = vadd.f32 1e-05, %v3654_v48  ;;  %v3471_v52 = vmul.f32 0.03125, %v3469_v34 }
0x20b3   : > { %5705 = vrsqrt.f32 %v3657_v15  ;;  %v3482_v53 = vmul.f32 %v3470_v50, %v3470_v50  ;;  %v3486_v16 = vsub.f32 %v6583_v39, %v3470_v50 }
0x20b4   : > { %5707 = vrsqrt.f32 %v3658_v51  ;;  %v3476_v14 = vpop.xlane.xlu0 %3475  ;;  %v3483_v37 = vmul.f32 %v3471_v52, %v3471_v52  ;;  %v3487_v19 = vsub.f32 %v6587_v42, %v3471_v52 }
0x20b5   : > { %v3480_v55 = vmul.f32 0.03125, %v3476_v14  ;;  %v3479_v56 = vpop.xlane.xlu1 %3478 }
0x20b6   : > { %v3481_v57 = vmul.f32 0.03125, %v3479_v56 }
0x20b7   : > { %v3484_v58 = vsub.f32 %v3480_v55, %v3482_v53 }
0x20b8   : > { %v3485_v59 = vsub.f32 %v3481_v57, %v3483_v37 }
0x20b9   : > { %v3488_v60 = vadd.f32 1e-05, %v3484_v58 }
0x20ba   : > { %v3489_v61 = vadd.f32 1e-05, %v3485_v59 }
0x20bb   : > { %5709 = vrsqrt.f32 %v3488_v60 }
0x20bc   : > { %5711 = vrsqrt.f32 %v3489_v61 }
0x20bd   : > { %v5706_v63 = vpop.eup %5705 }
0x20be   : > { %v5708_v3 = vpop.eup %5707  ;;  %v3661_v4 = vmul.f32 %v5706_v63, %v3655_v62 }
0x20bf   : > { %v3662_v5 = vmul.f32 %v5708_v3, %v3656_v0 }
0x20c0   : > { %v3667_v9 = vmul.f32 %v4909_v1, %v3661_v4 }
0x20c1   : > { %v3668_v2 = vmul.f32 %v4909_v1, %v3662_v5 }
0x20c2   : > { %v3673_v17 = vadd.f32 %v4910_v7, %v3667_v9 }
0x20c3   : > { %v3674_v10 = vadd.f32 %v4910_v7, %v3668_v2 }
0x20c5   : > { %v5710_v18 = vpop.eup %5709  ;;  %v3680_v20 = vpack.c.bf16 %v3674_v10, %v3673_v17 }
0x20c6   : > { %v5712_v32 = vpop.eup %5711  ;;  %v3492_v8 = vmul.f32 %v5710_v18, %v3486_v16 }
0x20c7   : > { %v3493_v6 = vmul.f32 %v5712_v32, %v3487_v19  ;;  %5361 = vmatmul.mubr.msk.bf16.vlgmr.msra.gmra.mrb[60].mxu0 %vm1051_vm4, %v3680_v20 }
0x20c8   : > { %v3498_v21 = vmul.f32 %v4898_v46, %v3492_v8  ;;  %5372 = vmatprep.mubr.msk.bf16.mxu0 %vm5771_vm1, %v6632_v25 }
0x20c9   : > { %v3499_v39 = vmul.f32 %v4898_v46, %v3493_v6 }
0x20ca   : > { %v3504_v42 = vadd.f32 %v4899_v45, %v3498_v21 }
0x20cb   : > { %v3505_v23 = vadd.f32 %v4899_v45, %v3499_v39 }
0x20cd   : > { %v3510_v11 = vpack.c.bf16 %v3505_v23, %v3504_v42 }
0x20cf   : > { %5353 = vmatmul.mubr.msk.bf16.vlgmr.msra.gmra.mrb[72].mxu1 %vm1051_vm4, %v3510_v11 }
0x20d0   : > { %5366 = vmatprep.mubr.msk.bf16.mxu1 %vm5771_vm1, %v6632_v25 }
0x219a   : > { %v3738_v26 = vpop.f32.mrb[60].mxu0 }
0x219b   : > { %v5362_v29 = vpop.f32.mrb[61].mxu0  ;;  %v3739_v54 = vadd.f32 %v4916_v22, %v3738_v26 }
0x219c   : > { %v3741_v30 = vpop.f32.mrb[62].mxu0 }
0x219d   : > { %v3742_v31 = vadd.f32 %v4916_v22, %v3741_v30  ;;  %v5363_v33 = vpop.f32.mrb[63].mxu0 }
0x219f   : > { %v6672_v35 = vpack.c.bf16 %v3742_v31, %v3739_v54 }
0x21a1   : > { %3873 = vrot.lane.b32.xlu1 %v6672_v35, %s6988_s3  ;;  %3747 = vrot.lane.b32.xlu0 %v6672_v35, %s6987_s1  ;;  %s7003_s3 = smov 72   ;;  %s7005_s1 = smov 48  }
0x21a2   : > { %v6678_v38 = vpop.f32.mrb[72].mxu1 }
0x21a3   : > { %v5354_v40 = vpop.f32.mrb[73].mxu1 }
0x21a4   : > { %v6680_v41 = vpop.f32.mrb[74].mxu1 }
0x21a5   : > { %v5355_v44 = vpop.f32.mrb[75].mxu1  ;;  %3871 = vrot.lane.b32.xlu1 %v6672_v35, %s6989_s30  ;;  %3996 = vrot.lane.b32.xlu0 %v6672_v35, %s6993_s28  ;;  %s7006_s30 = smov 40  }
0x21a9   : > { %3998 = vrot.lane.b32.xlu1 %v6672_v35, %s6990_s2  ;;  %4121 = vrot.lane.b32.xlu0 %v6672_v35, %s6994_s9  ;;  %s7004_s9 = smov 64   ;;  %s7007_s2 = smov 56  }
0x21ad   : > { %4123 = vrot.lane.b32.xlu1 %v6672_v35, %s7003_s3 }
0x2213   : > { %v3748_v47 = vpop.permute.xlu0 %3747  ;;  %v3874_v24 = vpop.permute.xlu1 %3873 }
0x2214   : > { %v3753_v43 = vsel %vm1219_vm6, %v3748_v47, 0  ;;  %v3879_v49 = vsel %vm1219_vm6, %v3874_v24, 0 }
0x2215   : > { %5365 = vmatpush3.bf16.xpose.msra.mxu1 %v3753_v43 }
0x2216   : > { %5376 = vmatprep.subr.bf16.mxu1 %v6632_v25 }
0x2217   : > { %v3872_v48 = vpop.permute.xlu1 %3871  ;;  %v3997_v51 = vpop.permute.xlu0 %3996 }
0x221b   : > { %v3999_v15 = vpop.permute.xlu1 %3998  ;;  %v4122_v14 = vpop.permute.xlu0 %4121 }
0x221c   : > { %5367 = vmatmul.mubr.msk.bf16.vlgmr.msra.gmra.mrb[76].mxu1 %vm1219_vm6, %v6672_v35  ;;  %v4004_v50 = vsel %vm1219_vm6, %v3999_v15, 0 }
0x221d   : > { %5377 = vmatpush3.bf16.xpose.msra.mxu1 %v3879_v49  ;;  %5378 = vmatprep.mubr.msk.bf16.mxu1 %vm5771_vm1, %v6632_v25 }
0x221e   : > { %5388 = vmatprep.subr.bf16.mxu1 %v6632_v25 }
0x221f   : > { %v4124_v34 = vpop.permute.xlu1 %4123 }
0x2220   : > { %v4129_v52 = vsel %vm1219_vm6, %v4124_v34, 0 }
0x2224   : > { %5379 = vmatmul.mubr.msk.bf16.vlgmr.msra.gmra.mrb[80].mxu1 %vm1219_vm6, %v3872_v48 }
0x2225   : > { %5389 = vmatpush3.bf16.xpose.msra.mxu1 %v4004_v50  ;;  %5390 = vmatprep.mubr.msk.bf16.mxu1 %vm5771_vm1, %v6632_v25 }
0x2226   : > { %5400 = vmatprep.subr.bf16.mxu1 %v6632_v25 }
0x222c   : > { %5391 = vmatmul.mubr.msk.bf16.vlgmr.msra.gmra.mrb[84].mxu1 %vm1219_vm6, %v3997_v51 }
0x222d   : > { %5401 = vmatpush3.bf16.xpose.msra.mxu1 %v4129_v52  ;;  %5402 = vmatprep.mubr.msk.bf16.mxu1 %vm5771_vm1, %v6632_v25 }
0x222e   : > { %5412 = vmatprep.subr.bf16.mxu1 %v6632_v25 }
0x2234   : > { %5403 = vmatmul.mubr.msk.bf16.vlgmr.msra.gmra.mrb[88].mxu1 %vm1219_vm6, %v4122_v14 }
0x2235   : > { %5416 = vmatprep.mubr.msk.bf16.mxu1 %vm5771_vm1, %v6632_v25 }
0x22ef   : > { %v3789_v53 = vpop.f32.mrb[76].mxu1 }
0x22f0   : > { %v3796_v55 = vmul.f32 0.35355338, %v3789_v53  ;;  %v5368_v56 = vpop.f32.mrb[77].mxu1 }
0x22f1   : > { %v3792_v37 = vpop.f32.mrb[78].mxu1 }
0x22f2   : > { %v3799_v57 = vsel %vm3798_vm13, %v3796_v55, -1e+30  ;;  %v3797_v58 = vmul.f32 0.35355338, %v3792_v37  ;;  %v5369_v59 = vpop.f32.mrb[79].mxu1 }
0x22f3   : > { %v3801_v60 = vsel %vm1272_vm8, %v3799_v57, -inf }
0x22f4   : > { %v3800_v61 = vsel %vm3798_vm13, %v3797_v58, -1e+30  ;;  %3802 = vmax.xlane.f32.xlu1 %v3801_v60 }
0x22f5   : > { %v3804_v62 = vsel %vm1272_vm8, %v3800_v61, -inf }
0x22f6   : > { %3805 = vmax.xlane.f32.xlu0 %v3804_v62 }
0x22f7   : > { %v3915_v63 = vpop.f32.mrb[80].mxu1 }
0x22f8   : > { %v3922_v0 = vmul.f32 0.35355338, %v3915_v63  ;;  %v5380_v1 = vpop.f32.mrb[81].mxu1 }
0x22f9   : > { %v3918_v3 = vpop.f32.mrb[82].mxu1 }
0x22fa   : > { %v3924_v4 = vsel %vm3798_vm13, %v3922_v0, -1e+30  ;;  %v3923_v5 = vmul.f32 0.35355338, %v3918_v3  ;;  %v5381_v7 = vpop.f32.mrb[83].mxu1 }
0x22fb   : > { %v3926_v9 = vsel %vm1272_vm8, %v3924_v4, -inf }
0x22fc   : > { %v3925_v2 = vsel %vm3798_vm13, %v3923_v5, -1e+30  ;;  %3927 = vmax.xlane.f32.xlu0 %v3926_v9 }
0x22fd   : > { %v3929_v10 = vsel %vm1272_vm8, %v3925_v2, -inf }
0x22ff   : > { %v4040_v17 = vpop.f32.mrb[84].mxu1 }
0x2300   : > { %v4047_v16 = vmul.f32 0.35355338, %v4040_v17  ;;  %3930 = vmax.xlane.f32.xlu0 %v3929_v10  ;;  %v5392_v18 = vpop.f32.mrb[85].mxu1 }
0x2301   : > { %v4043_v19 = vpop.f32.mrb[86].mxu1 }
0x2302   : > { %v4049_v20 = vsel %vm3798_vm13, %v4047_v16, -1e+30  ;;  %v4048_v46 = vmul.f32 0.35355338, %v4043_v19  ;;  %v5393_v32 = vpop.f32.mrb[87].mxu1 }
0x2303   : > { %v4051_v8 = vsel %vm1272_vm8, %v4049_v20, -inf }
0x2304   : > { %v4050_v6 = vsel %vm3798_vm13, %v4048_v46, -1e+30  ;;  %4052 = vmax.xlane.f32.xlu1 %v4051_v8 }
0x2305   : > { %v4054_v45 = vsel %vm1272_vm8, %v4050_v6, -inf }
0x2306   : > { %4055 = vmax.xlane.f32.xlu0 %v4054_v45 }
0x2307   : > { %v4165_v21 = vpop.f32.mrb[88].mxu1 }
0x2308   : > { %v4172_v39 = vmul.f32 0.35355338, %v4165_v21  ;;  %v5404_v42 = vpop.f32.mrb[89].mxu1 }
0x2309   : > { %v4168_v23 = vpop.f32.mrb[90].mxu1 }
0x230a   : > { %v4174_v11 = vsel %vm3798_vm13, %v4172_v39, -1e+30  ;;  %v4173_v22 = vmul.f32 0.35355338, %v4168_v23  ;;  %v5405_v26 = vpop.f32.mrb[91].mxu1 }
0x230b   : > { %v4176_v29 = vsel %vm1272_vm8, %v4174_v11, -inf }
0x230c   : > { %v4175_v30 = vsel %vm3798_vm13, %v4173_v22, -1e+30  ;;  %4177 = vmax.xlane.f32.xlu1 %v4176_v29 }
0x230d   : > { %v4179_v54 = vsel %vm1272_vm8, %v4175_v30, -inf }
0x230e   : > { %4180 = vmax.xlane.f32.xlu0 %v4179_v54 }
0x231d   : > { %3824 = vrot.lane.b32.xlu1 %v6672_v35, %s7004_s9 }
0x2381   : > { %v3803_v31 = vpop.xlane.xlu1 %3802 }
0x2382   : > { %v3807_v33 = vsub.f32 %v3799_v57, %v3803_v31 }
0x2383   : > { %v3806_v40 = vpop.xlane.xlu0 %3805 }
0x2384   : > { %v3809_v44 = vmul.f32 1.442695, %v3807_v33  ;;  %v3808_v47 = vsub.f32 %v3800_v61, %v3806_v40 }
0x2386   : > { %5713 = vpow2.f32 %v3809_v44  ;;  %v3811_v43 = vmul.f32 1.442695, %v3808_v47 }
0x2388   : > { %5715 = vpow2.f32 %v3811_v43 }
0x2389   : > { %v3928_v24 = vpop.xlane.xlu0 %3927 }
0x238a   : > { %v3932_v48 = vsub.f32 %v3924_v4, %v3928_v24 }
0x238c   : > { %v3934_v49 = vmul.f32 1.442695, %v3932_v48 }
0x238d   : > { %v3931_v36 = vpop.xlane.xlu0 %3930 }
0x238e   : > { %5717 = vpow2.f32 %v3934_v49  ;;  %v3933_v15 = vsub.f32 %v3925_v2, %v3931_v36 }
0x2390   : > { %v5714_v50 = vpop.eup %5713  ;;  %v3936_v34 = vmul.f32 1.442695, %v3933_v15 }
0x2391   : > { %v4053_v51 = vpop.xlane.xlu1 %4052  ;;  %v3813_v52 = vsel %vm1272_vm8, %v5714_v50, 0.0 }
0x2392   : > { %v5716_v14 = vpop.eup %5715  ;;  %5719 = vpow2.f32 %v3936_v34  ;;  %v4057_v53 = vsub.f32 %v4049_v20, %v4053_v51  ;;  %3814 = vadd.xlane.f32.xlu1 %v3813_v52 }
0x2393   : > { %v4056_v55 = vpop.xlane.xlu0 %4055  ;;  %v3816_v56 = vsel %vm1272_vm8, %v5716_v14, 0.0 }
0x2394   : > { %v4059_v37 = vmul.f32 1.442695, %v4057_v53  ;;  %v4058_v57 = vsub.f32 %v4050_v6, %v4056_v55  ;;  %3817 = vadd.xlane.f32.xlu0 %v3816_v56 }
0x2396   : > { %5721 = vpow2.f32 %v4059_v37  ;;  %v4061_v58 = vmul.f32 1.442695, %v4058_v57 }
0x2398   : > { %v5718_v59 = vpop.eup %5717  ;;  %5723 = vpow2.f32 %v4061_v58 }
0x2399   : > { %v4178_v60 = vpop.xlane.xlu1 %4177  ;;  %v3938_v61 = vsel %vm1272_vm8, %v5718_v59, 0.0 }
0x239a   : > { %v4182_v62 = vsub.f32 %v4174_v11, %v4178_v60  ;;  %3939 = vadd.xlane.f32.xlu1 %v3938_v61 }
0x239b   : > { %v4181_v63 = vpop.xlane.xlu0 %4180 }
0x239c   : > { %v5720_v0 = vpop.eup %5719  ;;  %v4184_v1 = vmul.f32 1.442695, %v4182_v62  ;;  %v4183_v3 = vsub.f32 %v4175_v30, %v4181_v63 }
0x239d   : > { %v3825_v4 = vpop.permute.xlu1 %3824  ;;  %v3941_v5 = vsel %vm1272_vm8, %v5720_v0, 0.0 }
0x239e   : > { %5725 = vpow2.f32 %v4184_v1  ;;  %v4186_v7 = vmul.f32 1.442695, %v4183_v3  ;;  %5371 = vmatpush3.bf16.msra.mxu0 %v3825_v4  ;;  %3942 = vadd.xlane.f32.xlu0 %v3941_v5 }
0x239f   : > { %5382 = vmatprep.subr.bf16.mxu0 %v6632_v25 }
0x23a0   : > { %v5722_v9 = vpop.eup %5721  ;;  %5727 = vpow2.f32 %v4186_v7 }
0x23a1   : > { %v4063_v2 = vsel %vm1272_vm8, %v5722_v9, 0.0 }
0x23a2   : > { %v5724_v17 = vpop.eup %5723  ;;  %4064 = vadd.xlane.f32.xlu1 %v4063_v2 }
0x23a3   : > { %v4066_v10 = vsel %vm1272_vm8, %v5724_v17, 0.0 }
0x23a4   : > { %4067 = vadd.xlane.f32.xlu0 %v4066_v10 }
0x23a8   : > { %v5726_v16 = vpop.eup %5725 }
0x23a9   : > { %v4188_v18 = vsel %vm1272_vm8, %v5726_v16, 0.0 }
0x23aa   : > { %v5728_v19 = vpop.eup %5727  ;;  %4189 = vadd.xlane.f32.xlu1 %v4188_v18 }
0x23ab   : > { %v4191_v20 = vsel %vm1272_vm8, %v5728_v19, 0.0 }
0x23ac   : > { %4192 = vadd.xlane.f32.xlu0 %v4191_v20 }
0x23bb   : > { %4074 = vrot.lane.b32.xlu1 %v6672_v35, %s7005_s1  ;;  %s7013_s1 = sld [smem:[#allocation17_spill]] }
0x23bf   : > { %4199 = vrot.lane.b32.xlu1 %v6672_v35, %s7006_s30 }
0x23c2   : > { %3949 = vrot.lane.b32.xlu0 %v6672_v35, %s7007_s2 }
0x241f   : > { %v3815_v46 = vpop.xlane.xlu1 %3814 }
0x2420   : > { %5729 = vrcp.f32 %v3815_v46 }
0x2421   : > { %v3818_v32 = vpop.xlane.xlu0 %3817 }
0x2422   : > { %5731 = vrcp.f32 %v3818_v32 }
0x2427   : > { %v3940_v42 = vpop.xlane.xlu1 %3939 }
0x242a   : > { %v5730_v8 = vpop.eup %5729 }
0x242b   : > { %v3943_v6 = vpop.xlane.xlu0 %3942  ;;  %v3821_v21 = vmul.f32 %v5730_v8, %v5714_v50 }
0x242c   : > { %v5732_v45 = vpop.eup %5731  ;;  %5733 = vrcp.f32 %v3943_v6 }
0x242d   : > { %v3822_v39 = vmul.f32 %v5732_v45, %v5716_v14  ;;  %5735 = vrcp.f32 %v3940_v42 }
0x242f   : > { %v3823_v23 = vpack.c.bf16 %v3822_v39, %v3821_v21  ;;  %v4065_v35 = vpop.xlane.xlu1 %4064 }
0x2431   : > { %5373 = vmatmul.mubr.msk.bf16.vlgmr.msra.gmra.mrb[64].mxu0 %vm1272_vm8, %v3823_v23  ;;  %v4068_v11 = vpop.xlane.xlu0 %4067 }
0x2432   : > { %5384 = vmatprep.mubr.msk.bf16.mxu0 %vm5771_vm1, %v6632_v25  ;;  %5737 = vrcp.f32 %v4068_v11 }
0x2433   : > { %5739 = vrcp.f32 %v4065_v35 }
0x2436   : > { %v5734_v22 = vpop.eup %5733 }
0x2437   : > { %v5736_v29 = vpop.eup %5735  ;;  %v3947_v30 = vmul.f32 %v5734_v22, %v5720_v0  ;;  %v4190_v54 = vpop.xlane.xlu1 %4189  ;;  %v5582_v0 = vld [vmem:[%s7008_s13 + $0x28] sm:$0xff]  }
0x2438   : > { %v3946_v31 = vmul.f32 %v5736_v29, %v5718_v59  ;;  %v5581_v59 = vld [vmem:[%s7008_s13 + $0x20] sm:$0xff]   ;;  %s7015_s13 = sld [smem:[#allocation10_spill]] }
0x2439   : > { %v4193_v26 = vpop.xlane.xlu0 %4192  ;;  %5413 = vmatpush3.bf16.msra.mxu1 %v5581_v59 }
0x243a   : > { %5741 = vrcp.f32 %v4193_v26  ;;  %v3948_v40 = vpack.c.bf16 %v3947_v30, %v3946_v31  ;;  %5414 = vmatprep.subr.bf16.mxu1 %v6632_v25  ;;  %v4936_v26 = vld [vmem:[%s7012_s15 + $0x2] ss:$0 sm:$0xff]  ;;  %s5786_s15 = smov 32  }
0x243b   : > { %5743 = vrcp.f32 %v4190_v54  ;;  %v4075_v47 = vpop.permute.xlu1 %4074 }
0x243c   : > { %v5738_v44 = vpop.eup %5737 }
0x243d   : > { %v3950_v33 = vpop.permute.xlu0 %3949  ;;  %v5740_v43 = vpop.eup %5739  ;;  %v4072_v24 = vmul.f32 %v5738_v44, %v5724_v17  ;;  %5415 = vmatpush3.bf16.msra.mxu1 %v5582_v0  ;;  %v4937_v0 = vld [vmem:[%s6983_s8 + $0xa] ss:$0 sm:$0xff] }
0x243e   : > { %5383 = vmatpush3.bf16.msra.mxu0 %v3950_v33  ;;  %v4071_v48 = vmul.f32 %v5740_v43, %v5722_v9  ;;  %5428 = vmatprep.subr.bf16.mxu1 %v6632_v25 }
0x243f   : > { %5394 = vmatprep.subr.bf16.mxu0 %v6632_v25  ;;  %v4200_v15 = vpop.permute.xlu1 %4199 }
0x2440   : > { %v4073_v49 = vpack.c.bf16 %v4072_v24, %v4071_v48 }
0x2441   : > { %5385 = vmatmul.mubr.msk.bf16.vlgmr.msra.gmra.mrb[68].mxu0 %vm1272_vm8, %v3948_v40 }
0x2442   : > { %5395 = vmatpush3.bf16.msra.mxu0 %v4075_v47  ;;  %5396 = vmatprep.mubr.msk.bf16.mxu0 %vm5771_vm1, %v6632_v25 }
0x2443   : > { %5406 = vmatprep.subr.bf16.mxu0 %v6632_v25 }
0x2444   : > { %v5742_v36 = vpop.eup %5741 }
0x2445   : > { %v5744_v50 = vpop.eup %5743  ;;  %v4197_v34 = vmul.f32 %v5742_v36, %v5728_v19  ;;  %v5584_v36 = vld [vmem:[%s7013_s1 + $0x28] sm:$0xff]  }
0x2446   : > { %v4196_v51 = vmul.f32 %v5744_v50, %v5726_v16 }
0x2448   : > { %v4198_v52 = vpack.c.bf16 %v4197_v34, %v4196_v51 }
0x2449   : > { %5397 = vmatmul.mubr.msk.bf16.vlgmr.msra.gmra.mrb[72].mxu0 %vm1272_vm8, %v4073_v49 }
0x244a   : > { %5407 = vmatpush3.bf16.msra.mxu0 %v4200_v15  ;;  %5408 = vmatprep.mubr.msk.bf16.mxu0 %vm5771_vm1, %v6632_v25 }
0x244b   : > { %5420 = vmatprep.subr.bf16.mxu0 %v6632_v25 }
0x2451   : > { %5409 = vmatmul.mubr.msk.bf16.vlgmr.msra.gmra.mrb[76].mxu0 %vm1272_vm8, %v4198_v52 }
0x2452   : > { %5424 = vmatprep.mubr.msk.bf16.mxu0 %vm5771_vm1, %v6632_v25 }
0x2504   : > { %v3864_v14 = vpop.f32.mrb[64].mxu0 }
0x2505   : > { %v5374_v53 = vpop.f32.mrb[65].mxu0 }
0x2506   : > { %v3867_v55 = vpop.f32.mrb[66].mxu0 }
0x2507   : > { %v5375_v56 = vpop.f32.mrb[67].mxu0 }
0x2514   : > { %v3989_v37 = vpop.f32.mrb[68].mxu0 }
0x2515   : > { %v5386_v57 = vpop.f32.mrb[69].mxu0 }
0x2516   : > { %v3992_v58 = vpop.f32.mrb[70].mxu0 }
0x2517   : > { %v5512_v60 = vpack.i.bf16 %v3992_v58, %v3989_v37  ;;  %v5387_v61 = vpop.f32.mrb[71].mxu0 }
0x2519   : > { %5513 = vrot.lane.b32.xlu1 %v5512_v60, %s7009_s7 }
0x251c   : > { %v4114_v62 = vpop.f32.mrb[72].mxu0 }
0x251d   : > { %v5398_v63 = vpop.f32.mrb[73].mxu0 }
0x251e   : > { %v4117_v1 = vpop.f32.mrb[74].mxu0 }
0x251f   : > { %v5517_v3 = vpack.i.bf16 %v4117_v1, %v4114_v62  ;;  %v5399_v4 = vpop.f32.mrb[75].mxu0 }
0x2521   : > { %5518 = vrot.lane.b32.xlu0 %v5517_v3, %s7010_s14 }
0x2524   : > { %v4239_v5 = vpop.f32.mrb[76].mxu0 }
0x2525   : > { %v5410_v7 = vpop.f32.mrb[77].mxu0 }
0x2526   : > { %v4242_v9 = vpop.f32.mrb[78].mxu0  ;;  %v4938_v7 = vld [vmem:[%s6983_s8 + $0xb] ss:$0 sm:$0xff] }
0x2527   : > { %v5522_v2 = vpack.i.bf16 %v4242_v9, %v4239_v5  ;;  %v5411_v17 = vpop.f32.mrb[79].mxu0 }
0x2529   : > { %5523 = vrot.lane.b32.xlu1 %v5522_v2, %s7011_s5 }
0x258b   : > { %v5514_v10 = vpop.permute.xlu1 %5513 }
0x258c   : > { %v5516_v18 = vunpack.i.h.bf16 %v5514_v10  ;;  %v5515_v19 = vunpack.i.l.bf16 %v5514_v10 }
0x258e   : > { %v4271_v8 = vsel %vm1219_vm6, %v3867_v55, %v5516_v18  ;;  %v4270_v6 = vsel %vm1219_vm6, %v3864_v14, %v5515_v19  ;;  %v5586_v18 = vld [vmem:[%s6906_s17 + $0x88] sm:$0xff]   ;;  %v5587_v19 = vld [vmem:[%s6906_s17 + $0x90] sm:$0xff]  }
0x2593   : > { %v5519_v16 = vpop.permute.xlu0 %5518 }
0x2594   : > { %v5521_v20 = vunpack.i.h.bf16 %v5519_v16  ;;  %v5520_v46 = vunpack.i.l.bf16 %v5519_v16  ;;  %v5585_v16 = vld [vmem:[%s6906_s17 + $0x80] sm:$0xff]  }
0x2596   : > { %v4273_v39 = vsel %vm1272_vm8, %v4271_v8, %v5521_v20  ;;  %v4272_v42 = vsel %vm1272_vm8, %v4270_v6, %v5520_v46  ;;  %v5588_v20 = vld [vmem:[%s6906_s17 + $0x98] sm:$0xff]   ;;  %v5589_v46 = vld [vmem:[%s6906_s17 + $0xa0] sm:$0xff]   ;;  %v5591_v8 = vld [vmem:[%s6906_s17 + $0xb0] sm:$0xff]  }
0x2597   : > { %v5592_v6 = vld [vmem:[%s6906_s17 + $0xb8] sm:$0xff]  }
0x259b   : > { %v5524_v32 = vpop.permute.xlu1 %5523 }
0x259c   : > { %v5526_v45 = vunpack.i.h.bf16 %v5524_v32  ;;  %v5525_v21 = vunpack.i.l.bf16 %v5524_v32  ;;  %v5590_v32 = vld [vmem:[%s6906_s17 + $0xa8] sm:$0xff]  }
0x259e   : > { %v4275_v23 = vsel %vm1746_vm9, %v4273_v39, %v5526_v45  ;;  %v4274_v11 = vsel %vm1746_vm9, %v4272_v42, %v5525_v21  ;;  %v4944_v45 = vld [vmem:[%s6905_s16 + $0x2] ss:$0 sm:$0xff] }
0x259f   : > { %v4281_v35 = vpack.c.bf16 %v4275_v23, %v4274_v11 }
0x25a1   : > { %5417 = vmatmul.mubr.msk.bf16.vlgmr.msra.gmra.mrb[92].mxu1 %vm1051_vm4, %v4281_v35 }
0x25a2   : > { %5444 = vmatprep.mubr.msk.bf16.mxu1 %vm5771_vm1, %v6632_v25  ;;  %5429 = vmatpush3.bf16.msra.mxu1 %v5585_v16 }
0x25a3   : > { %5430 = vmatprep.subr.bf16.mxu1 %v6632_v25 }
0x25a6   : > { %5431 = vmatpush3.bf16.msra.mxu1 %v5586_v18 }
0x25a7   : > { %5432 = vmatprep.subr.bf16.mxu1 %v6632_v25 }
0x25aa   : > { %5433 = vmatpush3.bf16.msra.mxu1 %v5587_v19 }
0x25ab   : > { %5434 = vmatprep.subr.bf16.mxu1 %v6632_v25 }
0x25ae   : > { %5435 = vmatpush3.bf16.msra.mxu1 %v5588_v20 }
0x25af   : > { %5436 = vmatprep.subr.bf16.mxu1 %v6632_v25 }
0x25b2   : > { %5437 = vmatpush3.bf16.msra.mxu1 %v5589_v46 }
0x25b3   : > { %5438 = vmatprep.subr.bf16.mxu1 %v6632_v25 }
0x25b6   : > { %5439 = vmatpush3.bf16.msra.mxu1 %v5590_v32 }
0x25b7   : > { %5440 = vmatprep.subr.bf16.mxu1 %v6632_v25 }
0x25ba   : > { %5441 = vmatpush3.bf16.msra.mxu1 %v5591_v8 }
0x25bb   : > { %5442 = vmatprep.subr.bf16.mxu1 %v6632_v25 }
0x25be   : > { %5443 = vmatpush3.bf16.msra.mxu1 %v5592_v6 }
0x2674   : > { %v4331_v22 = vpop.f32.mrb[92].mxu1 }
0x2675   : > { %v4338_v29 = vadd.f32 %v4331_v22, %v6604_v12  ;;  %v5418_v30 = vpop.f32.mrb[93].mxu1 }
0x2676   : > { %v4334_v54 = vpop.f32.mrb[94].mxu1 }
0x2677   : > { %v6794_v31 = vadd.f32 %v4936_v26, %v4338_v29  ;;  %v4339_v33 = vadd.f32 %v4334_v54, %v6606_v13  ;;  %v5419_v40 = vpop.f32.mrb[95].mxu1  ;;  %v5583_v13 = vld [vmem:[%s7013_s1 + $0x20] sm:$0xff]   ;;  %s7014_s1 = sld [smem:[#allocation11_spill]] }
0x2678   : > { %5421 = vmatpush3.bf16.msra.mxu0 %v5583_v13  ;;  %v4975_v13 = vld [vmem:[%s6907_s18 + $0x2] ss:$0 sm:$0xff] }
0x2679   : > { %v4349_v44 = vadd.f32 %v4936_v26, %v4339_v33  ;;  %v4350_v47 = vsel %vm1051_vm4, %v6794_v31, 0.0  ;;  %v4358_v43 = vmul.f32 %v6794_v31, %v6794_v31  ;;  %5422 = vmatprep.subr.bf16.mxu0 %v6632_v25 }
0x267a   : > { %4351 = vadd.xlane.f32.xlu0 %v4350_v47 }
0x267b   : > { %v4353_v24 = vsel %vm1051_vm4, %v4349_v44, 0.0  ;;  %v4360_v12 = vsel %vm1051_vm4, %v4358_v43, 0.0  ;;  %v4359_v48 = vmul.f32 %v4349_v44, %v4349_v44 }
0x267c   : > { %4354 = vadd.xlane.f32.xlu1 %v4353_v24  ;;  %5423 = vmatpush3.bf16.msra.mxu0 %v5584_v36 }
0x267d   : > { %v4363_v49 = vsel %vm1051_vm4, %v4359_v48, 0.0  ;;  %5448 = vmatprep.subr.bf16.mxu0 %v6632_v25 }
0x267e   : > { %4361 = vadd.xlane.f32.xlu0 %v4360_v12 }
0x2682   : > { %4364 = vadd.xlane.f32.xlu0 %v4363_v49 }
0x2707   : > { %v4352_v15 = vpop.xlane.xlu0 %4351 }
0x2708   : > { %v4356_v50 = vmul.f32 0.03125, %v4352_v15 }
0x2709   : > { %v4355_v34 = vpop.xlane.xlu1 %4354 }
0x270a   : > { %v4368_v52 = vmul.f32 %v4356_v50, %v4356_v50  ;;  %v4357_v14 = vmul.f32 0.03125, %v4355_v34  ;;  %v4372_v61 = vsub.f32 %v6794_v31, %v4356_v50 }
0x270b   : > { %v4362_v51 = vpop.xlane.xlu0 %4361 }
0x270c   : > { %v4366_v53 = vmul.f32 0.03125, %v4362_v51  ;;  %v4369_v37 = vmul.f32 %v4357_v14, %v4357_v14  ;;  %v4373_v1 = vsub.f32 %v4349_v44, %v4357_v14 }
0x270e   : > { %v4370_v55 = vsub.f32 %v4366_v53, %v4368_v52 }
0x270f   : > { %v4365_v56 = vpop.xlane.xlu0 %4364 }
0x2710   : > { %v4374_v57 = vadd.f32 1e-05, %v4370_v55  ;;  %v4367_v58 = vmul.f32 0.03125, %v4365_v56  ;;  %v5594_v55 = vld [vmem:[%s7014_s1 + $0x8] sm:$0xff]  }
0x2712   : > { %5745 = vrsqrt.f32 %v4374_v57  ;;  %v4371_v59 = vsub.f32 %v4367_v58, %v4369_v37 }
0x2714   : > { %v4375_v60 = vadd.f32 1e-05, %v4371_v59 }
0x2716   : > { %5747 = vrsqrt.f32 %v4375_v60 }
0x271c   : > { %v5746_v62 = vpop.eup %5745 }
0x271d   : > { %v4378_v63 = vmul.f32 %v5746_v62, %v4372_v61 }
0x271f   : > { %v4384_v5 = vmul.f32 %v4937_v0, %v4378_v63  ;;  %v4594_v63 = vld [vmem:[%s7015_s13] sm:$0x1] }
0x2720   : > { %v5748_v3 = vpop.eup %5747 }
0x2721   : > { %v4379_v4 = vmul.f32 %v5748_v3, %v4373_v1  ;;  %v4390_v2 = vadd.f32 %v4938_v7, %v4384_v5  ;;  %v4595_v1 = vld [vmem:[%s7015_s13 + $0x1] sm:$0x1] }
0x2723   : > { %v4385_v9 = vmul.f32 %v4937_v0, %v4379_v4 }
0x2725   : > { %v4391_v17 = vadd.f32 %v4938_v7, %v4385_v9 }
0x2727   : > { %v4397_v10 = vpack.c.bf16 %v4391_v17, %v4390_v2 }
0x2729   : > { %5425 = vmatmul.mubr.msk.bf16.vlgmr.msra.gmra.mrb[80].mxu0 %vm1051_vm4, %v4397_v10 }
0x272a   : > { %5452 = vmatprep.mubr.msk.bf16.mxu0 %vm5771_vm1, %v6632_v25 }
0x27fc   : > { %v4455_v21 = vpop.f32.mrb[80].mxu0 }
0x27fd   : > { %v4456_v39 = vadd.f32 %v4944_v45, %v4455_v21  ;;  %v5426_v42 = vpop.f32.mrb[81].mxu0 }
0x27fe   : > { %v4458_v23 = vpop.f32.mrb[82].mxu0 }
0x27ff   : > { %v4948_v11 = vmul.f32 -1.702, %v4456_v39  ;;  %v4459_v35 = vadd.f32 %v4944_v45, %v4458_v23  ;;  %v5427_v22 = vpop.f32.mrb[83].mxu0 }
0x2801   : > { %v4466_v26 = vmul.f32 1.442695, %v4948_v11  ;;  %v4949_v29 = vmul.f32 -1.702, %v4459_v35 }
0x2803   : > { %5749 = vpow2.f32 %v4466_v26  ;;  %v4468_v30 = vmul.f32 1.442695, %v4949_v29 }
0x2805   : > { %5751 = vpow2.f32 %v4468_v30 }
0x280d   : > { %v5750_v54 = vpop.eup %5749 }
0x280e   : > { %v4470_v33 = vadd.f32 1.0, %v5750_v54 }
0x280f   : > { %v5752_v40 = vpop.eup %5751 }
0x2810   : > { %5753 = vrcp.f32 %v4470_v33  ;;  %v4471_v44 = vadd.f32 1.0, %v5752_v40 }
0x2812   : > { %5755 = vrcp.f32 %v4471_v44 }
0x281a   : > { %v5754_v47 = vpop.eup %5753 }
0x281b   : > { %v4476_v24 = vmul.f32 %v5754_v47, %v4456_v39 }
0x281c   : > { %v5756_v43 = vpop.eup %5755 }
0x281d   : > { %v4477_v12 = vmul.f32 %v5756_v43, %v4459_v35 }
0x281f   : > { %v4495_v48 = vpack.c.bf16 %v4477_v12, %v4476_v24 }
0x2821   : > { %5445 = vmatmul.mubr.bf16.vlgmr.msra.gmra.mrb[96].mxu1 %v4495_v48 }
0x28f4   : > { %v4578_v49 = vpop.f32.mrb[96].mxu1 }
0x28f5   : > { %v4584_v36 = vadd.f32 %v4578_v49, %v6794_v31  ;;  %v5446_v15 = vpop.f32.mrb[97].mxu1  ;;  %v5593_v31 = vld [vmem:[%s7014_s1] sm:$0xff]  }
0x28f6   : > { %v4581_v50 = vpop.f32.mrb[98].mxu1  ;;  %5449 = vmatpush3.bf16.msra.mxu0 %v5593_v31 }
0x28f7   : > { %v4593_v34 = vadd.f32 %v4975_v13, %v4584_v36  ;;  %v5447_v51 = vpop.f32.mrb[99].mxu1  ;;  %5450 = vmatprep.subr.bf16.mxu0 %v6632_v25 }
0x28f9   : > { %v4597_v52 = vsel %vm4596_vm14, %v4593_v34, 0.0  ;;  %v4601_v14 = vmul.f32 %v4593_v34, %v4593_v34 }
0x28fa   : > { %4598 = vadd.xlane.f32.xlu0 %v4597_v52  ;;  %5451 = vmatpush3.bf16.msra.mxu0 %v5594_v55 }
0x28fb   : > { %v4602_v53 = vsel %vm4596_vm14, %v4601_v14, 0.0 }
0x28fc   : > { %4603 = vadd.xlane.f32.xlu1 %v4602_v53 }
0x290d   : > { %3571 = vrot.lane.b32.xlu1 %v6680_v41, %s5786_s15 }
0x2910   : > { %3569 = vrot.lane.b32.xlu0 %v6678_v38, %s5786_s15 }
0x2987   : > { %v4599_v56 = vpop.xlane.xlu0 %4598 }
0x2988   : > { %v4600_v37 = vmul.f32 0.03125, %v4599_v56 }
0x2989   : > { %v4604_v41 = vpop.xlane.xlu1 %4603 }
0x298a   : > { %v4606_v57 = vmul.f32 %v4600_v37, %v4600_v37  ;;  %v4605_v38 = vmul.f32 0.03125, %v4604_v41  ;;  %v4608_v25 = vsub.f32 %v4593_v34, %v4600_v37 }
0x298b   : > { %v3570_v58 = vpop.permute.xlu0 %3569 }
0x298c   : > { %v4607_v59 = vsub.f32 %v4605_v38, %v4606_v57  ;;  %3576 = vst.msk [vmem:[%s5981_s6] sm:$0xff] %vm3575_vm15, %v3570_v58 }
0x298d   : > { %3624 = vst.msk [vmem:[%s5981_s6] sm:$0xff] %vm1272_vm8, %v6567_v27  ;;  %v3572_v60 = vpop.permute.xlu1 %3571 }
0x298e   : > { %v4609_v61 = vadd.f32 1e-05, %v4607_v59  ;;  %3577 = vst.msk [vmem:[%s5981_s6 + $0x8] sm:$0xff] %vm3575_vm15, %v3572_v60 }
0x298f   : > { %3625 = vst.msk [vmem:[%s5981_s6 + $0x8] sm:$0xff] %vm1272_vm8, %v6569_v28 }
0x2990   : > { %5757 = vrsqrt.f32 %v4609_v61 }
0x299a   : > { %v5758_v62 = vpop.eup %5757 }
0x299b   : > { %v4611_v0 = vmul.f32 %v5758_v62, %v4608_v25 }
0x299d   : > { %v4612_v27 = vmul.f32 %v4611_v0, %v4594_v63 }
0x299f   : > { %v4613_v3 = vadd.f32 %v4612_v27, %v4595_v1 }
0x29a1   : > { %v4618_v4 = vpack.c.bf16 %v4613_v3, %v4613_v3 }
0x29a3   : > { %5453 = vmatmul.mubr.msk.bf16.vlgmr.msra.gmra.mrb[84].mxu0 %vm1051_vm4, %v4618_v4 }
0x2a76   : > { %v4668_v5 = vpop.f32.mrb[84].mxu0 }
0x2a77   : > { %4675 = vrot.lane.b32.xlu1 %v4668_v5, %s7010_s14  ;;  %v5454_v28 = vpop.f32.mrb[85].mxu0 }
0x2a78   : > { %v4671_v7 = vpop.f32.mrb[86].mxu0 }
0x2a79   : > { %v5455_v9 = vpop.f32.mrb[87].mxu0 }
0x2ae9   : > { %v4676_v2 = vpop.permute.xlu1 %4675 }
0x2aea   : > { %4679 = vst.msk [vmem:[%s5981_s6] sm:$0x1] %vm4678_vm0, %v4676_v2 }
0x2aeb PF: > { %s7016_s29 = sld [smem:[#allocation2_spill]] }
0x2af1   : > { %s37_s7 = sadd.s32 1, %s7016_s29  }
0x2af2   : > { %p34_p4 = scmp.ge.s32.totalorder %s37_s7, 4  }
0x2af4   :  { %36 = sbr.rel (!%p34_p4) target bundleno = 17 (0x11), region = 180 }

</bundles_post_ra>
